<compile_context>
chip_gen: v5e
topology: v5e:2x2
jax: 0.10.0
libtpu: 0.0.40
codegen_flags: <defaults>
</compile_context>

<pallas_src>
import math
import functools

import jax
import jax.numpy as jnp
from jax.experimental import pallas as pl
from jax.experimental.pallas import tpu as pltpu

PAD = 128                 # lane-padded feature width carried end-to-end
W_DTYPE = jnp.bfloat16    # matmul operand dtype (f32 accumulate / f32 epilogue)


def _round_up(v, m):
    return ((v + m - 1) // m) * m


# --------------------------------------------------------------------------------------
# Pallas kernels
# --------------------------------------------------------------------------------------
def _linear_kernel(x_ref, w_ref, b_ref, o_ref, *, relu):
    x = x_ref[...].astype(W_DTYPE)
    y = jnp.dot(x, w_ref[...], preferred_element_type=jnp.float32)
    y = y + b_ref[...]
    if relu:
        y = jnp.maximum(y, 0.0)
    o_ref[...] = y


def _mlp_kernel(x_ref, w1_ref, b1_ref, w2_ref, b2_ref, o_ref):
    x = x_ref[...].astype(W_DTYPE)
    h = jnp.dot(x, w1_ref[...], preferred_element_type=jnp.float32) + b1_ref[...]
    h = jnp.maximum(h, 0.0).astype(W_DTYPE)
    o_ref[...] = jnp.dot(h, w2_ref[...], preferred_element_type=jnp.float32) + b2_ref[...]


def _causal_conv_relu(x_bf, s_ref, w_ref, b_ref, taps):
    """Causal dilated conv over row-stacked sequences:
    tap (taps-1) has zero shift; taps j < taps-1 use the (M, M) shift matrix s_ref[j]."""
    acc = jnp.dot(x_bf, w_ref[taps - 1], preferred_element_type=jnp.float32)
    for j in range(taps - 1):
        xs = jnp.dot(s_ref[j], x_bf, preferred_element_type=jnp.float32).astype(W_DTYPE)
        acc = acc + jnp.dot(xs, w_ref[j], preferred_element_type=jnp.float32)
    return jnp.maximum(acc + b_ref[...], 0.0)


def _tblock_kernel(x_ref, s_ref, w1_ref, b1_ref, w2_ref, b2_ref, o_ref, *, taps):
    x_bf = x_ref[...].astype(W_DTYPE)
    h1 = _causal_conv_relu(x_bf, s_ref, w1_ref, b1_ref, taps)
    h2 = _causal_conv_relu(h1.astype(W_DTYPE), s_ref, w2_ref, b2_ref, taps)
    o_ref[...] = jnp.maximum(h2 + x_ref[...], 0.0)        # identity residual + ReLU


def _tblock_down_kernel(x_ref, s_ref, w1_ref, b1_ref, w2_ref, b2_ref,
                        wd_ref, bd_ref, o_ref, *, taps):
    x_bf = x_ref[...].astype(W_DTYPE)
    h1 = _causal_conv_relu(x_bf, s_ref, w1_ref, b1_ref, taps)
    h2 = _causal_conv_relu(h1.astype(W_DTYPE), s_ref, w2_ref, b2_ref, taps)
    res = jnp.dot(x_bf, wd_ref[...], preferred_element_type=jnp.float32) + bd_ref[...]
    o_ref[...] = jnp.maximum(h2 + res, 0.0)               # downsample residual + ReLU


def _experts_kernel(x_ref, w1_ref, b1_ref, w2_ref, b2_ref, o_ref):
    x = x_ref[...].astype(W_DTYPE)
    h = jnp.dot(x, w1_ref[0], preferred_element_type=jnp.float32) + b1_ref[0]
    h = jnp.maximum(h, 0.0).astype(W_DTYPE)
    o_ref[...] = jnp.dot(h, w2_ref[0], preferred_element_type=jnp.float32) + b2_ref[0]


# --------------------------------------------------------------------------------------
# Pallas wrappers (all operands arrive already lane-padded; no per-call pad copies)
# --------------------------------------------------------------------------------------
def pallas_linear(x, w, b, relu=False):
    """x: (..., Kp) f32 lane-padded; w: (Kp, Np) bf16 pre-padded; b: (1, Np) f32."""
    Kp, Np = w.shape
    lead = x.shape[:-1]
    x2 = x.reshape(-1, Kp)
    M = x2.shape[0]
    TM = 256                                   # row tiling only kicks in for large M
    if M > TM and M % TM == 0:
        grid, bm = (M // TM,), TM
    else:
        grid, bm = (1,), M
    out = pl.pallas_call(
        functools.partial(_linear_kernel, relu=relu),
        out_shape=jax.ShapeDtypeStruct((M, Np), jnp.float32),
        grid=grid,
        in_specs=[
            pl.BlockSpec((bm, Kp), lambda i: (i, 0)),
            pl.BlockSpec((Kp, Np), lambda i: (0, 0)),
            pl.BlockSpec((1, Np), lambda i: (0, 0)),
        ],
        out_specs=pl.BlockSpec((bm, Np), lambda i: (i, 0)),
        compiler_params=pltpu.CompilerParams(dimension_semantics=("parallel",)),
    )(x2, w, b)
    return out.reshape(lead + (Np,))


def pallas_mlp(x, w1, b1, w2, b2):
    """Fused y = relu(x@w1+b1) @ w2 + b2 (transformer FFN)."""
    Kp, Hp = w1.shape
    Np = w2.shape[1]
    lead = x.shape[:-1]
    x2 = x.reshape(-1, Kp)
    M = x2.shape[0]
    out = pl.pallas_call(
        _mlp_kernel,
        out_shape=jax.ShapeDtypeStruct((M, Np), jnp.float32),
        grid=(1,),
        in_specs=[
            pl.BlockSpec((M, Kp), lambda i: (0, 0)),
            pl.BlockSpec((Kp, Hp), lambda i: (0, 0)),
            pl.BlockSpec((1, Hp), lambda i: (0, 0)),
            pl.BlockSpec((Hp, Np), lambda i: (0, 0)),
            pl.BlockSpec((1, Np), lambda i: (0, 0)),
        ],
        out_specs=pl.BlockSpec((M, Np), lambda i: (0, 0)),
        compiler_params=pltpu.CompilerParams(dimension_semantics=("arbitrary",)),
    )(x2, w1, b1, w2, b2)
    return out.reshape(lead + (Np,))


def pallas_temporal_block(h, smats, p):
    """One fused TemporalBlock (conv1+ReLU, conv2+ReLU, optional downsample, residual+ReLU).
    h: (M, Cp) f32 row-stacked sequences; smats: (k-1, M, M) bf16 causal shift matrices."""
    M, Cp = h.shape
    km1 = smats.shape[0]
    k = km1 + 1
    Op = p['conv1_w'].shape[-1]
    in_specs = [
        pl.BlockSpec((M, Cp), lambda i: (0, 0)),
        pl.BlockSpec((km1, M, M), lambda i: (0, 0, 0)),
        pl.BlockSpec((k, Cp, Op), lambda i: (0, 0, 0)),
        pl.BlockSpec((1, Op), lambda i: (0, 0)),
        pl.BlockSpec((k, Op, Op), lambda i: (0, 0, 0)),
        pl.BlockSpec((1, Op), lambda i: (0, 0)),
    ]
    args = [h, smats, p['conv1_w'], p['conv1_b'], p['conv2_w'], p['conv2_b']]
    if 'down_w' in p:
        kern = functools.partial(_tblock_down_kernel, taps=k)
        in_specs += [pl.BlockSpec((Cp, Op), lambda i: (0, 0)),
                     pl.BlockSpec((1, Op), lambda i: (0, 0))]
        args += [p['down_w'], p['down_b']]
    else:
        kern = functools.partial(_tblock_kernel, taps=k)
    return pl.pallas_call(
        kern,
        out_shape=jax.ShapeDtypeStruct((M, Op), jnp.float32),
        grid=(1,),
        in_specs=in_specs,
        out_specs=pl.BlockSpec((M, Op), lambda i: (0, 0)),
        compiler_params=pltpu.CompilerParams(dimension_semantics=("arbitrary",)),
    )(*args)


def pallas_experts(x, ep):
    """All E experts (Linear-ReLU-Linear) in ONE Pallas call, grid over experts.
    x: (M, Kp) f32; returns (M, E, Op) f32 lane-padded expert outputs."""
    M, Kp = x.shape
    E, _, Hp = ep['w1'].shape
    Op = ep['w2'].shape[-1]
    out = pl.pallas_call(
        _experts_kernel,
        out_shape=jax.ShapeDtypeStruct((M, E * Op), jnp.float32),
        grid=(E,),
        in_specs=[
            pl.BlockSpec((M, Kp), lambda e: (0, 0)),
            pl.BlockSpec((1, Kp, Hp), lambda e: (e, 0, 0)),
            pl.BlockSpec((1, 1, Hp), lambda e: (e, 0, 0)),
            pl.BlockSpec((1, Hp, Op), lambda e: (e, 0, 0)),
            pl.BlockSpec((1, 1, Op), lambda e: (e, 0, 0)),
        ],
        out_specs=pl.BlockSpec((M, Op), lambda e: (0, e)),
        compiler_params=pltpu.CompilerParams(dimension_semantics=("parallel",)),
    )(x, ep['w1'], ep['b1'], ep['w2'], ep['b2'])
    return out.reshape(M, E, Op)


# --------------------------------------------------------------------------------------
# Plain-JAX glue (jit-fused; operates on zero-padded 128-lane features)
# --------------------------------------------------------------------------------------
def layer_norm_padded(x, g, b, d_real, eps=1e-5):
    """LayerNorm over the first d_real lanes of a zero-padded (..., PAD) tensor."""
    inv_d = 1.0 / d_real
    m = jnp.sum(x, axis=-1, keepdims=True) * inv_d
    var = jnp.sum(x * x, axis=-1, keepdims=True) * inv_d - m * m
    var = jnp.maximum(var, 0.0)
    return (x - m) * jax.lax.rsqrt(var + eps) * g + b


def make_pos_encoding(d_model, max_len):
    position = jnp.arange(max_len, dtype=jnp.float32)[:, None]
    div_term = jnp.exp(jnp.arange(0, d_model, 2, dtype=jnp.float32)
                       * (-math.log(10000.0) / d_model))
    pe = jnp.zeros((max_len, d_model), jnp.float32)
    pe = pe.at[:, 0::2].set(jnp.sin(position * div_term))
    pe = pe.at[:, 1::2].set(jnp.cos(position * div_term))
    return pe


def make_shift_mats(N, T, k, dilation):
    """Block-diagonal causal shift matrices: (S_j @ X)[n*T+t] = X[n*T + t - s_j]
    (zero below sequence start), s_j = (k-1-j)*dilation, for j = 0..k-2 (tap k-1 has s=0).
    Constant w.r.t. data -> folded by XLA at these static shapes."""
    mats = []
    eye_n = jnp.eye(N, dtype=jnp.float32)
    for j in range(k - 1):
        s = (k - 1 - j) * dilation
        if s >= T:
            blk = jnp.zeros((T, T), jnp.float32)
        else:
            blk = jnp.eye(T, T, k=-s, dtype=jnp.float32)
        mats.append(jnp.kron(eye_n, blk))
    return jnp.stack(mats, 0).astype(W_DTYPE)


# --------------------------------------------------------------------------------------
# Per-sensor TCN encoder
# --------------------------------------------------------------------------------------
def per_sensor_encoder(x_flat, p, cfg):
    """x_flat: (N, T, 1) -> (N, T, PAD) TCN features (real width = tcn_out_dim)."""
    N, T, _ = x_flat.shape
    x_p = jnp.pad(x_flat, ((0, 0), (0, 0), (0, PAD - x_flat.shape[-1])))
    h = pallas_linear(x_p.reshape(N * T, PAD), p['in_proj_w'], p['in_proj_b'])
    h = (h.reshape(N, T, PAD) + p['pe'][:T][None]).reshape(N * T, PAD)
    k = cfg['tcn_kernel_size']
    for i, blk in enumerate(p['tcn_blocks']):
        smats = make_shift_mats(N, T, k, 2 ** i)
        h = pallas_temporal_block(h, smats, blk)
    h = h.reshape(N, T, PAD)
    return layer_norm_padded(h, p['final_norm_g'], p['final_norm_b'],
                             cfg['sensor_tcn_out_dim'])


# --------------------------------------------------------------------------------------
# Inter-sensor transformer (norm_first encoder layers)
# --------------------------------------------------------------------------------------
def mha(x, lp, nhead, kpm, d):
    B, S, P = x.shape
    qkv = pallas_linear(x, lp['in_proj_w'], lp['in_proj_b'])       # real width 3*d
    hd = d // nhead
    q, k, v = qkv[..., 0:d], qkv[..., d:2 * d], qkv[..., 2 * d:3 * d]

    def heads(t):
        return jnp.transpose(t.reshape(B, S, nhead, hd), (0, 2, 1, 3))

    q, k, v = heads(q), heads(k), heads(v)
    scores = jnp.einsum('bhqd,bhkd->bhqk', q, k) / math.sqrt(hd)
    scores = jnp.where(kpm[:, None, None, :], -1e30, scores)       # large-neg, NaN-safe
    attn = jax.nn.softmax(scores, axis=-1)
    out = jnp.einsum('bhqk,bhkd->bhqd', attn, v)
    out = jnp.transpose(out, (0, 2, 1, 3)).reshape(B, S, d)
    out = jnp.pad(out, ((0, 0), (0, 0), (0, P - d)))               # back to lane-padded
    return pallas_linear(out, lp['out_proj_w'], lp['out_proj_b'])


def encoder_layer(x, lp, nhead, kpm, d):
    h = layer_norm_padded(x, lp['norm1_g'], lp['norm1_b'], d)
    x = x + mha(h, lp, nhead, kpm, d)
    h = layer_norm_padded(x, lp['norm2_g'], lp['norm2_b'], d)
    return x + pallas_mlp(h, lp['lin1_w'], lp['lin1_b'], lp['lin2_w'], lp['lin2_b'])


def inter_sensor_transformer(x, p, nhead, kpm, d):
    x = x + p['pos'][:, :x.shape[1], :]
    for lp in p['layers']:
        x = encoder_layer(x, lp, nhead, kpm, d)
    return layer_norm_padded(x, p['out_norm_g'], p['out_norm_b'], d)


# --------------------------------------------------------------------------------------
# MoE top-k routing (dense, masked -> fully jit-able)
# --------------------------------------------------------------------------------------
def moe_combine(all_out, logits, k, num_experts, row_mask=None):
    """all_out: (N, E, P) per-expert outputs; logits: (N, E) real gate logits.
    row_mask (if given) excludes masked tokens from the output and the
    load-balance / entropy statistics, matching the PyTorch valid-token-only path."""
    topk_val, topk_idx = jax.lax.top_k(logits, k)
    topk_w = jax.nn.softmax(topk_val, axis=-1)
    gidx = jnp.broadcast_to(topk_idx[:, :, None], topk_idx.shape + (all_out.shape[-1],))
    y = jnp.sum(jnp.take_along_axis(all_out, gidx, axis=1) * topk_w[:, :, None], axis=1)

    probs = jax.nn.softmax(logits, axis=-1)
    logp = jax.nn.log_softmax(logits, axis=-1)
    row_ent = jnp.sum(probs * logp, axis=-1)
    if row_mask is None:
        n_eff = jnp.float32(logits.shape[0])
        avg_prob = jnp.mean(probs, axis=0)
        add_vals = jnp.ones((topk_idx.size,), jnp.float32)
        ent = jnp.mean(row_ent)
    else:
        n_eff = jnp.maximum(jnp.sum(row_mask), 1.0)
        avg_prob = jnp.sum(probs * row_mask[:, None], axis=0) / n_eff
        add_vals = jnp.broadcast_to(row_mask[:, None], topk_idx.shape).reshape(-1)
        ent = jnp.sum(row_ent * row_mask) / n_eff
        y = y * row_mask[:, None]
    counts = jnp.zeros((num_experts,), jnp.float32).at[topk_idx.reshape(-1)].add(add_vals)
    expert_frac = counts / (n_eff * k)
    load_loss = num_experts * jnp.sum(avg_prob * expert_frac)
    return y, load_loss, ent


# --------------------------------------------------------------------------------------
# Full forward pass (eval mode: dropout = identity, moe_noise = 0)
# --------------------------------------------------------------------------------------
def forward(params, cfg, x, sensor_mask):
    B, T, S = x.shape
    D = cfg['transformer_d_model']
    E = cfg['num_shared_experts']
    k_top = min(cfg['moe_top_k'], E)

    x_perm = jnp.transpose(x, (0, 2, 1))                 # (B, S, T)
    last_val = x_perm[:, :, -1]                          # (B, S)
    x_flat = x_perm.reshape(B * S, T, 1)

    feat_flat = per_sensor_encoder(x_flat, params['encoder'], cfg)   # (B*S, T, PAD)
    feat = feat_flat.reshape(B, S, T, PAD) * sensor_mask[:, :, None, None]
    pooled = jnp.mean(feat, axis=2)                      # (B, S, PAD)

    # pooled_to_transformer_dim_proj is nn.Identity (tcn_out_dim == d_model)
    kpm = sensor_mask == 0
    ctx = inter_sensor_transformer(pooled, params['ist'], cfg['transformer_nhead'], kpm, D)
    ctx_m = ctx * sensor_mask[:, :, None]                # (B, S, PAD)

    active = jnp.clip(jnp.sum(sensor_mask, axis=1, keepdims=True), 1.0, None)
    mean_ctx = jnp.sum(ctx_m, axis=1) / active
    mean_sq = jnp.sum(ctx_m ** 2 * sensor_mask[:, :, None], axis=1) / active
    var = mean_sq - mean_ctx ** 2
    std = jnp.sqrt(jnp.clip(var, 1e-6, None))
    router_in = jnp.concatenate([mean_ctx, std], axis=-1)        # (B, 2*PAD), segmented

    # --- ONE experts launch for all three MoE paths (rows stacked) ---
    ctx_flat = ctx_m.reshape(B * S, PAD)
    valid = sensor_mask.reshape(-1)
    all_out = pallas_experts(jnp.concatenate([mean_ctx, ctx_flat], axis=0),
                             params['experts'])                   # (B + B*S, E, PAD)
    all_out_g, all_out_rca = all_out[:B], all_out[B:]

    # --- ONE launch for the forecast + fail gates (column-stacked weights) ---
    g_out = pallas_linear(router_in, params['gate_global']['w'],
                          params['gate_global']['b'])
    logits_f, logits_fail = g_out[:, :E], g_out[:, E:2 * E]
    logits_rca = pallas_linear(ctx_flat, params['gate_rca']['w'],
                               params['gate_rca']['b'])[:, :E]

    moe_f, aux_f, ent_f = moe_combine(all_out_g, logits_f, k_top, E)
    moe_fail, aux_fail, ent_fail = moe_combine(all_out_g, logits_fail, k_top, E)
    moe_rca, aux_rca, ent_rca = moe_combine(all_out_rca, logits_rca, k_top, E,
                                            row_mask=valid)

    total_aux = cfg['aux_loss_coeff'] * (aux_f + aux_fail + aux_rca)
    total_entropy = jnp.float32(0.0)
    if cfg['entropy_reg_coeff'] > 0:  # eval-mode entropy regularizer
        total_entropy = -cfg['entropy_reg_coeff'] * (ent_f + ent_fail + ent_rca)

    # --- ONE launch for pred_head + rca_head (4-segment input, stacked outputs) ---
    tcn_last = feat[:, :, -1, :]                                  # (B, S, PAD)
    tcn_flat = tcn_last.reshape(B * S, PAD)
    moe_f_flat = jnp.broadcast_to(moe_f[:, None, :], (B, S, PAD)).reshape(B * S, PAD)
    head_in = jnp.concatenate([tcn_flat, ctx_flat, moe_f_flat, moe_rca], axis=-1)
    head_out = pallas_linear(head_in, params['head_w'], params['head_b'])
    P_len = cfg['pred_horizons_len']
    pred_delta = head_out[:, :P_len].reshape(B, S, P_len)
    pred_abs = (last_val[:, :, None] + pred_delta) * sensor_mask[:, :, None]
    rca_logits = head_out[:, P_len].reshape(B, S)

    fail_out = pallas_linear(moe_fail, params['fail_head_w'], params['fail_head_b'])
    fail_logits = fail_out[:, :cfg['fail_horizons_len']]

    return pred_abs, fail_logits, rca_logits, total_aux, total_entropy


# --------------------------------------------------------------------------------------
# Parameter init: everything pre-padded ONCE to the 128-lane layout
# --------------------------------------------------------------------------------------
def pad_linear_weights(w, b, seg_sizes=None):
    """w: (K, N), b: (N,).  Returns bf16 (Kp, Np) weight, f32 (1, Np) bias.
    seg_sizes: real widths of the 128-lane-padded activation segments that will be
    concatenated at call time (so activations never need re-packing)."""
    K, N = w.shape
    Np = _round_up(N, PAD)
    if seg_sizes is None:
        seg_sizes = (K,)
    Kp = PAD * len(seg_sizes)
    wp = jnp.zeros((Kp, Np), jnp.float32)
    r = 0
    for si, sz in enumerate(seg_sizes):
        wp = wp.at[si * PAD: si * PAD + sz, :N].set(w[r:r + sz, :])
        r += sz
    bp = jnp.zeros((1, Np), jnp.float32).at[0, :N].set(b)
    return wp.astype(W_DTYPE), bp


def pad_conv_weights(w, b):
    """PyTorch Conv1d weight (O, C, k) -> per-tap, lane-padded (k, PAD, PAD) bf16."""
    O, C, k = w.shape
    wp = jnp.zeros((k, PAD, PAD), jnp.float32)
    for j in range(k):
        wp = wp.at[j, :C, :O].set(w[:, :, j].T)
    bp = jnp.zeros((1, PAD), jnp.float32).at[0, :O].set(b)
    return wp.astype(W_DTYPE), bp


def pad_feat(v):
    return jnp.pad(v, [(0, 0)] * (v.ndim - 1) + [(0, PAD - v.shape[-1])])


def init_params(key, cfg):
    keys = iter(jax.random.split(key, 256))

    def w(shape, scale=0.1):
        return scale * jax.random.normal(next(keys), shape, dtype=jnp.float32)

    proj = cfg['sensor_tcn_proj_dim']
    tcn_out = cfg['sensor_tcn_out_dim']
    d = cfg['transformer_d_model']
    k_sz = cfg['tcn_kernel_size']
    E = cfg['num_shared_experts']
    moe_out = cfg['moe_output_dim']

    in_proj_w, in_proj_b = pad_linear_weights(
        w((cfg['sensor_input_dim'], proj)), w((proj,), 0.05))
    pe = pad_feat(make_pos_encoding(proj, max(cfg['seq_len'], 5000)))

    tcn_blocks = []
    ch = proj
    for _ in range(cfg['tcn_levels']):
        c1w, c1b = pad_conv_weights(w((tcn_out, ch, k_sz)), w((tcn_out,), 0.05))
        c2w, c2b = pad_conv_weights(w((tcn_out, tcn_out, k_sz)), w((tcn_out,), 0.05))
        blk = {'conv1_w': c1w, 'conv1_b': c1b, 'conv2_w': c2w, 'conv2_b': c2b}
        if ch != tcn_out:
            dw, db = pad_linear_weights(w((ch, tcn_out)), w((tcn_out,), 0.05))
            blk['down_w'], blk['down_b'] = dw, db
        tcn_blocks.append(blk)
        ch = tcn_out

    encoder = {
        'in_proj_w': in_proj_w, 'in_proj_b': in_proj_b, 'pe': pe,
        'tcn_blocks': tcn_blocks,
        'final_norm_g': pad_feat(jnp.ones((tcn_out,), jnp.float32)),
        'final_norm_b': jnp.zeros((PAD,), jnp.float32),
    }

    layers = []
    for _ in range(cfg['transformer_nlayers']):
        qkv_w, qkv_b = pad_linear_weights(w((d, 3 * d)), w((3 * d,), 0.05))
        op_w, op_b = pad_linear_weights(w((d, d)), w((d,), 0.05))
        l1w, l1b = pad_linear_weights(w((d, 2 * d)), w((2 * d,), 0.05))
        l2w, l2b = pad_linear_weights(w((2 * d, d)), w((d,), 0.05))
        layers.append({
            'norm1_g': pad_feat(jnp.ones((d,), jnp.float32)),
            'norm1_b': jnp.zeros((PAD,), jnp.float32),
            'in_proj_w': qkv_w, 'in_proj_b': qkv_b,
            'out_proj_w': op_w, 'out_proj_b': op_b,
            'norm2_g': pad_feat(jnp.ones((d,), jnp.float32)),
            'norm2_b': jnp.zeros((PAD,), jnp.float32),
            'lin1_w': l1w, 'lin1_b': l1b, 'lin2_w': l2w, 'lin2_b': l2b,
        })
    ist = {
        'pos': jnp.zeros((1, cfg['model_max_sensors'], PAD), jnp.float32),
        'layers': layers,
        'out_norm_g': pad_feat(jnp.ones((d,), jnp.float32)),
        'out_norm_b': jnp.zeros((PAD,), jnp.float32),
    }

    w1s, b1s, w2s, b2s = [], [], [], []
    for _ in range(E):
        w1p, b1p = pad_linear_weights(
            w((cfg['moe_expert_input_dim'], cfg['moe_hidden_dim_expert'])),
            w((cfg['moe_hidden_dim_expert'],), 0.05))
        w2p, b2p = pad_linear_weights(
            w((cfg['moe_hidden_dim_expert'], moe_out)), w((moe_out,), 0.05))
        w1s.append(w1p); b1s.append(b1p); w2s.append(w2p); b2s.append(b2p)
    experts = {'w1': jnp.stack(w1s), 'b1': jnp.stack(b1s),
               'w2': jnp.stack(w2s), 'b2': jnp.stack(b2s)}

    # forecast + fail gates column-stacked into one padded weight (one launch at runtime)
    wf, bf = w((2 * d, E)), w((E,), 0.05)
    wl, bl = w((2 * d, E)), w((E,), 0.05)
    gg_w, gg_b = pad_linear_weights(jnp.concatenate([wf, wl], axis=1),
                                    jnp.concatenate([bf, bl]), seg_sizes=(d, d))
    gr_w, gr_b = pad_linear_weights(w((d, E)), w((E,), 0.05))

    # pred_head + rca_head fused: input segments [tcn_last | ctx | moe_forecast | moe_rca]
    head_in_real = tcn_out + d + moe_out
    Wp, bp_ = w((head_in_real, cfg['pred_horizons_len'])), w((cfg['pred_horizons_len'],), 0.05)
    Wr, br_ = w((head_in_real, 1)), w((1,), 0.05)
    P_len = cfg['pred_horizons_len']
    Wc = jnp.zeros((tcn_out + d + 2 * moe_out, P_len + 1), jnp.float32)
    Wc = Wc.at[:tcn_out + d, :P_len].set(Wp[:tcn_out + d])
    Wc = Wc.at[tcn_out + d:tcn_out + d + moe_out, :P_len].set(Wp[tcn_out + d:])
    Wc = Wc.at[:tcn_out + d, P_len].set(Wr[:tcn_out + d, 0])
    Wc = Wc.at[tcn_out + d + moe_out:, P_len].set(Wr[tcn_out + d:, 0])
    bc = jnp.concatenate([bp_, br_])
    head_w, head_b = pad_linear_weights(
        Wc, bc, seg_sizes=(tcn_out, d, moe_out, moe_out))

    fh_w, fh_b = pad_linear_weights(
        w((moe_out, cfg['fail_horizons_len'])), w((cfg['fail_horizons_len'],), 0.05))

    return {
        'encoder': encoder, 'ist': ist, 'experts': experts,
        'gate_global': {'w': gg_w, 'b': gg_b},
        'gate_rca': {'w': gr_w, 'b': gr_b},
        'head_w': head_w, 'head_b': head_b,
        'fail_head_w': fh_w, 'fail_head_b': fh_b,
    }


# --------------------------------------------------------------------------------------
CFG = dict(
    model_max_sensors=4, seq_len=8, sensor_input_dim=1,
    sensor_tcn_proj_dim=8, sensor_tcn_out_dim=16,
    tcn_levels=2, tcn_kernel_size=3, tcn_dropout=0.1,
    transformer_d_model=16, transformer_nhead=2, transformer_nlayers=1,
    num_shared_experts=4, moe_expert_input_dim=16, moe_hidden_dim_expert=16,
    moe_output_dim=16, pred_horizons_len=3, fail_horizons_len=2,
    moe_top_k=2, moe_noise_std=0.0, aux_loss_coeff=0.01, entropy_reg_coeff=0.001,
)


if __name__ == "__main__":
    key = jax.random.PRNGKey(0)
    pkey, xkey = jax.random.split(key)
    params = init_params(pkey, CFG)

    batch = 2
    x = jax.random.normal(
        xkey, (batch, CFG['seq_len'], CFG['model_max_sensors']), dtype=jnp.float32)
    sensor_mask = jnp.array([[1., 1., 1., 0.],
                             [1., 1., 0., 0.]], dtype=jnp.float32)

    fwd = jax.jit(lambda p, xx, m: forward(p, CFG, xx, m))
    outs = fwd(params, x, sensor_mask)
    jax.block_until_ready(outs)

    pred_abs, fail_logits, rca_logits, total_aux, total_entropy = outs
    assert pred_abs.shape == (batch, CFG['model_max_sensors'], CFG['pred_horizons_len'])
    assert fail_logits.shape == (batch, CFG['fail_horizons_len'])
    assert rca_logits.shape == (batch, CFG['model_max_sensors'])
    assert bool(jnp.isfinite(pred_abs).all())
    assert bool(jnp.isfinite(fail_logits).all())
    assert bool(jnp.isfinite(rca_logits).all())
    assert bool(jnp.isfinite(total_aux)) and bool(jnp.isfinite(total_entropy))
    print("KERNEL_OK")
</pallas_src>

<mosaic_0001>
module attributes {stable_mosaic.version = 11 : i64} {
  func.func @_linear_kernel(%arg0: i32, %arg1: memref<64x128xf32, #tpu.memory_space<vmem>>, %arg2: memref<128x128xbf16, #tpu.memory_space<vmem>>, %arg3: memref<1x128xf32, #tpu.memory_space<vmem>>, %arg4: memref<64x128xf32, #tpu.memory_space<vmem>>) attributes {dimension_semantics = [#tpu.dimension_semantics<parallel>], iteration_bounds = array<i64: 1>, scalar_prefetch = 0 : i64, scratch_operands = 0 : i64, tpu.core_type = #tpu.core_type<tc>, window_params = [{transform_indices = @transform_0, window_bounds = array<i64: 64, 128>}, {pipeline_mode = #tpu.pipeline_mode<synchronous>, transform_indices = @transform_1, window_bounds = array<i64: 128, 128>}, {pipeline_mode = #tpu.pipeline_mode<synchronous>, transform_indices = @transform_2, window_bounds = array<i64: 1, 128>}, {transform_indices = @transform_3, window_bounds = array<i64: 64, 128>}]} {
    %c0 = arith.constant 0 : index
    %c0_0 = arith.constant 0 : index
    %0 = vector.load %arg1[%c0, %c0_0] : memref<64x128xf32, #tpu.memory_space<vmem>>, vector<64x128xf32>
    %1 = arith.truncf %0 : vector<64x128xf32> to vector<64x128xbf16>
    %c0_1 = arith.constant 0 : index
    %c0_2 = arith.constant 0 : index
    %2 = vector.load %arg2[%c0_1, %c0_2] : memref<128x128xbf16, #tpu.memory_space<vmem>>, vector<128x128xbf16>
    %cst = arith.constant dense<0.000000e+00> : vector<64x128xf32>
    %3 = tpu.matmul %1, %2, %cst {dimension_numbers = #tpu.dot_dimension_numbers<[1], [0], [0], [1], [0, 0, 1, 1], [], []>} : vector<64x128xbf16>, vector<128x128xbf16>, vector<64x128xf32> -> vector<64x128xf32>
    %c0_3 = arith.constant 0 : index
    %c0_4 = arith.constant 0 : index
    %4 = vector.load %arg3[%c0_3, %c0_4] : memref<1x128xf32, #tpu.memory_space<vmem>>, vector<1x128xf32>
    %5 = vector.broadcast %4 : vector<1x128xf32> to vector<64x128xf32>
    %6 = arith.addf %3, %5 : vector<64x128xf32>
    %c0_5 = arith.constant 0 : index
    %c0_6 = arith.constant 0 : index
    %7 = vector.load %arg4[%c0_5, %c0_6] : memref<64x128xf32, #tpu.memory_space<vmem>>, vector<64x128xf32>
    tpu.vector_store %arg4[%c0_5, %c0_6], %6 {strides = array<i32>} : memref<64x128xf32, #tpu.memory_space<vmem>>, vector<64x128xf32>,
    return
  }
  func.func @transform_0(%arg0: i32) -> (i32, i32) {
    %c0_i32 = arith.constant 0 : i32
    %c0_i32_0 = arith.constant 0 : i32
    return %arg0, %c0_i32 : i32, i32
  }
  func.func @transform_1(%arg0: i32) -> (i32, i32) {
    %c0_i32 = arith.constant 0 : i32
    %c0_i32_0 = arith.constant 0 : i32
    %c0_i32_1 = arith.constant 0 : i32
    return %c0_i32, %c0_i32_0 : i32, i32
  }
  func.func @transform_2(%arg0: i32) -> (i32, i32) {
    %c0_i32 = arith.constant 0 : i32
    %c0_i32_0 = arith.constant 0 : i32
    %c0_i32_1 = arith.constant 0 : i32
    return %c0_i32, %c0_i32_0 : i32, i32
  }
  func.func @transform_3(%arg0: i32) -> (i32, i32) {
    %c0_i32 = arith.constant 0 : i32
    %c0_i32_0 = arith.constant 0 : i32
    return %arg0, %c0_i32 : i32, i32
  }
}

module attributes {stable_mosaic.version = 11 : i64} {
  func.func @_tblock_kernel(%arg0: i32, %arg1: memref<64x128xf32, #tpu.memory_space<vmem>>, %arg2: memref<2x64x64xbf16, #tpu.memory_space<vmem>>, %arg3: memref<3x128x128xbf16, #tpu.memory_space<vmem>>, %arg4: memref<1x128xf32, #tpu.memory_space<vmem>>, %arg5: memref<3x128x128xbf16, #tpu.memory_space<vmem>>, %arg6: memref<1x128xf32, #tpu.memory_space<vmem>>, %arg7: memref<64x128xf32, #tpu.memory_space<vmem>>) attributes {dimension_semantics = [#tpu.dimension_semantics<arbitrary>], iteration_bounds = array<i64: 1>, scalar_prefetch = 0 : i64, scratch_operands = 0 : i64, tpu.core_type = #tpu.core_type<tc>, window_params = [{pipeline_mode = #tpu.pipeline_mode<synchronous>, transform_indices = @transform_0, window_bounds = array<i64: 64, 128>}, {pipeline_mode = #tpu.pipeline_mode<synchronous>, transform_indices = @transform_1, window_bounds = array<i64: 2, 64, 64>}, {pipeline_mode = #tpu.pipeline_mode<synchronous>, transform_indices = @transform_2, window_bounds = array<i64: 3, 128, 128>}, {pipeline_mode = #tpu.pipeline_mode<synchronous>, transform_indices = @transform_3, window_bounds = array<i64: 1, 128>}, {pipeline_mode = #tpu.pipeline_mode<synchronous>, transform_indices = @transform_4, window_bounds = array<i64: 3, 128, 128>}, {pipeline_mode = #tpu.pipeline_mode<synchronous>, transform_indices = @transform_5, window_bounds = array<i64: 1, 128>}, {pipeline_mode = #tpu.pipeline_mode<synchronous>, transform_indices = @transform_6, window_bounds = array<i64: 64, 128>}]} {
    %c0 = arith.constant 0 : index
    %c0_0 = arith.constant 0 : index
    %0 = vector.load %arg1[%c0, %c0_0] : memref<64x128xf32, #tpu.memory_space<vmem>>, vector<64x128xf32>
    %1 = arith.truncf %0 : vector<64x128xf32> to vector<64x128xbf16>
    %c2 = arith.constant 2 : index
    %c0_1 = arith.constant 0 : index
    %c0_2 = arith.constant 0 : index
    %2 = vector.load %arg3[%c2, %c0_1, %c0_2] : memref<3x128x128xbf16, #tpu.memory_space<vmem>>, vector<1x128x128xbf16>
    %3 = vector.shape_cast %2 : vector<1x128x128xbf16> to vector<128x128xbf16>
    %cst = arith.constant dense<0.000000e+00> : vector<64x128xf32>
    %4 = tpu.matmul %1, %3, %cst {dimension_numbers = #tpu.dot_dimension_numbers<[1], [0], [0], [1], [0, 0, 1, 1], [], []>} : vector<64x128xbf16>, vector<128x128xbf16>, vector<64x128xf32> -> vector<64x128xf32>
    %c0_3 = arith.constant 0 : index
    %c0_4 = arith.constant 0 : index
    %c0_5 = arith.constant 0 : index
    %5 = vector.load %arg2[%c0_3, %c0_4, %c0_5] : memref<2x64x64xbf16, #tpu.memory_space<vmem>>, vector<1x64x64xbf16>
    %6 = vector.shape_cast %5 : vector<1x64x64xbf16> to vector<64x64xbf16>
    %cst_6 = arith.constant dense<0.000000e+00> : vector<64x128xf32>
    %7 = tpu.matmul %6, %1, %cst_6 {dimension_numbers = #tpu.dot_dimension_numbers<[1], [0], [0], [1], [0, 0, 1, 1], [], []>} : vector<64x64xbf16>, vector<64x128xbf16>, vector<64x128xf32> -> vector<64x128xf32>
    %8 = arith.truncf %7 : vector<64x128xf32> to vector<64x128xbf16>
    %c0_7 = arith.constant 0 : index
    %c0_8 = arith.constant 0 : index
    %c0_9 = arith.constant 0 : index
    %9 = vector.load %arg3[%c0_7, %c0_8, %c0_9] : memref<3x128x128xbf16, #tpu.memory_space<vmem>>, vector<1x128x128xbf16>
    %10 = vector.shape_cast %9 : vector<1x128x128xbf16> to vector<128x128xbf16>
    %cst_10 = arith.constant dense<0.000000e+00> : vector<64x128xf32>
    %11 = tpu.matmul %8, %10, %cst_10 {dimension_numbers = #tpu.dot_dimension_numbers<[1], [0], [0], [1], [0, 0, 1, 1], [], []>} : vector<64x128xbf16>, vector<128x128xbf16>, vector<64x128xf32> -> vector<64x128xf32>
    %12 = arith.addf %4, %11 : vector<64x128xf32>
    %c1 = arith.constant 1 : index
    %c0_11 = arith.constant 0 : index
    %c0_12 = arith.constant 0 : index
    %13 = vector.load %arg2[%c1, %c0_11, %c0_12] : memref<2x64x64xbf16, #tpu.memory_space<vmem>>, vector<1x64x64xbf16>
    %14 = vector.shape_cast %13 : vector<1x64x64xbf16> to vector<64x64xbf16>
    %cst_13 = arith.constant dense<0.000000e+00> : vector<64x128xf32>
    %15 = tpu.matmul %14, %1, %cst_13 {dimension_numbers = #tpu.dot_dimension_numbers<[1], [0], [0], [1], [0, 0, 1, 1], [], []>} : vector<64x64xbf16>, vector<64x128xbf16>, vector<64x128xf32> -> vector<64x128xf32>
    %16 = arith.truncf %15 : vector<64x128xf32> to vector<64x128xbf16>
    %c1_14 = arith.constant 1 : index
    %c0_15 = arith.constant 0 : index
    %c0_16 = arith.constant 0 : index
    %17 = vector.load %arg3[%c1_14, %c0_15, %c0_16] : memref<3x128x128xbf16, #tpu.memory_space<vmem>>, vector<1x128x128xbf16>
    %18 = vector.shape_cast %17 : vector<1x128x128xbf16> to vector<128x128xbf16>
    %cst_17 = arith.constant dense<0.000000e+00> : vector<64x128xf32>
    %19 = tpu.matmul %16, %18, %cst_17 {dimension_numbers = #tpu.dot_dimension_numbers<[1], [0], [0], [1], [0, 0, 1, 1], [], []>} : vector<64x128xbf16>, vector<128x128xbf16>, vector<64x128xf32> -> vector<64x128xf32>
    %20 = arith.addf %12, %19 : vector<64x128xf32>
    %c0_18 = arith.constant 0 : index
    %c0_19 = arith.constant 0 : index
    %21 = vector.load %arg4[%c0_18, %c0_19] : memref<1x128xf32, #tpu.memory_space<vmem>>, vector<1x128xf32>
    %22 = vector.broadcast %21 : vector<1x128xf32> to vector<64x128xf32>
    %23 = arith.addf %20, %22 : vector<64x128xf32>
    %cst_20 = arith.constant 0.000000e+00 : f32
    %24 = vector.broadcast %cst_20 : f32 to vector<64x128xf32>
    %25 = arith.maximumf %23, %24 : vector<64x128xf32>
    %26 = arith.truncf %25 : vector<64x128xf32> to vector<64x128xbf16>
    %c2_21 = arith.constant 2 : index
    %c0_22 = arith.constant 0 : index
    %c0_23 = arith.constant 0 : index
    %27 = vector.load %arg5[%c2_21, %c0_22, %c0_23] : memref<3x128x128xbf16, #tpu.memory_space<vmem>>, vector<1x128x128xbf16>
    %28 = vector.shape_cast %27 : vector<1x128x128xbf16> to vector<128x128xbf16>
    %cst_24 = arith.constant dense<0.000000e+00> : vector<64x128xf32>
    %29 = tpu.matmul %26, %28, %cst_24 {dimension_numbers = #tpu.dot_dimension_numbers<[1], [0], [0], [1], [0, 0, 1, 1], [], []>} : vector<64x128xbf16>, vector<128x128xbf16>, vector<64x128xf32> -> vector<64x128xf32>
    %c0_25 = arith.constant 0 : index
    %c0_26 = arith.constant 0 : index
    %c0_27 = arith.constant 0 : index
    %30 = vector.load %arg2[%c0_25, %c0_26, %c0_27] : memref<2x64x64xbf16, #tpu.memory_space<vmem>>, vector<1x64x64xbf16>
    %31 = vector.shape_cast %30 : vector<1x64x64xbf16> to vector<64x64xbf16>
    %cst_28 = arith.constant dense<0.000000e+00> : vector<64x128xf32>
    %32 = tpu.matmul %31, %26, %cst_28 {dimension_numbers = #tpu.dot_dimension_numbers<[1], [0], [0], [1], [0, 0, 1, 1], [], []>} : vector<64x64xbf16>, vector<64x128xbf16>, vector<64x128xf32> -> vector<64x128xf32>
    %33 = arith.truncf %32 : vector<64x128xf32> to vector<64x128xbf16>
    %c0_29 = arith.constant 0 : index
    %c0_30 = arith.constant 0 : index
    %c0_31 = arith.constant 0 : index
    %34 = vector.load %arg5[%c0_29, %c0_30, %c0_31] : memref<3x128x128xbf16, #tpu.memory_space<vmem>>, vector<1x128x128xbf16>
    %35 = vector.shape_cast %34 : vector<1x128x128xbf16> to vector<128x128xbf16>
    %cst_32 = arith.constant dense<0.000000e+00> : vector<64x128xf32>
    %36 = tpu.matmul %33, %35, %cst_32 {dimension_numbers = #tpu.dot_dimension_numbers<[1], [0], [0], [1], [0, 0, 1, 1], [], []>} : vector<64x128xbf16>, vector<128x128xbf16>, vector<64x128xf32> -> vector<64x128xf32>
    %37 = arith.addf %29, %36 : vector<64x128xf32>
    %c1_33 = arith.constant 1 : index
    %c0_34 = arith.constant 0 : index
    %c0_35 = arith.constant 0 : index
    %38 = vector.load %arg2[%c1_33, %c0_34, %c0_35] : memref<2x64x64xbf16, #tpu.memory_space<vmem>>, vector<1x64x64xbf16>
    %39 = vector.shape_cast %38 : vector<1x64x64xbf16> to vector<64x64xbf16>
    %cst_36 = arith.constant dense<0.000000e+00> : vector<64x128xf32>
    %40 = tpu.matmul %39, %26, %cst_36 {dimension_numbers = #tpu.dot_dimension_numbers<[1], [0], [0], [1], [0, 0, 1, 1], [], []>} : vector<64x64xbf16>, vector<64x128xbf16>, vector<64x128xf32> -> vector<64x128xf32>
    %41 = arith.truncf %40 : vector<64x128xf32> to vector<64x128xbf16>
    %c1_37 = arith.constant 1 : index
    %c0_38 = arith.constant 0 : index
    %c0_39 = arith.constant 0 : index
    %42 = vector.load %arg5[%c1_37, %c0_38, %c0_39] : memref<3x128x128xbf16, #tpu.memory_space<vmem>>, vector<1x128x128xbf16>
    %43 = vector.shape_cast %42 : vector<1x128x128xbf16> to vector<128x128xbf16>
    %cst_40 = arith.constant dense<0.000000e+00> : vector<64x128xf32>
    %44 = tpu.matmul %41, %43, %cst_40 {dimension_numbers = #tpu.dot_dimension_numbers<[1], [0], [0], [1], [0, 0, 1, 1], [], []>} : vector<64x128xbf16>, vector<128x128xbf16>, vector<64x128xf32> -> vector<64x128xf32>
    %45 = arith.addf %37, %44 : vector<64x128xf32>
    %c0_41 = arith.constant 0 : index
    %c0_42 = arith.constant 0 : index
    %46 = vector.load %arg6[%c0_41, %c0_42] : memref<1x128xf32, #tpu.memory_space<vmem>>, vector<1x128xf32>
    %47 = vector.broadcast %46 : vector<1x128xf32> to vector<64x128xf32>
    %48 = arith.addf %45, %47 : vector<64x128xf32>
    %cst_43 = arith.constant 0.000000e+00 : f32
    %49 = vector.broadcast %cst_43 : f32 to vector<64x128xf32>
    %50 = arith.maximumf %48, %49 : vector<64x128xf32>
    %c0_44 = arith.constant 0 : index
    %c0_45 = arith.constant 0 : index
    %51 = vector.load %arg1[%c0_44, %c0_45] : memref<64x128xf32, #tpu.memory_space<vmem>>, vector<64x128xf32>
    %52 = arith.addf %50, %51 : vector<64x128xf32>
    %cst_46 = arith.constant 0.000000e+00 : f32
    %53 = vector.broadcast %cst_46 : f32 to vector<64x128xf32>
    %54 = arith.maximumf %52, %53 : vector<64x128xf32>
    %c0_47 = arith.constant 0 : index
    %c0_48 = arith.constant 0 : index
    %55 = vector.load %arg7[%c0_47, %c0_48] : memref<64x128xf32, #tpu.memory_space<vmem>>, vector<64x128xf32>
    tpu.vector_store %arg7[%c0_47, %c0_48], %54 {strides = array<i32>} : memref<64x128xf32, #tpu.memory_space<vmem>>, vector<64x128xf32>,
    return
  }
  func.func @transform_0(%arg0: i32) -> (i32, i32) {
    %c0_i32 = arith.constant 0 : i32
    %c0_i32_0 = arith.constant 0 : i32
    %c0_i32_1 = arith.constant 0 : i32
    return %c0_i32, %c0_i32_0 : i32, i32
  }
  func.func @transform_1(%arg0: i32) -> (i32, i32, i32) {
    %c0_i32 = arith.constant 0 : i32
    %c0_i32_0 = arith.constant 0 : i32
    %c0_i32_1 = arith.constant 0 : i32
    %c0_i32_2 = arith.constant 0 : i32
    return %c0_i32, %c0_i32_0, %c0_i32_1 : i32, i32, i32
  }
  func.func @transform_2(%arg0: i32) -> (i32, i32, i32) {
    %c0_i32 = arith.constant 0 : i32
    %c0_i32_0 = arith.constant 0 : i32
    %c0_i32_1 = arith.constant 0 : i32
    %c0_i32_2 = arith.constant 0 : i32
    return %c0_i32, %c0_i32_0, %c0_i32_1 : i32, i32, i32
  }
  func.func @transform_3(%arg0: i32) -> (i32, i32) {
    %c0_i32 = arith.constant 0 : i32
    %c0_i32_0 = arith.constant 0 : i32
    %c0_i32_1 = arith.constant 0 : i32
    return %c0_i32, %c0_i32_0 : i32, i32
  }
  func.func @transform_4(%arg0: i32) -> (i32, i32, i32) {
    %c0_i32 = arith.constant 0 : i32
    %c0_i32_0 = arith.constant 0 : i32
    %c0_i32_1 = arith.constant 0 : i32
    %c0_i32_2 = arith.constant 0 : i32
    return %c0_i32, %c0_i32_0, %c0_i32_1 : i32, i32, i32
  }
  func.func @transform_5(%arg0: i32) -> (i32, i32) {
    %c0_i32 = arith.constant 0 : i32
    %c0_i32_0 = arith.constant 0 : i32
    %c0_i32_1 = arith.constant 0 : i32
    return %c0_i32, %c0_i32_0 : i32, i32
  }
  func.func @transform_6(%arg0: i32) -> (i32, i32) {
    %c0_i32 = arith.constant 0 : i32
    %c0_i32_0 = arith.constant 0 : i32
    %c0_i32_1 = arith.constant 0 : i32
    return %c0_i32, %c0_i32_0 : i32, i32
  }
}

module attributes {stable_mosaic.version = 11 : i64} {
  func.func @_tblock_down_kernel(%arg0: i32, %arg1: memref<64x128xf32, #tpu.memory_space<vmem>>, %arg2: memref<2x64x64xbf16, #tpu.memory_space<vmem>>, %arg3: memref<3x128x128xbf16, #tpu.memory_space<vmem>>, %arg4: memref<1x128xf32, #tpu.memory_space<vmem>>, %arg5: memref<3x128x128xbf16, #tpu.memory_space<vmem>>, %arg6: memref<1x128xf32, #tpu.memory_space<vmem>>, %arg7: memref<128x128xbf16, #tpu.memory_space<vmem>>, %arg8: memref<1x128xf32, #tpu.memory_space<vmem>>, %arg9: memref<64x128xf32, #tpu.memory_space<vmem>>) attributes {dimension_semantics = [#tpu.dimension_semantics<arbitrary>], iteration_bounds = array<i64: 1>, scalar_prefetch = 0 : i64, scratch_operands = 0 : i64, tpu.core_type = #tpu.core_type<tc>, window_params = [{pipeline_mode = #tpu.pipeline_mode<synchronous>, transform_indices = @transform_0, window_bounds = array<i64: 64, 128>}, {pipeline_mode = #tpu.pipeline_mode<synchronous>, transform_indices = @transform_1, window_bounds = array<i64: 2, 64, 64>}, {pipeline_mode = #tpu.pipeline_mode<synchronous>, transform_indices = @transform_2, window_bounds = array<i64: 3, 128, 128>}, {pipeline_mode = #tpu.pipeline_mode<synchronous>, transform_indices = @transform_3, window_bounds = array<i64: 1, 128>}, {pipeline_mode = #tpu.pipeline_mode<synchronous>, transform_indices = @transform_4, window_bounds = array<i64: 3, 128, 128>}, {pipeline_mode = #tpu.pipeline_mode<synchronous>, transform_indices = @transform_5, window_bounds = array<i64: 1, 128>}, {pipeline_mode = #tpu.pipeline_mode<synchronous>, transform_indices = @transform_6, window_bounds = array<i64: 128, 128>}, {pipeline_mode = #tpu.pipeline_mode<synchronous>, transform_indices = @transform_7, window_bounds = array<i64: 1, 128>}, {pipeline_mode = #tpu.pipeline_mode<synchronous>, transform_indices = @transform_8, window_bounds = array<i64: 64, 128>}]} {
    %c0 = arith.constant 0 : index
    %c0_0 = arith.constant 0 : index
    %0 = vector.load %arg1[%c0, %c0_0] : memref<64x128xf32, #tpu.memory_space<vmem>>, vector<64x128xf32>
    %1 = arith.truncf %0 : vector<64x128xf32> to vector<64x128xbf16>
    %c2 = arith.constant 2 : index
    %c0_1 = arith.constant 0 : index
    %c0_2 = arith.constant 0 : index
    %2 = vector.load %arg3[%c2, %c0_1, %c0_2] : memref<3x128x128xbf16, #tpu.memory_space<vmem>>, vector<1x128x128xbf16>
    %3 = vector.shape_cast %2 : vector<1x128x128xbf16> to vector<128x128xbf16>
    %cst = arith.constant dense<0.000000e+00> : vector<64x128xf32>
    %4 = tpu.matmul %1, %3, %cst {dimension_numbers = #tpu.dot_dimension_numbers<[1], [0], [0], [1], [0, 0, 1, 1], [], []>} : vector<64x128xbf16>, vector<128x128xbf16>, vector<64x128xf32> -> vector<64x128xf32>
    %c0_3 = arith.constant 0 : index
    %c0_4 = arith.constant 0 : index
    %c0_5 = arith.constant 0 : index
    %5 = vector.load %arg2[%c0_3, %c0_4, %c0_5] : memref<2x64x64xbf16, #tpu.memory_space<vmem>>, vector<1x64x64xbf16>
    %6 = vector.shape_cast %5 : vector<1x64x64xbf16> to vector<64x64xbf16>
    %cst_6 = arith.constant dense<0.000000e+00> : vector<64x128xf32>
    %7 = tpu.matmul %6, %1, %cst_6 {dimension_numbers = #tpu.dot_dimension_numbers<[1], [0], [0], [1], [0, 0, 1, 1], [], []>} : vector<64x64xbf16>, vector<64x128xbf16>, vector<64x128xf32> -> vector<64x128xf32>
    %8 = arith.truncf %7 : vector<64x128xf32> to vector<64x128xbf16>
    %c0_7 = arith.constant 0 : index
    %c0_8 = arith.constant 0 : index
    %c0_9 = arith.constant 0 : index
    %9 = vector.load %arg3[%c0_7, %c0_8, %c0_9] : memref<3x128x128xbf16, #tpu.memory_space<vmem>>, vector<1x128x128xbf16>
    %10 = vector.shape_cast %9 : vector<1x128x128xbf16> to vector<128x128xbf16>
    %cst_10 = arith.constant dense<0.000000e+00> : vector<64x128xf32>
    %11 = tpu.matmul %8, %10, %cst_10 {dimension_numbers = #tpu.dot_dimension_numbers<[1], [0], [0], [1], [0, 0, 1, 1], [], []>} : vector<64x128xbf16>, vector<128x128xbf16>, vector<64x128xf32> -> vector<64x128xf32>
    %12 = arith.addf %4, %11 : vector<64x128xf32>
    %c1 = arith.constant 1 : index
    %c0_11 = arith.constant 0 : index
    %c0_12 = arith.constant 0 : index
    %13 = vector.load %arg2[%c1, %c0_11, %c0_12] : memref<2x64x64xbf16, #tpu.memory_space<vmem>>, vector<1x64x64xbf16>
    %14 = vector.shape_cast %13 : vector<1x64x64xbf16> to vector<64x64xbf16>
    %cst_13 = arith.constant dense<0.000000e+00> : vector<64x128xf32>
    %15 = tpu.matmul %14, %1, %cst_13 {dimension_numbers = #tpu.dot_dimension_numbers<[1], [0], [0], [1], [0, 0, 1, 1], [], []>} : vector<64x64xbf16>, vector<64x128xbf16>, vector<64x128xf32> -> vector<64x128xf32>
    %16 = arith.truncf %15 : vector<64x128xf32> to vector<64x128xbf16>
    %c1_14 = arith.constant 1 : index
    %c0_15 = arith.constant 0 : index
    %c0_16 = arith.constant 0 : index
    %17 = vector.load %arg3[%c1_14, %c0_15, %c0_16] : memref<3x128x128xbf16, #tpu.memory_space<vmem>>, vector<1x128x128xbf16>
    %18 = vector.shape_cast %17 : vector<1x128x128xbf16> to vector<128x128xbf16>
    %cst_17 = arith.constant dense<0.000000e+00> : vector<64x128xf32>
    %19 = tpu.matmul %16, %18, %cst_17 {dimension_numbers = #tpu.dot_dimension_numbers<[1], [0], [0], [1], [0, 0, 1, 1], [], []>} : vector<64x128xbf16>, vector<128x128xbf16>, vector<64x128xf32> -> vector<64x128xf32>
    %20 = arith.addf %12, %19 : vector<64x128xf32>
    %c0_18 = arith.constant 0 : index
    %c0_19 = arith.constant 0 : index
    %21 = vector.load %arg4[%c0_18, %c0_19] : memref<1x128xf32, #tpu.memory_space<vmem>>, vector<1x128xf32>
    %22 = vector.broadcast %21 : vector<1x128xf32> to vector<64x128xf32>
    %23 = arith.addf %20, %22 : vector<64x128xf32>
    %cst_20 = arith.constant 0.000000e+00 : f32
    %24 = vector.broadcast %cst_20 : f32 to vector<64x128xf32>
    %25 = arith.maximumf %23, %24 : vector<64x128xf32>
    %26 = arith.truncf %25 : vector<64x128xf32> to vector<64x128xbf16>
    %c2_21 = arith.constant 2 : index
    %c0_22 = arith.constant 0 : index
    %c0_23 = arith.constant 0 : index
    %27 = vector.load %arg5[%c2_21, %c0_22, %c0_23] : memref<3x128x128xbf16, #tpu.memory_space<vmem>>, vector<1x128x128xbf16>
    %28 = vector.shape_cast %27 : vector<1x128x128xbf16> to vector<128x128xbf16>
    %cst_24 = arith.constant dense<0.000000e+00> : vector<64x128xf32>
    %29 = tpu.matmul %26, %28, %cst_24 {dimension_numbers = #tpu.dot_dimension_numbers<[1], [0], [0], [1], [0, 0, 1, 1], [], []>} : vector<64x128xbf16>, vector<128x128xbf16>, vector<64x128xf32> -> vector<64x128xf32>
    %c0_25 = arith.constant 0 : index
    %c0_26 = arith.constant 0 : index
    %c0_27 = arith.constant 0 : index
    %30 = vector.load %arg2[%c0_25, %c0_26, %c0_27] : memref<2x64x64xbf16, #tpu.memory_space<vmem>>, vector<1x64x64xbf16>
    %31 = vector.shape_cast %30 : vector<1x64x64xbf16> to vector<64x64xbf16>
    %cst_28 = arith.constant dense<0.000000e+00> : vector<64x128xf32>
    %32 = tpu.matmul %31, %26, %cst_28 {dimension_numbers = #tpu.dot_dimension_numbers<[1], [0], [0], [1], [0, 0, 1, 1], [], []>} : vector<64x64xbf16>, vector<64x128xbf16>, vector<64x128xf32> -> vector<64x128xf32>
    %33 = arith.truncf %32 : vector<64x128xf32> to vector<64x128xbf16>
    %c0_29 = arith.constant 0 : index
    %c0_30 = arith.constant 0 : index
    %c0_31 = arith.constant 0 : index
    %34 = vector.load %arg5[%c0_29, %c0_30, %c0_31] : memref<3x128x128xbf16, #tpu.memory_space<vmem>>, vector<1x128x128xbf16>
    %35 = vector.shape_cast %34 : vector<1x128x128xbf16> to vector<128x128xbf16>
    %cst_32 = arith.constant dense<0.000000e+00> : vector<64x128xf32>
    %36 = tpu.matmul %33, %35, %cst_32 {dimension_numbers = #tpu.dot_dimension_numbers<[1], [0], [0], [1], [0, 0, 1, 1], [], []>} : vector<64x128xbf16>, vector<128x128xbf16>, vector<64x128xf32> -> vector<64x128xf32>
    %37 = arith.addf %29, %36 : vector<64x128xf32>
    %c1_33 = arith.constant 1 : index
    %c0_34 = arith.constant 0 : index
    %c0_35 = arith.constant 0 : index
    %38 = vector.load %arg2[%c1_33, %c0_34, %c0_35] : memref<2x64x64xbf16, #tpu.memory_space<vmem>>, vector<1x64x64xbf16>
    %39 = vector.shape_cast %38 : vector<1x64x64xbf16> to vector<64x64xbf16>
    %cst_36 = arith.constant dense<0.000000e+00> : vector<64x128xf32>
    %40 = tpu.matmul %39, %26, %cst_36 {dimension_numbers = #tpu.dot_dimension_numbers<[1], [0], [0], [1], [0, 0, 1, 1], [], []>} : vector<64x64xbf16>, vector<64x128xbf16>, vector<64x128xf32> -> vector<64x128xf32>
    %41 = arith.truncf %40 : vector<64x128xf32> to vector<64x128xbf16>
    %c1_37 = arith.constant 1 : index
    %c0_38 = arith.constant 0 : index
    %c0_39 = arith.constant 0 : index
    %42 = vector.load %arg5[%c1_37, %c0_38, %c0_39] : memref<3x128x128xbf16, #tpu.memory_space<vmem>>, vector<1x128x128xbf16>
    %43 = vector.shape_cast %42 : vector<1x128x128xbf16> to vector<128x128xbf16>
    %cst_40 = arith.constant dense<0.000000e+00> : vector<64x128xf32>
    %44 = tpu.matmul %41, %43, %cst_40 {dimension_numbers = #tpu.dot_dimension_numbers<[1], [0], [0], [1], [0, 0, 1, 1], [], []>} : vector<64x128xbf16>, vector<128x128xbf16>, vector<64x128xf32> -> vector<64x128xf32>
    %45 = arith.addf %37, %44 : vector<64x128xf32>
    %c0_41 = arith.constant 0 : index
    %c0_42 = arith.constant 0 : index
    %46 = vector.load %arg6[%c0_41, %c0_42] : memref<1x128xf32, #tpu.memory_space<vmem>>, vector<1x128xf32>
    %47 = vector.broadcast %46 : vector<1x128xf32> to vector<64x128xf32>
    %48 = arith.addf %45, %47 : vector<64x128xf32>
    %cst_43 = arith.constant 0.000000e+00 : f32
    %49 = vector.broadcast %cst_43 : f32 to vector<64x128xf32>
    %50 = arith.maximumf %48, %49 : vector<64x128xf32>
    %c0_44 = arith.constant 0 : index
    %c0_45 = arith.constant 0 : index
    %51 = vector.load %arg7[%c0_44, %c0_45] : memref<128x128xbf16, #tpu.memory_space<vmem>>, vector<128x128xbf16>
    %cst_46 = arith.constant dense<0.000000e+00> : vector<64x128xf32>
    %52 = tpu.matmul %1, %51, %cst_46 {dimension_numbers = #tpu.dot_dimension_numbers<[1], [0], [0], [1], [0, 0, 1, 1], [], []>} : vector<64x128xbf16>, vector<128x128xbf16>, vector<64x128xf32> -> vector<64x128xf32>
    %c0_47 = arith.constant 0 : index
    %c0_48 = arith.constant 0 : index
    %53 = vector.load %arg8[%c0_47, %c0_48] : memref<1x128xf32, #tpu.memory_space<vmem>>, vector<1x128xf32>
    %54 = vector.broadcast %53 : vector<1x128xf32> to vector<64x128xf32>
    %55 = arith.addf %52, %54 : vector<64x128xf32>
    %56 = arith.addf %50, %55 : vector<64x128xf32>
    %cst_49 = arith.constant 0.000000e+00 : f32
    %57 = vector.broadcast %cst_49 : f32 to vector<64x128xf32>
    %58 = arith.maximumf %56, %57 : vector<64x128xf32>
    %c0_50 = arith.constant 0 : index
    %c0_51 = arith.constant 0 : index
    %59 = vector.load %arg9[%c0_50, %c0_51] : memref<64x128xf32, #tpu.memory_space<vmem>>, vector<64x128xf32>
    tpu.vector_store %arg9[%c0_50, %c0_51], %58 {strides = array<i32>} : memref<64x128xf32, #tpu.memory_space<vmem>>, vector<64x128xf32>,
    return
  }
  func.func @transform_0(%arg0: i32) -> (i32, i32) {
    %c0_i32 = arith.constant 0 : i32
    %c0_i32_0 = arith.constant 0 : i32
    %c0_i32_1 = arith.constant 0 : i32
    return %c0_i32, %c0_i32_0 : i32, i32
  }
  func.func @transform_1(%arg0: i32) -> (i32, i32, i32) {
    %c0_i32 = arith.constant 0 : i32
    %c0_i32_0 = arith.constant 0 : i32
    %c0_i32_1 = arith.constant 0 : i32
    %c0_i32_2 = arith.constant 0 : i32
    return %c0_i32, %c0_i32_0, %c0_i32_1 : i32, i32, i32
  }
  func.func @transform_2(%arg0: i32) -> (i32, i32, i32) {
    %c0_i32 = arith.constant 0 : i32
    %c0_i32_0 = arith.constant 0 : i32
    %c0_i32_1 = arith.constant 0 : i32
    %c0_i32_2 = arith.constant 0 : i32
    return %c0_i32, %c0_i32_0, %c0_i32_1 : i32, i32, i32
  }
  func.func @transform_3(%arg0: i32) -> (i32, i32) {
    %c0_i32 = arith.constant 0 : i32
    %c0_i32_0 = arith.constant 0 : i32
    %c0_i32_1 = arith.constant 0 : i32
    return %c0_i32, %c0_i32_0 : i32, i32
  }
  func.func @transform_4(%arg0: i32) -> (i32, i32, i32) {
    %c0_i32 = arith.constant 0 : i32
    %c0_i32_0 = arith.constant 0 : i32
    %c0_i32_1 = arith.constant 0 : i32
    %c0_i32_2 = arith.constant 0 : i32
    return %c0_i32, %c0_i32_0, %c0_i32_1 : i32, i32, i32
  }
  func.func @transform_5(%arg0: i32) -> (i32, i32) {
    %c0_i32 = arith.constant 0 : i32
    %c0_i32_0 = arith.constant 0 : i32
    %c0_i32_1 = arith.constant 0 : i32
    return %c0_i32, %c0_i32_0 : i32, i32
  }
  func.func @transform_6(%arg0: i32) -> (i32, i32) {
    %c0_i32 = arith.constant 0 : i32
    %c0_i32_0 = arith.constant 0 : i32
    %c0_i32_1 = arith.constant 0 : i32
    return %c0_i32, %c0_i32_0 : i32, i32
  }
  func.func @transform_7(%arg0: i32) -> (i32, i32) {
    %c0_i32 = arith.constant 0 : i32
    %c0_i32_0 = arith.constant 0 : i32
    %c0_i32_1 = arith.constant 0 : i32
    return %c0_i32, %c0_i32_0 : i32, i32
  }
  func.func @transform_8(%arg0: i32) -> (i32, i32) {
    %c0_i32 = arith.constant 0 : i32
    %c0_i32_0 = arith.constant 0 : i32
    %c0_i32_1 = arith.constant 0 : i32
    return %c0_i32, %c0_i32_0 : i32, i32
  }
}

module attributes {stable_mosaic.version = 11 : i64} {
  func.func @_linear_kernel(%arg0: i32, %arg1: memref<8x128xf32, #tpu.memory_space<vmem>>, %arg2: memref<128x128xbf16, #tpu.memory_space<vmem>>, %arg3: memref<1x128xf32, #tpu.memory_space<vmem>>, %arg4: memref<8x128xf32, #tpu.memory_space<vmem>>) attributes {dimension_semantics = [#tpu.dimension_semantics<parallel>], iteration_bounds = array<i64: 1>, scalar_prefetch = 0 : i64, scratch_operands = 0 : i64, tpu.core_type = #tpu.core_type<tc>, window_params = [{transform_indices = @transform_0, window_bounds = array<i64: 8, 128>}, {pipeline_mode = #tpu.pipeline_mode<synchronous>, transform_indices = @transform_1, window_bounds = array<i64: 128, 128>}, {pipeline_mode = #tpu.pipeline_mode<synchronous>, transform_indices = @transform_2, window_bounds = array<i64: 1, 128>}, {transform_indices = @transform_3, window_bounds = array<i64: 8, 128>}]} {
    %c0 = arith.constant 0 : index
    %c0_0 = arith.constant 0 : index
    %0 = vector.load %arg1[%c0, %c0_0] : memref<8x128xf32, #tpu.memory_space<vmem>>, vector<8x128xf32>
    %1 = arith.truncf %0 : vector<8x128xf32> to vector<8x128xbf16>
    %c0_1 = arith.constant 0 : index
    %c0_2 = arith.constant 0 : index
    %2 = vector.load %arg2[%c0_1, %c0_2] : memref<128x128xbf16, #tpu.memory_space<vmem>>, vector<128x128xbf16>
    %cst = arith.constant dense<0.000000e+00> : vector<8x128xf32>
    %3 = tpu.matmul %1, %2, %cst {dimension_numbers = #tpu.dot_dimension_numbers<[1], [0], [0], [1], [0, 0, 1, 1], [], []>} : vector<8x128xbf16>, vector<128x128xbf16>, vector<8x128xf32> -> vector<8x128xf32>
    %c0_3 = arith.constant 0 : index
    %c0_4 = arith.constant 0 : index
    %4 = vector.load %arg3[%c0_3, %c0_4] : memref<1x128xf32, #tpu.memory_space<vmem>>, vector<1x128xf32>
    %5 = vector.broadcast %4 : vector<1x128xf32> to vector<8x128xf32>
    %6 = arith.addf %3, %5 : vector<8x128xf32>
    %c0_5 = arith.constant 0 : index
    %c0_6 = arith.constant 0 : index
    %7 = vector.load %arg4[%c0_5, %c0_6] : memref<8x128xf32, #tpu.memory_space<vmem>>, vector<8x128xf32>
    tpu.vector_store %arg4[%c0_5, %c0_6], %6 {strides = array<i32>} : memref<8x128xf32, #tpu.memory_space<vmem>>, vector<8x128xf32>,
    return
  }
  func.func @transform_0(%arg0: i32) -> (i32, i32) {
    %c0_i32 = arith.constant 0 : i32
    %c0_i32_0 = arith.constant 0 : i32
    return %arg0, %c0_i32 : i32, i32
  }
  func.func @transform_1(%arg0: i32) -> (i32, i32) {
    %c0_i32 = arith.constant 0 : i32
    %c0_i32_0 = arith.constant 0 : i32
    %c0_i32_1 = arith.constant 0 : i32
    return %c0_i32, %c0_i32_0 : i32, i32
  }
  func.func @transform_2(%arg0: i32) -> (i32, i32) {
    %c0_i32 = arith.constant 0 : i32
    %c0_i32_0 = arith.constant 0 : i32
    %c0_i32_1 = arith.constant 0 : i32
    return %c0_i32, %c0_i32_0 : i32, i32
  }
  func.func @transform_3(%arg0: i32) -> (i32, i32) {
    %c0_i32 = arith.constant 0 : i32
    %c0_i32_0 = arith.constant 0 : i32
    return %arg0, %c0_i32 : i32, i32
  }
}

module attributes {stable_mosaic.version = 11 : i64} {
  func.func @_mlp_kernel(%arg0: i32, %arg1: memref<8x128xf32, #tpu.memory_space<vmem>>, %arg2: memref<128x128xbf16, #tpu.memory_space<vmem>>, %arg3: memref<1x128xf32, #tpu.memory_space<vmem>>, %arg4: memref<128x128xbf16, #tpu.memory_space<vmem>>, %arg5: memref<1x128xf32, #tpu.memory_space<vmem>>, %arg6: memref<8x128xf32, #tpu.memory_space<vmem>>) attributes {dimension_semantics = [#tpu.dimension_semantics<arbitrary>], iteration_bounds = array<i64: 1>, scalar_prefetch = 0 : i64, scratch_operands = 0 : i64, tpu.core_type = #tpu.core_type<tc>, window_params = [{pipeline_mode = #tpu.pipeline_mode<synchronous>, transform_indices = @transform_0, window_bounds = array<i64: 8, 128>}, {pipeline_mode = #tpu.pipeline_mode<synchronous>, transform_indices = @transform_1, window_bounds = array<i64: 128, 128>}, {pipeline_mode = #tpu.pipeline_mode<synchronous>, transform_indices = @transform_2, window_bounds = array<i64: 1, 128>}, {pipeline_mode = #tpu.pipeline_mode<synchronous>, transform_indices = @transform_3, window_bounds = array<i64: 128, 128>}, {pipeline_mode = #tpu.pipeline_mode<synchronous>, transform_indices = @transform_4, window_bounds = array<i64: 1, 128>}, {pipeline_mode = #tpu.pipeline_mode<synchronous>, transform_indices = @transform_5, window_bounds = array<i64: 8, 128>}]} {
    %c0 = arith.constant 0 : index
    %c0_0 = arith.constant 0 : index
    %0 = vector.load %arg1[%c0, %c0_0] : memref<8x128xf32, #tpu.memory_space<vmem>>, vector<8x128xf32>
    %1 = arith.truncf %0 : vector<8x128xf32> to vector<8x128xbf16>
    %c0_1 = arith.constant 0 : index
    %c0_2 = arith.constant 0 : index
    %2 = vector.load %arg2[%c0_1, %c0_2] : memref<128x128xbf16, #tpu.memory_space<vmem>>, vector<128x128xbf16>
    %cst = arith.constant dense<0.000000e+00> : vector<8x128xf32>
    %3 = tpu.matmul %1, %2, %cst {dimension_numbers = #tpu.dot_dimension_numbers<[1], [0], [0], [1], [0, 0, 1, 1], [], []>} : vector<8x128xbf16>, vector<128x128xbf16>, vector<8x128xf32> -> vector<8x128xf32>
    %c0_3 = arith.constant 0 : index
    %c0_4 = arith.constant 0 : index
    %4 = vector.load %arg3[%c0_3, %c0_4] : memref<1x128xf32, #tpu.memory_space<vmem>>, vector<1x128xf32>
    %5 = vector.broadcast %4 : vector<1x128xf32> to vector<8x128xf32>
    %6 = arith.addf %3, %5 : vector<8x128xf32>
    %cst_5 = arith.constant 0.000000e+00 : f32
    %7 = vector.broadcast %cst_5 : f32 to vector<8x128xf32>
    %8 = arith.maximumf %6, %7 : vector<8x128xf32>
    %9 = arith.truncf %8 : vector<8x128xf32> to vector<8x128xbf16>
    %c0_6 = arith.constant 0 : index
    %c0_7 = arith.constant 0 : index
    %10 = vector.load %arg4[%c0_6, %c0_7] : memref<128x128xbf16, #tpu.memory_space<vmem>>, vector<128x128xbf16>
    %cst_8 = arith.constant dense<0.000000e+00> : vector<8x128xf32>
    %11 = tpu.matmul %9, %10, %cst_8 {dimension_numbers = #tpu.dot_dimension_numbers<[1], [0], [0], [1], [0, 0, 1, 1], [], []>} : vector<8x128xbf16>, vector<128x128xbf16>, vector<8x128xf32> -> vector<8x128xf32>
    %c0_9 = arith.constant 0 : index
    %c0_10 = arith.constant 0 : index
    %12 = vector.load %arg5[%c0_9, %c0_10] : memref<1x128xf32, #tpu.memory_space<vmem>>, vector<1x128xf32>
    %13 = vector.broadcast %12 : vector<1x128xf32> to vector<8x128xf32>
    %14 = arith.addf %11, %13 : vector<8x128xf32>
    %c0_11 = arith.constant 0 : index
    %c0_12 = arith.constant 0 : index
    %15 = vector.load %arg6[%c0_11, %c0_12] : memref<8x128xf32, #tpu.memory_space<vmem>>, vector<8x128xf32>
    tpu.vector_store %arg6[%c0_11, %c0_12], %14 {strides = array<i32>} : memref<8x128xf32, #tpu.memory_space<vmem>>, vector<8x128xf32>,
    return
  }
  func.func @transform_0(%arg0: i32) -> (i32, i32) {
    %c0_i32 = arith.constant 0 : i32
    %c0_i32_0 = arith.constant 0 : i32
    %c0_i32_1 = arith.constant 0 : i32
    return %c0_i32, %c0_i32_0 : i32, i32
  }
  func.func @transform_1(%arg0: i32) -> (i32, i32) {
    %c0_i32 = arith.constant 0 : i32
    %c0_i32_0 = arith.constant 0 : i32
    %c0_i32_1 = arith.constant 0 : i32
    return %c0_i32, %c0_i32_0 : i32, i32
  }
  func.func @transform_2(%arg0: i32) -> (i32, i32) {
    %c0_i32 = arith.constant 0 : i32
    %c0_i32_0 = arith.constant 0 : i32
    %c0_i32_1 = arith.constant 0 : i32
    return %c0_i32, %c0_i32_0 : i32, i32
  }
  func.func @transform_3(%arg0: i32) -> (i32, i32) {
    %c0_i32 = arith.constant 0 : i32
    %c0_i32_0 = arith.constant 0 : i32
    %c0_i32_1 = arith.constant 0 : i32
    return %c0_i32, %c0_i32_0 : i32, i32
  }
  func.func @transform_4(%arg0: i32) -> (i32, i32) {
    %c0_i32 = arith.constant 0 : i32
    %c0_i32_0 = arith.constant 0 : i32
    %c0_i32_1 = arith.constant 0 : i32
    return %c0_i32, %c0_i32_0 : i32, i32
  }
  func.func @transform_5(%arg0: i32) -> (i32, i32) {
    %c0_i32 = arith.constant 0 : i32
    %c0_i32_0 = arith.constant 0 : i32
    %c0_i32_1 = arith.constant 0 : i32
    return %c0_i32, %c0_i32_0 : i32, i32
  }
}

module attributes {stable_mosaic.version = 11 : i64} {
  func.func @_linear_kernel(%arg0: i32, %arg1: memref<2x256xf32, #tpu.memory_space<vmem>>, %arg2: memref<256x128xbf16, #tpu.memory_space<vmem>>, %arg3: memref<1x128xf32, #tpu.memory_space<vmem>>, %arg4: memref<2x128xf32, #tpu.memory_space<vmem>>) attributes {dimension_semantics = [#tpu.dimension_semantics<parallel>], iteration_bounds = array<i64: 1>, scalar_prefetch = 0 : i64, scratch_operands = 0 : i64, tpu.core_type = #tpu.core_type<tc>, window_params = [{transform_indices = @transform_0, window_bounds = array<i64: 2, 256>}, {pipeline_mode = #tpu.pipeline_mode<synchronous>, transform_indices = @transform_1, window_bounds = array<i64: 256, 128>}, {pipeline_mode = #tpu.pipeline_mode<synchronous>, transform_indices = @transform_2, window_bounds = array<i64: 1, 128>}, {transform_indices = @transform_3, window_bounds = array<i64: 2, 128>}]} {
    %c0 = arith.constant 0 : index
    %c0_0 = arith.constant 0 : index
    %0 = vector.load %arg1[%c0, %c0_0] : memref<2x256xf32, #tpu.memory_space<vmem>>, vector<2x256xf32>
    %1 = arith.truncf %0 : vector<2x256xf32> to vector<2x256xbf16>
    %c0_1 = arith.constant 0 : index
    %c0_2 = arith.constant 0 : index
    %2 = vector.load %arg2[%c0_1, %c0_2] : memref<256x128xbf16, #tpu.memory_space<vmem>>, vector<256x128xbf16>
    %cst = arith.constant dense<0.000000e+00> : vector<2x128xf32>
    %3 = tpu.matmul %1, %2, %cst {dimension_numbers = #tpu.dot_dimension_numbers<[1], [0], [0], [1], [0, 0, 1, 1], [], []>} : vector<2x256xbf16>, vector<256x128xbf16>, vector<2x128xf32> -> vector<2x128xf32>
    %c0_3 = arith.constant 0 : index
    %c0_4 = arith.constant 0 : index
    %4 = vector.load %arg3[%c0_3, %c0_4] : memref<1x128xf32, #tpu.memory_space<vmem>>, vector<1x128xf32>
    %5 = vector.broadcast %4 : vector<1x128xf32> to vector<2x128xf32>
    %6 = arith.addf %3, %5 : vector<2x128xf32>
    %c0_5 = arith.constant 0 : index
    %c0_6 = arith.constant 0 : index
    %7 = vector.load %arg4[%c0_5, %c0_6] : memref<2x128xf32, #tpu.memory_space<vmem>>, vector<2x128xf32>
    tpu.vector_store %arg4[%c0_5, %c0_6], %6 {strides = array<i32>} : memref<2x128xf32, #tpu.memory_space<vmem>>, vector<2x128xf32>,
    return
  }
  func.func @transform_0(%arg0: i32) -> (i32, i32) {
    %c0_i32 = arith.constant 0 : i32
    %c0_i32_0 = arith.constant 0 : i32
    return %arg0, %c0_i32 : i32, i32
  }
  func.func @transform_1(%arg0: i32) -> (i32, i32) {
    %c0_i32 = arith.constant 0 : i32
    %c0_i32_0 = arith.constant 0 : i32
    %c0_i32_1 = arith.constant 0 : i32
    return %c0_i32, %c0_i32_0 : i32, i32
  }
  func.func @transform_2(%arg0: i32) -> (i32, i32) {
    %c0_i32 = arith.constant 0 : i32
    %c0_i32_0 = arith.constant 0 : i32
    %c0_i32_1 = arith.constant 0 : i32
    return %c0_i32, %c0_i32_0 : i32, i32
  }
  func.func @transform_3(%arg0: i32) -> (i32, i32) {
    %c0_i32 = arith.constant 0 : i32
    %c0_i32_0 = arith.constant 0 : i32
    return %arg0, %c0_i32 : i32, i32
  }
}

module attributes {stable_mosaic.version = 11 : i64} {
  func.func @_experts_kernel(%arg0: i32, %arg1: memref<10x128xf32, #tpu.memory_space<vmem>>, %arg2: memref<1x128x128xbf16, #tpu.memory_space<vmem>>, %arg3: memref<1x1x128xf32, #tpu.memory_space<vmem>>, %arg4: memref<1x128x128xbf16, #tpu.memory_space<vmem>>, %arg5: memref<1x1x128xf32, #tpu.memory_space<vmem>>, %arg6: memref<10x128xf32, #tpu.memory_space<vmem>>) attributes {dimension_semantics = [#tpu.dimension_semantics<parallel>], iteration_bounds = array<i64: 4>, scalar_prefetch = 0 : i64, scratch_operands = 0 : i64, tpu.core_type = #tpu.core_type<tc>, window_params = [{pipeline_mode = #tpu.pipeline_mode<synchronous>, transform_indices = @transform_0, window_bounds = array<i64: 10, 128>}, {transform_indices = @transform_1, window_bounds = array<i64: 1, 128, 128>}, {transform_indices = @transform_2, window_bounds = array<i64: 1, 1, 128>}, {transform_indices = @transform_3, window_bounds = array<i64: 1, 128, 128>}, {transform_indices = @transform_4, window_bounds = array<i64: 1, 1, 128>}, {transform_indices = @transform_5, window_bounds = array<i64: 10, 128>}]} {
    %c0 = arith.constant 0 : index
    %c0_0 = arith.constant 0 : index
    %0 = vector.load %arg1[%c0, %c0_0] : memref<10x128xf32, #tpu.memory_space<vmem>>, vector<10x128xf32>
    %1 = arith.truncf %0 : vector<10x128xf32> to vector<10x128xbf16>
    %c0_1 = arith.constant 0 : index
    %c0_2 = arith.constant 0 : index
    %c0_3 = arith.constant 0 : index
    %2 = vector.load %arg2[%c0_1, %c0_2, %c0_3] : memref<1x128x128xbf16, #tpu.memory_space<vmem>>, vector<1x128x128xbf16>
    %3 = vector.shape_cast %2 : vector<1x128x128xbf16> to vector<128x128xbf16>
    %cst = arith.constant dense<0.000000e+00> : vector<10x128xf32>
    %4 = tpu.matmul %1, %3, %cst {dimension_numbers = #tpu.dot_dimension_numbers<[1], [0], [0], [1], [0, 0, 1, 1], [], []>} : vector<10x128xbf16>, vector<128x128xbf16>, vector<10x128xf32> -> vector<10x128xf32>
    %c0_4 = arith.constant 0 : index
    %c0_5 = arith.constant 0 : index
    %c0_6 = arith.constant 0 : index
    %5 = vector.load %arg3[%c0_4, %c0_5, %c0_6] : memref<1x1x128xf32, #tpu.memory_space<vmem>>, vector<1x1x128xf32>
    %6 = vector.shape_cast %5 : vector<1x1x128xf32> to vector<1x128xf32>
    %7 = vector.broadcast %6 : vector<1x128xf32> to vector<10x128xf32>
    %8 = arith.addf %4, %7 : vector<10x128xf32>
    %cst_7 = arith.constant 0.000000e+00 : f32
    %9 = vector.broadcast %cst_7 : f32 to vector<10x128xf32>
    %10 = arith.maximumf %8, %9 : vector<10x128xf32>
    %11 = arith.truncf %10 : vector<10x128xf32> to vector<10x128xbf16>
    %c0_8 = arith.constant 0 : index
    %c0_9 = arith.constant 0 : index
    %c0_10 = arith.constant 0 : index
    %12 = vector.load %arg4[%c0_8, %c0_9, %c0_10] : memref<1x128x128xbf16, #tpu.memory_space<vmem>>, vector<1x128x128xbf16>
    %13 = vector.shape_cast %12 : vector<1x128x128xbf16> to vector<128x128xbf16>
    %cst_11 = arith.constant dense<0.000000e+00> : vector<10x128xf32>
    %14 = tpu.matmul %11, %13, %cst_11 {dimension_numbers = #tpu.dot_dimension_numbers<[1], [0], [0], [1], [0, 0, 1, 1], [], []>} : vector<10x128xbf16>, vector<128x128xbf16>, vector<10x128xf32> -> vector<10x128xf32>
    %c0_12 = arith.constant 0 : index
    %c0_13 = arith.constant 0 : index
    %c0_14 = arith.constant 0 : index
    %15 = vector.load %arg5[%c0_12, %c0_13, %c0_14] : memref<1x1x128xf32, #tpu.memory_space<vmem>>, vector<1x1x128xf32>
    %16 = vector.shape_cast %15 : vector<1x1x128xf32> to vector<1x128xf32>
    %17 = vector.broadcast %16 : vector<1x128xf32> to vector<10x128xf32>
    %18 = arith.addf %14, %17 : vector<10x128xf32>
    %c0_15 = arith.constant 0 : index
    %c0_16 = arith.constant 0 : index
    %19 = vector.load %arg6[%c0_15, %c0_16] : memref<10x128xf32, #tpu.memory_space<vmem>>, vector<10x128xf32>
    tpu.vector_store %arg6[%c0_15, %c0_16], %18 {strides = array<i32>} : memref<10x128xf32, #tpu.memory_space<vmem>>, vector<10x128xf32>,
    return
  }
  func.func @transform_0(%arg0: i32) -> (i32, i32) {
    %c0_i32 = arith.constant 0 : i32
    %c0_i32_0 = arith.constant 0 : i32
    %c0_i32_1 = arith.constant 0 : i32
    return %c0_i32, %c0_i32_0 : i32, i32
  }
  func.func @transform_1(%arg0: i32) -> (i32, i32, i32) {
    %c0_i32 = arith.constant 0 : i32
    %c0_i32_0 = arith.constant 0 : i32
    %c0_i32_1 = arith.constant 0 : i32
    return %arg0, %c0_i32, %c0_i32_0 : i32, i32, i32
  }
  func.func @transform_2(%arg0: i32) -> (i32, i32, i32) {
    %c0_i32 = arith.constant 0 : i32
    %c0_i32_0 = arith.constant 0 : i32
    %c0_i32_1 = arith.constant 0 : i32
    return %arg0, %c0_i32, %c0_i32_0 : i32, i32, i32
  }
  func.func @transform_3(%arg0: i32) -> (i32, i32, i32) {
    %c0_i32 = arith.constant 0 : i32
    %c0_i32_0 = arith.constant 0 : i32
    %c0_i32_1 = arith.constant 0 : i32
    return %arg0, %c0_i32, %c0_i32_0 : i32, i32, i32
  }
  func.func @transform_4(%arg0: i32) -> (i32, i32, i32) {
    %c0_i32 = arith.constant 0 : i32
    %c0_i32_0 = arith.constant 0 : i32
    %c0_i32_1 = arith.constant 0 : i32
    return %arg0, %c0_i32, %c0_i32_0 : i32, i32, i32
  }
  func.func @transform_5(%arg0: i32) -> (i32, i32) {
    %c0_i32 = arith.constant 0 : i32
    %c0_i32_0 = arith.constant 0 : i32
    return %c0_i32, %arg0 : i32, i32
  }
}

module attributes {stable_mosaic.version = 11 : i64} {
  func.func @_linear_kernel(%arg0: i32, %arg1: memref<2x128xf32, #tpu.memory_space<vmem>>, %arg2: memref<128x128xbf16, #tpu.memory_space<vmem>>, %arg3: memref<1x128xf32, #tpu.memory_space<vmem>>, %arg4: memref<2x128xf32, #tpu.memory_space<vmem>>) attributes {dimension_semantics = [#tpu.dimension_semantics<parallel>], iteration_bounds = array<i64: 1>, scalar_prefetch = 0 : i64, scratch_operands = 0 : i64, tpu.core_type = #tpu.core_type<tc>, window_params = [{transform_indices = @transform_0, window_bounds = array<i64: 2, 128>}, {pipeline_mode = #tpu.pipeline_mode<synchronous>, transform_indices = @transform_1, window_bounds = array<i64: 128, 128>}, {pipeline_mode = #tpu.pipeline_mode<synchronous>, transform_indices = @transform_2, window_bounds = array<i64: 1, 128>}, {transform_indices = @transform_3, window_bounds = array<i64: 2, 128>}]} {
    %c0 = arith.constant 0 : index
    %c0_0 = arith.constant 0 : index
    %0 = vector.load %arg1[%c0, %c0_0] : memref<2x128xf32, #tpu.memory_space<vmem>>, vector<2x128xf32>
    %1 = arith.truncf %0 : vector<2x128xf32> to vector<2x128xbf16>
    %c0_1 = arith.constant 0 : index
    %c0_2 = arith.constant 0 : index
    %2 = vector.load %arg2[%c0_1, %c0_2] : memref<128x128xbf16, #tpu.memory_space<vmem>>, vector<128x128xbf16>
    %cst = arith.constant dense<0.000000e+00> : vector<2x128xf32>
    %3 = tpu.matmul %1, %2, %cst {dimension_numbers = #tpu.dot_dimension_numbers<[1], [0], [0], [1], [0, 0, 1, 1], [], []>} : vector<2x128xbf16>, vector<128x128xbf16>, vector<2x128xf32> -> vector<2x128xf32>
    %c0_3 = arith.constant 0 : index
    %c0_4 = arith.constant 0 : index
    %4 = vector.load %arg3[%c0_3, %c0_4] : memref<1x128xf32, #tpu.memory_space<vmem>>, vector<1x128xf32>
    %5 = vector.broadcast %4 : vector<1x128xf32> to vector<2x128xf32>
    %6 = arith.addf %3, %5 : vector<2x128xf32>
    %c0_5 = arith.constant 0 : index
    %c0_6 = arith.constant 0 : index
    %7 = vector.load %arg4[%c0_5, %c0_6] : memref<2x128xf32, #tpu.memory_space<vmem>>, vector<2x128xf32>
    tpu.vector_store %arg4[%c0_5, %c0_6], %6 {strides = array<i32>} : memref<2x128xf32, #tpu.memory_space<vmem>>, vector<2x128xf32>,
    return
  }
  func.func @transform_0(%arg0: i32) -> (i32, i32) {
    %c0_i32 = arith.constant 0 : i32
    %c0_i32_0 = arith.constant 0 : i32
    return %arg0, %c0_i32 : i32, i32
  }
  func.func @transform_1(%arg0: i32) -> (i32, i32) {
    %c0_i32 = arith.constant 0 : i32
    %c0_i32_0 = arith.constant 0 : i32
    %c0_i32_1 = arith.constant 0 : i32
    return %c0_i32, %c0_i32_0 : i32, i32
  }
  func.func @transform_2(%arg0: i32) -> (i32, i32) {
    %c0_i32 = arith.constant 0 : i32
    %c0_i32_0 = arith.constant 0 : i32
    %c0_i32_1 = arith.constant 0 : i32
    return %c0_i32, %c0_i32_0 : i32, i32
  }
  func.func @transform_3(%arg0: i32) -> (i32, i32) {
    %c0_i32 = arith.constant 0 : i32
    %c0_i32_0 = arith.constant 0 : i32
    return %arg0, %c0_i32 : i32, i32
  }
}

module attributes {stable_mosaic.version = 11 : i64} {
  func.func @_linear_kernel(%arg0: i32, %arg1: memref<8x512xf32, #tpu.memory_space<vmem>>, %arg2: memref<512x128xbf16, #tpu.memory_space<vmem>>, %arg3: memref<1x128xf32, #tpu.memory_space<vmem>>, %arg4: memref<8x128xf32, #tpu.memory_space<vmem>>) attributes {dimension_semantics = [#tpu.dimension_semantics<parallel>], iteration_bounds = array<i64: 1>, scalar_prefetch = 0 : i64, scratch_operands = 0 : i64, tpu.core_type = #tpu.core_type<tc>, window_params = [{transform_indices = @transform_0, window_bounds = array<i64: 8, 512>}, {pipeline_mode = #tpu.pipeline_mode<synchronous>, transform_indices = @transform_1, window_bounds = array<i64: 512, 128>}, {pipeline_mode = #tpu.pipeline_mode<synchronous>, transform_indices = @transform_2, window_bounds = array<i64: 1, 128>}, {transform_indices = @transform_3, window_bounds = array<i64: 8, 128>}]} {
    %c0 = arith.constant 0 : index
    %c0_0 = arith.constant 0 : index
    %0 = vector.load %arg1[%c0, %c0_0] : memref<8x512xf32, #tpu.memory_space<vmem>>, vector<8x512xf32>
    %1 = arith.truncf %0 : vector<8x512xf32> to vector<8x512xbf16>
    %c0_1 = arith.constant 0 : index
    %c0_2 = arith.constant 0 : index
    %2 = vector.load %arg2[%c0_1, %c0_2] : memref<512x128xbf16, #tpu.memory_space<vmem>>, vector<512x128xbf16>
    %cst = arith.constant dense<0.000000e+00> : vector<8x128xf32>
    %3 = tpu.matmul %1, %2, %cst {dimension_numbers = #tpu.dot_dimension_numbers<[1], [0], [0], [1], [0, 0, 1, 1], [], []>} : vector<8x512xbf16>, vector<512x128xbf16>, vector<8x128xf32> -> vector<8x128xf32>
    %c0_3 = arith.constant 0 : index
    %c0_4 = arith.constant 0 : index
    %4 = vector.load %arg3[%c0_3, %c0_4] : memref<1x128xf32, #tpu.memory_space<vmem>>, vector<1x128xf32>
    %5 = vector.broadcast %4 : vector<1x128xf32> to vector<8x128xf32>
    %6 = arith.addf %3, %5 : vector<8x128xf32>
    %c0_5 = arith.constant 0 : index
    %c0_6 = arith.constant 0 : index
    %7 = vector.load %arg4[%c0_5, %c0_6] : memref<8x128xf32, #tpu.memory_space<vmem>>, vector<8x128xf32>
    tpu.vector_store %arg4[%c0_5, %c0_6], %6 {strides = array<i32>} : memref<8x128xf32, #tpu.memory_space<vmem>>, vector<8x128xf32>,
    return
  }
  func.func @transform_0(%arg0: i32) -> (i32, i32) {
    %c0_i32 = arith.constant 0 : i32
    %c0_i32_0 = arith.constant 0 : i32
    return %arg0, %c0_i32 : i32, i32
  }
  func.func @transform_1(%arg0: i32) -> (i32, i32) {
    %c0_i32 = arith.constant 0 : i32
    %c0_i32_0 = arith.constant 0 : i32
    %c0_i32_1 = arith.constant 0 : i32
    return %c0_i32, %c0_i32_0 : i32, i32
  }
  func.func @transform_2(%arg0: i32) -> (i32, i32) {
    %c0_i32 = arith.constant 0 : i32
    %c0_i32_0 = arith.constant 0 : i32
    %c0_i32_1 = arith.constant 0 : i32
    return %c0_i32, %c0_i32_0 : i32, i32
  }
  func.func @transform_3(%arg0: i32) -> (i32, i32) {
    %c0_i32 = arith.constant 0 : i32
    %c0_i32_0 = arith.constant 0 : i32
    return %arg0, %c0_i32 : i32, i32
  }
}

</mosaic_0001>

<bundles_post_ra>
// kernel: _lambda_.11
= control target key start
LH: loop header
LB: loop body
LE: loop exit
PB: predicated region body
PF: predicated region fallthrough
CT: control target
= control target key end

     0   :  { %8 = vsyncpa [#allocation3], 0  ;;  %s366_s0 = inlined_call_operand.vmem [shape: f32[64,128], index: 0, kind: input, shape index: {}]   ;;  %s367_s1 = inlined_call_operand.hbm [shape: bf16[128,128], index: 1, kind: input, shape index: {}]   ;;  %s368_s2 = inlined_call_operand.hbm [shape: f32[1,128], index: 2, kind: input, shape index: {}]   ;;  %s369_s3 = inlined_call_operand.vmem [shape: f32[64,128], index: 3, kind: output, shape index: {}]  }
   0x1   :  { %s16_s14 = sshll.u32 %s367_s1, 4  ;;  %s17_s14 = int_to_ptr.hbm [resolvable:$true] %s16_s14 }
   0x2   :  { %9 = vsyncpa [#allocation5], 0  ;;  %s288_s15 = smov [#allocation2]   ;;  %s30_s19 = sshll.u32 %s368_s2, 4  ;;  %s31_s19 = int_to_ptr.hbm [resolvable:$true] %s30_s19 }
   0x3   :  { %s18_s16 = sshll.u32 %s288_s15, 4  ;;  %s289_s20 = smov 64   ;;  %s19_s16 = int_to_ptr.vmem [resolvable:$true] %s18_s16 }
   0x4   :  { %s290_s21 = smov 4   ;;  %s291_s22 = smov [#allocation4]  }
   0x5   :  { %24 = dma.hbm_to_vmem [thread:$0]  %s17_s14, 1024, %s19_s16, [#allocation3], %s289_s20, %s289_s20, %s290_s21  }
   0x6   :  { %s32_s23 = sshll.u32 %s291_s22, 4  ;;  %s33_s23 = int_to_ptr.vmem [resolvable:$true] %s32_s23 }
   0x7   :  { %35 = dma.hbm_to_vmem [thread:$0]  %s31_s19, 16, %s33_s23, [#allocation5]  }
   0x8   :  { %284 = dma.done.wait [#allocation3], 1024  }
   0x9   :  { %285 = vsyncadd [#allocation3], 4294966272 }
   0xa   :  { %286 = dma.done.wait [#allocation5], 16  }
   0xb   :  { %287 = vsyncadd [#allocation5], 4294967280  ;;  %v206_v0 = vld [vmem:[#allocation2 + $0x38] sm:$0xff]  ;;  %v205_v1 = vld [vmem:[#allocation2 + $0x30] sm:$0xff] }
   0xc   :  { %124 = vmatpush.bf16.msra.mxu0 %v206_v0  ;;  %207 = vmatpush.bf16.msra.mxu1 %v206_v0  ;;  %v204_v2 = vld [vmem:[#allocation2 + $0x28] sm:$0xff]  ;;  %v203_v3 = vld [vmem:[#allocation2 + $0x20] sm:$0xff]  ;;  %v202_v4 = vld [vmem:[#allocation2 + $0x18] sm:$0xff] }
   0xd   :  { %208 = vmatpush.bf16.msra.mxu2 %v206_v0  ;;  %209 = vmatpush.bf16.msra.mxu3 %v206_v0  ;;  %v201_v5 = vld [vmem:[#allocation2 + $0x10] sm:$0xff]  ;;  %v200_v6 = vld [vmem:[#allocation2 + $0x8] sm:$0xff]  ;;  %v199_v7 = vld [vmem:[#allocation2] sm:$0xff] }
   0xe   :  { %v44_v8 = vld [vmem:[%s366_s0] sm:$0xff]  ;;  %v45_v9 = vld [vmem:[%s366_s0 + $0x8] sm:$0xff]  ;;  %v46_v10 = vld [vmem:[%s366_s0 + $0x10] sm:$0xff] }
   0xf   :  { %v47_v11 = vld [vmem:[%s366_s0 + $0x18] sm:$0xff]  ;;  %v48_v12 = vld [vmem:[%s366_s0 + $0x20] sm:$0xff]  ;;  %v49_v13 = vld [vmem:[%s366_s0 + $0x28] sm:$0xff]  ;;  %v52_v16 = vpack.c.bf16 %v45_v9, %v44_v8 }
  0x10   :  { %125 = vmatpush.bf16.msra.mxu0 %v205_v1  ;;  %210 = vmatpush.bf16.msra.mxu1 %v205_v1  ;;  %v50_v14 = vld [vmem:[%s366_s0 + $0x30] sm:$0xff]  ;;  %v51_v15 = vld [vmem:[%s366_s0 + $0x38] sm:$0xff]  ;;  %v53_v17 = vpack.c.bf16 %v47_v11, %v46_v10  ;;  %v54_v18 = vpack.c.bf16 %v49_v13, %v48_v12  ;;  %v235_v20 = vld [vmem:[#allocation4] ss:$0 sm:$0xff] }
  0x11   :  { %211 = vmatpush.bf16.msra.mxu2 %v205_v1  ;;  %212 = vmatpush.bf16.msra.mxu3 %v205_v1  ;;  %v55_v19 = vpack.c.bf16 %v51_v15, %v50_v14 }
  0x14   :  { %126 = vmatpush.bf16.msra.mxu0 %v204_v2  ;;  %213 = vmatpush.bf16.msra.mxu1 %v204_v2 }
  0x15   :  { %214 = vmatpush.bf16.msra.mxu2 %v204_v2  ;;  %215 = vmatpush.bf16.msra.mxu3 %v204_v2 }
  0x18   :  { %127 = vmatpush.bf16.msra.mxu0 %v203_v3  ;;  %216 = vmatpush.bf16.msra.mxu1 %v203_v3 }
  0x19   :  { %217 = vmatpush.bf16.msra.mxu2 %v203_v3  ;;  %218 = vmatpush.bf16.msra.mxu3 %v203_v3 }
  0x1c   :  { %128 = vmatpush.bf16.msra.mxu0 %v202_v4  ;;  %219 = vmatpush.bf16.msra.mxu1 %v202_v4 }
  0x1d   :  { %220 = vmatpush.bf16.msra.mxu2 %v202_v4  ;;  %221 = vmatpush.bf16.msra.mxu3 %v202_v4 }
  0x20   :  { %129 = vmatpush.bf16.msra.mxu0 %v201_v5  ;;  %222 = vmatpush.bf16.msra.mxu1 %v201_v5 }
  0x21   :  { %223 = vmatpush.bf16.msra.mxu2 %v201_v5  ;;  %224 = vmatpush.bf16.msra.mxu3 %v201_v5 }
  0x24   :  { %130 = vmatpush.bf16.msra.mxu0 %v200_v6  ;;  %225 = vmatpush.bf16.msra.mxu1 %v200_v6 }
  0x25   :  { %226 = vmatpush.bf16.msra.mxu2 %v200_v6  ;;  %227 = vmatpush.bf16.msra.mxu3 %v200_v6 }
  0x28   :  { %131 = vmatpush.bf16.msra.mxu0 %v199_v7  ;;  %228 = vmatpush.bf16.msra.mxu1 %v199_v7 }
  0x29   :  { %229 = vmatpush.bf16.msra.mxu2 %v199_v7  ;;  %230 = vmatpush.bf16.msra.mxu3 %v199_v7 }
  0x2b   :  { %132 = vmatmul.bf16.vlgmr.msra.gmra.mxu0 %v52_v16  ;;  %137 = vmatmul.bf16.vlgmr.msra.gmra.mxu1 %v53_v17 }
  0x2c   :  { %142 = vmatmul.bf16.vlgmr.msra.gmra.mxu2 %v54_v18  ;;  %147 = vmatmul.bf16.vlgmr.msra.gmra.mxu3 %v55_v19 }
  0xa8   :  { %v133_v21 = vpop.f32.mrf.mxu0  ;;  %v138_v22 = vpop.f32.mrf.mxu1 }
  0xa9   :  { %v134_v23 = vadd.f32 %v235_v20, %v133_v21  ;;  %v139_v24 = vadd.f32 %v235_v20, %v138_v22 }
  0xab   :  { %153 = vst [vmem:[%s369_s3] sm:$0xff] %v134_v23 }
  0xac   :  { %155 = vst [vmem:[%s369_s3 + $0x10] sm:$0xff] %v139_v24 }
  0xaf   :  { %v143_v25 = vpop.f32.mrf.mxu2  ;;  %v148_v26 = vpop.f32.mrf.mxu3 }
  0xb0   :  { %v144_v27 = vadd.f32 %v235_v20, %v143_v25  ;;  %v149_v28 = vadd.f32 %v235_v20, %v148_v26  ;;  %v135_v29 = vpop.f32.mrf.mxu0  ;;  %v140_v30 = vpop.f32.mrf.mxu1 }
  0xb1   :  { %v136_v31 = vadd.f32 %v235_v20, %v135_v29  ;;  %v141_v32 = vadd.f32 %v235_v20, %v140_v30 }
  0xb2   :  { %157 = vst [vmem:[%s369_s3 + $0x20] sm:$0xff] %v144_v27 }
  0xb3   :  { %159 = vst [vmem:[%s369_s3 + $0x30] sm:$0xff] %v149_v28 }
  0xb4   :  { %154 = vst [vmem:[%s369_s3 + $0x8] sm:$0xff] %v136_v31 }
  0xb5   :  { %156 = vst [vmem:[%s369_s3 + $0x18] sm:$0xff] %v141_v32 }
  0xb7   :  { %v145_v33 = vpop.f32.mrf.mxu2  ;;  %v150_v34 = vpop.f32.mrf.mxu3 }
  0xb8   :  { %v146_v35 = vadd.f32 %v235_v20, %v145_v33  ;;  %v151_v36 = vadd.f32 %v235_v20, %v150_v34 }
  0xba   :  { %158 = vst [vmem:[%s369_s3 + $0x28] sm:$0xff] %v146_v35 }
  0xbb   :  { %160 = vst [vmem:[%s369_s3 + $0x38] sm:$0xff] %v151_v36 }
  0xbc   :  { %165 = vsyncpa [#allocation3], 1 }
  0xbd   :  { %166 = vsyncpa [#allocation5], 1 }

// kernel: _lambda_.13
= control target key start
LH: loop header
LB: loop body
LE: loop exit
PB: predicated region body
PF: predicated region fallthrough
CT: control target
= control target key end

     0   :  { %11 = vsyncpa [#allocation3], 0  ;;  %s1617_s0 = inlined_call_operand.vmem [shape: f32[64,128], index: 0, kind: input, shape index: {}]   ;;  %s1618_s1 = inlined_call_operand.vmem [shape: bf16[2,64,64], index: 1, kind: input, shape index: {}]   ;;  %s1619_s2 = inlined_call_operand.hbm [shape: bf16[3,128,128], index: 2, kind: input, shape index: {}]   ;;  %s1620_s3 = inlined_call_operand.hbm [shape: f32[1,128], index: 3, kind: input, shape index: {}]   ;;  %s1621_s4 = inlined_call_operand.hbm [shape: bf16[3,128,128], index: 4, kind: input, shape index: {}]   ;;  %s1622_s5 = inlined_call_operand.hbm [shape: f32[1,128], index: 5, kind: input, shape index: {}]   ;;  %s1623_s6 = inlined_call_operand.vmem [shape: f32[64,128], index: 6, kind: output, shape index: {}]  }
   0x1   :  { %12 = vsyncpa [#allocation5], 0  ;;  %s36_s23 = sshll.u32 %s1620_s3, 4  ;;  %s37_s23 = int_to_ptr.hbm [resolvable:$true] %s36_s23 }
   0x2   :  { %13 = vsyncpa [#allocation8], 0  ;;  %s1384_s24 = smov [#allocation4]   ;;  %s22_s28 = sshll.u32 %s1619_s2, 4  ;;  %s23_s28 = int_to_ptr.hbm [resolvable:$true] %s22_s28 }
   0x3   :  { %s38_s25 = sshll.u32 %s1384_s24, 4  ;;  %s1385_s29 = smov [#allocation2]   ;;  %s39_s25 = int_to_ptr.vmem [resolvable:$true] %s38_s25 }
   0x4   :  { %41 = dma.hbm_to_vmem [thread:$0]  %s37_s23, 16, %s39_s25, [#allocation5]  }
   0x5   :  { %s24_s30 = sshll.u32 %s1385_s29, 4  ;;  %s1386_s7 = smov 64   ;;  %s25_s30 = int_to_ptr.vmem [resolvable:$true] %s24_s30 }
   0x6   :  { %s1387_s8 = smov 4   ;;  %s46_s3 = sshll.u32 %s1621_s4, 4  ;;  %s47_s3 = int_to_ptr.hbm [resolvable:$true] %s46_s3 }
   0x7   :  { %30 = dma.hbm_to_vmem [thread:$0]  %s23_s28, 3072, %s25_s30, [#allocation3], %s1386_s7, %s1386_s7, %s1387_s8  }
   0x8   :  { %s1388_s11 = smov [#allocation6]   ;;  %s60_s2 = sshll.u32 %s1622_s5, 4  ;;  %s61_s2 = int_to_ptr.hbm [resolvable:$true] %s60_s2 }
   0x9   :  { %s48_s12 = sshll.u32 %s1388_s11, 4  ;;  %s1389_s15 = smov [#allocation7]   ;;  %s49_s12 = int_to_ptr.vmem [resolvable:$true] %s48_s12 }
   0xa   :  { %54 = dma.hbm_to_vmem [thread:$0]  %s47_s3, 3072, %s49_s12, [#allocation5], %s1386_s7, %s1386_s7, %s1387_s8  }
   0xb   :  { %s62_s16 = sshll.u32 %s1389_s15, 4  ;;  %s63_s16 = int_to_ptr.vmem [resolvable:$true] %s62_s16 }
   0xc   :  { %65 = dma.hbm_to_vmem [thread:$0]  %s61_s2, 16, %s63_s16, [#allocation8]  }
   0xd   :  { %1378 = dma.done.wait [#allocation3], 3072  }
   0xe   :  { %1379 = vsyncadd [#allocation3], 4294964224 }
   0xf   :  { %1380 = dma.done.wait [#allocation5], 3088  }
  0x10   :  { %1381 = vsyncadd [#allocation5], 4294964208 }
  0x11   :  { %1382 = dma.done.wait [#allocation8], 16  }
  0x12   :  { %1383 = vsyncadd [#allocation8], 4294967280  ;;  %v1440_v0 = vld [vmem:[%s1617_s0 + $0x30] sm:$0xff]  ;;  %v1445_v1 = vld [vmem:[%s1617_s0 + $0x38] sm:$0xff]  ;;  %vm140_vm0 = vcmask 523264  }
  0x13   :  { %v1450_v2 = vld [vmem:[%s1617_s0 + $0x20] sm:$0xff]  ;;  %v1454_v3 = vpack.c.bf16 %v1445_v1, %v1440_v0  ;;  %v1459_v4 = vld [vmem:[%s1617_s0 + $0x28] sm:$0xff]  ;;  %v1470_v6 = vld [vmem:[%s1617_s0 + $0x10] sm:$0xff] }
  0x14   :  { %v1465_v5 = vpack.c.bf16 %v1459_v4, %v1450_v2  ;;  %v1475_v7 = vld [vmem:[%s1617_s0 + $0x18] sm:$0xff]  ;;  %v1485_v9 = vld [vmem:[%s1617_s0] sm:$0xff]  ;;  %v1490_v10 = vld [vmem:[%s1617_s0 + $0x8] sm:$0xff] }
  0x15   :  { %157 = vmatpush.bf16.msra.mxu0 %v1454_v3  ;;  %401 = vmatpush.bf16.msra.mxu3 %v1454_v3  ;;  %v92_v8 = vpack.c.bf16 %v1475_v7, %v1470_v6  ;;  %v91_v11 = vpack.c.bf16 %v1490_v10, %v1485_v9  ;;  %v1498_v12 = vld [vmem:[%s1618_s1] sm:$0xff]  ;;  %v1508_v14 = vld [vmem:[%s1618_s1 + $0x10] sm:$0xff]  ;;  %v1519_v15 = vld [vmem:[%s1618_s1 + $0x8] sm:$0xff] }
  0x16   :  { %1266 = vmatpush.bf16.msra.mxu1 %v1454_v3  ;;  %v1503_v13 = vld [vmem:[%s1618_s1 + $0x20] sm:$0xff]  ;;  %v1524_v16 = vld [vmem:[%s1618_s1 + $0x28] sm:$0xff]  ;;  %v1529_v17 = vld [vmem:[%s1618_s1 + $0x18] sm:$0xff] }
  0x17   :  { %v1217_v18 = vld [vmem:[#allocation2 + $0xb8] sm:$0xff]  ;;  %v1216_v20 = vld [vmem:[#allocation2 + $0xb0] sm:$0xff]  ;;  %v1215_v24 = vld [vmem:[#allocation2 + $0xa8] sm:$0xff] }
  0x18   :  { %v1229_v19 = vld [vmem:[#allocation2 + $0x38] sm:$0xff]  ;;  %327 = vmatpush.bf16.msra.mxu2 %v1217_v18  ;;  %v1228_v22 = vld [vmem:[#allocation2 + $0x30] sm:$0xff]  ;;  %v1227_v25 = vld [vmem:[#allocation2 + $0x28] sm:$0xff] }
  0x19   :  { %158 = vmatpush.bf16.msra.mxu0 %v1465_v5  ;;  %402 = vmatpush.bf16.msra.mxu3 %v1465_v5  ;;  %v1241_v21 = vld [vmem:[#allocation2 + $0x78] sm:$0xff]  ;;  %v1240_v23 = vld [vmem:[#allocation2 + $0x70] sm:$0xff]  ;;  %v1239_v26 = vld [vmem:[#allocation2 + $0x68] sm:$0xff] }
  0x1a   :  { %1267 = vmatpush.bf16.msra.mxu1 %v1465_v5  ;;  %v1214_v27 = vld [vmem:[#allocation2 + $0xa0] sm:$0xff]  ;;  %v1540_v29 = vld [vmem:[%s1618_s1 + $0x30] sm:$0xff]  ;;  %v1213_v31 = vld [vmem:[#allocation2 + $0x98] sm:$0xff] }
  0x1b   :  { %v1226_v28 = vld [vmem:[#allocation2 + $0x20] sm:$0xff]  ;;  %v1225_v32 = vld [vmem:[#allocation2 + $0x18] sm:$0xff]  ;;  %v1212_v33 = vld [vmem:[#allocation2 + $0x90] sm:$0xff] }
  0x1c   :  { %328 = vmatpush.bf16.msra.mxu2 %v1216_v20  ;;  %v1238_v30 = vld [vmem:[#allocation2 + $0x60] sm:$0xff]  ;;  %v1211_v34 = vld [vmem:[#allocation2 + $0x88] sm:$0xff]  ;;  %v1547_v36 = vld [vmem:[%s1618_s1 + $0x38] sm:$0xff] }
  0x1d   :  { %159 = vmatpush.bf16.msra.mxu0 %v92_v8  ;;  %403 = vmatpush.bf16.msra.mxu3 %v92_v8  ;;  %v1210_v35 = vld [vmem:[#allocation2 + $0x80] sm:$0xff]  ;;  %v1224_v37 = vld [vmem:[#allocation2 + $0x10] sm:$0xff]  ;;  %v1237_v38 = vld [vmem:[#allocation2 + $0x58] sm:$0xff] }
  0x1e   :  { %1268 = vmatpush.bf16.msra.mxu1 %v92_v8  ;;  %v1223_v39 = vld [vmem:[#allocation2 + $0x8] sm:$0xff]  ;;  %v1236_v40 = vld [vmem:[#allocation2 + $0x50] sm:$0xff]  ;;  %v1222_v41 = vld [vmem:[#allocation2] sm:$0xff] }
  0x1f   :  { %v1235_v42 = vld [vmem:[#allocation2 + $0x48] sm:$0xff]  ;;  %v1234_v43 = vld [vmem:[#allocation2 + $0x40] sm:$0xff] }
  0x20   :  { %329 = vmatpush.bf16.msra.mxu2 %v1215_v24 }
  0x21   :  { %160 = vmatpush.bf16.msra.mxu0 %v91_v11  ;;  %404 = vmatpush.bf16.msra.mxu3 %v91_v11 }
  0x22   :  { %1269 = vmatpush.bf16.msra.mxu1 %v91_v11 }
  0x24   :  { %978 = vmatmul.msk.bf16.vlgmr.msra.gmra.mxu0 %vm140_vm0, %v1498_v12  ;;  %1070 = vmatmul.msk.bf16.vlgmr.msra.gmra.mxu3 %vm140_vm0, %v1503_v13 }
  0x25   :  { %980 = vmatmul.msk.bf16.vlgmr.msra.gmra.mxu1 %vm140_vm0, %v1508_v14  ;;  %495 = vmatpush.bf16.msrb.mxu0 %v1241_v21 }
  0x26   :  { %250 = vmatpush.bf16.msrb.mxu1 %v1229_v19  ;;  %330 = vmatpush.bf16.msra.mxu2 %v1214_v27 }
  0x29   :  { %496 = vmatpush.bf16.msrb.mxu0 %v1240_v23 }
  0x2a   :  { %251 = vmatpush.bf16.msrb.mxu1 %v1228_v22  ;;  %331 = vmatpush.bf16.msra.mxu2 %v1213_v31 }
  0x2d   :  { %497 = vmatpush.bf16.msrb.mxu0 %v1239_v26 }
  0x2e   :  { %252 = vmatpush.bf16.msrb.mxu1 %v1227_v25  ;;  %332 = vmatpush.bf16.msra.mxu2 %v1212_v33 }
  0x31   :  { %498 = vmatpush.bf16.msrb.mxu0 %v1238_v30 }
  0x32   :  { %253 = vmatpush.bf16.msrb.mxu1 %v1226_v28  ;;  %333 = vmatpush.bf16.msra.mxu2 %v1211_v34 }
  0x34   :  { %979 = vmatmul.msk.bf16.gmra.mxu0 %vm140_vm0, %v1519_v15  ;;  %1071 = vmatmul.msk.bf16.gmra.mxu3 %vm140_vm0, %v1524_v16 }
  0x35   :  { %981 = vmatmul.msk.bf16.gmra.mxu1 %vm140_vm0, %v1529_v17  ;;  %499 = vmatpush.bf16.msrb.mxu0 %v1237_v38 }
  0x36   :  { %254 = vmatpush.bf16.msrb.mxu1 %v1225_v32  ;;  %334 = vmatpush.bf16.msra.mxu2 %v1210_v35 }
  0x39   :  { %335 = vmatmul.bf16.vlgmr.msra.gmra.mxu2 %v91_v11  ;;  %500 = vmatpush.bf16.msrb.mxu0 %v1236_v40 }
  0x3a   :  { %255 = vmatpush.bf16.msrb.mxu1 %v1224_v37 }
  0x3d   :  { %501 = vmatpush.bf16.msrb.mxu0 %v1235_v42 }
  0x3e   :  { %256 = vmatpush.bf16.msrb.mxu1 %v1223_v39 }
  0x41   :  { %502 = vmatpush.bf16.msrb.mxu0 %v1234_v43 }
  0x42   :  { %257 = vmatpush.bf16.msrb.mxu1 %v1222_v41 }
  0x44   :  { %1072 = vmatmul.msk.bf16.gmra.mxu3 %vm140_vm0, %v1540_v29 }
  0x49   :  { %340 = vmatmul.bf16.gmra.mxu2 %v92_v8 }
  0x54   :  { %1073 = vmatmul.msk.bf16.gmra.mxu3 %vm140_vm0, %v1547_v36 }
  0x59   :  { %345 = vmatmul.bf16.gmra.mxu2 %v1465_v5 }
  0x69   :  { %350 = vmatmul.bf16.gmra.mxu2 %v1454_v3 }
  0xa1   :  { %v162_v44 = vpop.f32.mrf.mxu0 }
  0xa2   :  { %v172_v53 = vpop.f32.mrf.mxu1 }
  0xa7   :  { %v406_v45 = vpop.f32.mrf.mxu3 }
  0xa9   :  { %v164_v46 = vpop.f32.mrf.mxu0 }
  0xaa   :  { %v182_v47 = vpack.c.bf16 %v164_v46, %v162_v44  ;;  %v174_v57 = vpop.f32.mrf.mxu1 }
  0xab   :  { %v184_v59 = vpack.c.bf16 %v174_v57, %v172_v53 }
  0xac   :  { %258 = vmatmul.bf16.vlgmr.msrb.gmra.mxu1 %v182_v47 }
  0xaf   :  { %v408_v48 = vpop.f32.mrf.mxu3 }
  0xb0   :  { %v426_v49 = vpack.c.bf16 %v408_v48, %v406_v45  ;;  %v1280_v48 = vld [vmem:[#allocation4] ss:$0 sm:$0xff] }
  0xb1   :  { %v167_v50 = vpop.f32.mrf.mxu0 }
  0xb2   :  { %503 = vmatmul.bf16.vlgmr.msrb.gmra.mxu0 %v426_v49  ;;  %v177_v60 = vpop.f32.mrf.mxu1 }
  0xb7   :  { %v411_v51 = vpop.f32.mrf.mxu3 }
  0xb9   :  { %v169_v52 = vpop.f32.mrf.mxu0 }
  0xba   :  { %v183_v54 = vpack.c.bf16 %v169_v52, %v167_v50  ;;  %v179_v63 = vpop.f32.mrf.mxu1 }
  0xbb   :  { %v185_v5 = vpack.c.bf16 %v179_v63, %v177_v60 }
  0xbc   :  { %263 = vmatmul.bf16.gmra.mxu1 %v183_v54  ;;  %v336_v18 = vpop.f32.mrf.mxu2 }
  0xbf   :  { %v413_v55 = vpop.f32.mrf.mxu3 }
  0xc0   :  { %v427_v56 = vpack.c.bf16 %v413_v55, %v411_v51 }
  0xc2   :  { %508 = vmatmul.bf16.gmra.mxu0 %v427_v56 }
  0xc4   :  { %v338_v20 = vpop.f32.mrf.mxu2 }
  0xc7   :  { %v416_v58 = vpop.f32.mrf.mxu3 }
  0xcc   :  { %268 = vmatmul.bf16.gmra.mxu1 %v184_v59  ;;  %v341_v25 = vpop.f32.mrf.mxu2 }
  0xcf   :  { %v418_v61 = vpop.f32.mrf.mxu3 }
  0xd0   :  { %v428_v62 = vpack.c.bf16 %v418_v61, %v416_v58 }
  0xd2   :  { %513 = vmatmul.bf16.gmra.mxu0 %v428_v62 }
  0xd4   :  { %v343_v28 = vpop.f32.mrf.mxu2 }
  0xd7   :  { %v421_v3 = vpop.f32.mrf.mxu3 }
  0xdc   :  { %273 = vmatmul.bf16.gmra.mxu1 %v185_v5  ;;  %v346_v32 = vpop.f32.mrf.mxu2 }
  0xdf   :  { %v423_v8 = vpop.f32.mrf.mxu3 }
  0xe0   :  { %v429_v11 = vpack.c.bf16 %v423_v8, %v421_v3 }
  0xe2   :  { %518 = vmatmul.bf16.gmra.mxu0 %v429_v11 }
  0xe4   :  { %v348_v37 = vpop.f32.mrf.mxu2 }
  0xec   :  { %v351_v41 = vpop.f32.mrf.mxu2 }
  0xf4   :  { %v353_v47 = vpop.f32.mrf.mxu2 }
 0x129   :  { %v259_v19 = vpop.f32.mrf.mxu1 }
 0x12a   :  { %v337_v21 = vadd.f32 %v336_v18, %v259_v19 }
 0x12f   :  { %v504_v22 = vpop.f32.mrf.mxu0 }
 0x130   :  { %v524_v23 = vadd.f32 %v504_v22, %v337_v21 }
 0x131   :  { %v261_v24 = vpop.f32.mrf.mxu1 }
 0x132   :  { %v339_v61 = vadd.f32 %v338_v20, %v261_v24  ;;  %v536_v24 = vadd.f32 %v1280_v48, %v524_v23  ;;  %v1247_v23 = vld [vmem:[#allocation6 + $0xa8] sm:$0xff] }
 0x137   :  { %v506_v26 = vpop.f32.mrf.mxu0 }
 0x138   :  { %v525_v8 = vadd.f32 %v506_v26, %v339_v61 }
 0x139   :  { %v264_v27 = vpop.f32.mrf.mxu1 }
 0x13a   :  { %v342_v57 = vadd.f32 %v341_v25, %v264_v27  ;;  %v537_v25 = vadd.f32 %v1280_v48, %v525_v8 }
 0x13c   :  { %v545_v26 = vmax.f32 %v537_v25, 0.0 }
 0x13f   :  { %v509_v30 = vpop.f32.mrf.mxu0 }
 0x140   :  { %v526_v62 = vadd.f32 %v509_v30, %v342_v57 }
 0x141   :  { %v266_v31 = vpop.f32.mrf.mxu1 }
 0x142   :  { %v344_v53 = vadd.f32 %v343_v28, %v266_v31  ;;  %v538_v21 = vadd.f32 %v1280_v48, %v526_v62  ;;  %v544_v31 = vmax.f32 %v536_v24, 0.0 }
 0x144   :  { %v546_v28 = vmax.f32 %v538_v21, 0.0 }
 0x147   :  { %v511_v33 = vpop.f32.mrf.mxu0 }
 0x148   :  { %v527_v58 = vadd.f32 %v511_v33, %v344_v53  ;;  %v552_v33 = vpack.c.bf16 %v545_v26, %v544_v31 }
 0x149   :  { %v269_v34 = vpop.f32.mrf.mxu1 }
 0x14a   :  { %v347_v49 = vadd.f32 %v346_v32, %v269_v34  ;;  %v539_v11 = vadd.f32 %v1280_v48, %v527_v58  ;;  %v1249_v32 = vld [vmem:[#allocation6 + $0xb8] sm:$0xff]  ;;  %v1248_v34 = vld [vmem:[#allocation6 + $0xb0] sm:$0xff] }
 0x14c   :  { %v547_v27 = vmax.f32 %v539_v11, 0.0 }
 0x14e   :  { %v553_v30 = vpack.c.bf16 %v547_v27, %v546_v28 }
 0x14f   :  { %v514_v35 = vpop.f32.mrf.mxu0 }
 0x150   :  { %v528_v54 = vadd.f32 %v514_v35, %v347_v49  ;;  %v1246_v35 = vld [vmem:[#allocation6 + $0xa0] sm:$0xff] }
 0x151   :  { %v271_v38 = vpop.f32.mrf.mxu1 }
 0x152   :  { %v349_v45 = vadd.f32 %v348_v37, %v271_v38  ;;  %v540_v63 = vadd.f32 %v1280_v48, %v528_v54  ;;  %v1245_v37 = vld [vmem:[#allocation6 + $0x98] sm:$0xff]  ;;  %v1244_v38 = vld [vmem:[#allocation6 + $0x90] sm:$0xff] }
 0x154   :  { %v548_v22 = vmax.f32 %v540_v63, 0.0 }
 0x157   :  { %v516_v39 = vpop.f32.mrf.mxu0 }
 0x158   :  { %v529_v50 = vadd.f32 %v516_v39, %v349_v45  ;;  %v1257_v39 = vld [vmem:[#allocation6 + $0x38] sm:$0xff]  ;;  %v1252_v45 = vld [vmem:[#allocation6 + $0x10] sm:$0xff] }
 0x159   :  { %v274_v40 = vpop.f32.mrf.mxu1  ;;  %670 = vmatpush.bf16.msra.mxu1 %v1257_v39 }
 0x15a   :  { %v352_v43 = vadd.f32 %v351_v41, %v274_v40  ;;  %v541_v59 = vadd.f32 %v1280_v48, %v529_v50  ;;  %v1255_v40 = vld [vmem:[#allocation6 + $0x28] sm:$0xff]  ;;  %v1262_v41 = vld [vmem:[#allocation6 + $0x60] sm:$0xff] }
 0x15c   :  { %v549_v18 = vmax.f32 %v541_v59, 0.0 }
 0x15e   :  { %v554_v20 = vpack.c.bf16 %v549_v18, %v548_v22 }
 0x15f   :  { %v519_v42 = vpop.f32.mrf.mxu0 }
 0x160   :  { %v530_v46 = vadd.f32 %v519_v42, %v352_v43  ;;  %v1254_v42 = vld [vmem:[#allocation6 + $0x20] sm:$0xff]  ;;  %v1253_v43 = vld [vmem:[#allocation6 + $0x18] sm:$0xff] }
 0x161   :  { %v276_v44 = vpop.f32.mrf.mxu1 }
 0x162   :  { %v354_v51 = vadd.f32 %v353_v47, %v276_v44  ;;  %v542_v55 = vadd.f32 %v1280_v48, %v530_v46  ;;  %v1259_v44 = vld [vmem:[#allocation6 + $0x48] sm:$0xff]  ;;  %v1258_v47 = vld [vmem:[#allocation6 + $0x40] sm:$0xff] }
 0x163   :  { %v1251_v46 = vld [vmem:[#allocation6 + $0x8] sm:$0xff] }
 0x164   :  { %v550_v3 = vmax.f32 %v542_v55, 0.0 }
 0x167   :  { %v521_v52 = vpop.f32.mrf.mxu0 }
 0x168   :  { %v531_v56 = vadd.f32 %v521_v52, %v354_v51 }
 0x16a   :  { %v543_v60 = vadd.f32 %v1280_v48, %v531_v56  ;;  %v1250_v48 = vld [vmem:[#allocation6] sm:$0xff] }
 0x16c   :  { %v551_v5 = vmax.f32 %v543_v60, 0.0 }
 0x16e   :  { %v1553_v19 = vpack.c.bf16 %v551_v5, %v550_v3 }
 0x170   :  { %577 = vmatpush.bf16.msrb.mxu2 %v1553_v19  ;;  %1270 = vmatpush.bf16.msrb.mxu3 %v1553_v19 }
 0x171   :  { %780 = vmatpush.bf16.msra.mxu0 %v1553_v19 }
 0x174   :  { %578 = vmatpush.bf16.msrb.mxu2 %v554_v20  ;;  %1271 = vmatpush.bf16.msrb.mxu3 %v554_v20 }
 0x175   :  { %781 = vmatpush.bf16.msra.mxu0 %v554_v20 }
 0x178   :  { %579 = vmatpush.bf16.msrb.mxu2 %v553_v30  ;;  %1272 = vmatpush.bf16.msrb.mxu3 %v553_v30 }
 0x179   :  { %782 = vmatpush.bf16.msra.mxu0 %v553_v30 }
 0x17c   :  { %580 = vmatpush.bf16.msrb.mxu2 %v552_v33  ;;  %1273 = vmatpush.bf16.msrb.mxu3 %v552_v33 }
 0x17d   :  { %783 = vmatpush.bf16.msra.mxu0 %v552_v33 }
 0x17f   :  { %1106 = vmatmul.msk.bf16.vlgmr.msrb.gmra.mxu2 %vm140_vm0, %v1498_v12  ;;  %1108 = vmatmul.msk.bf16.vlgmr.msrb.gmra.mxu3 %vm140_vm0, %v1508_v14  ;;  %v1243_v12 = vld [vmem:[#allocation6 + $0x88] sm:$0xff]  ;;  %v1265_v14 = vld [vmem:[#allocation6 + $0x78] sm:$0xff] }
 0x180   :  { %747 = vmatpush.bf16.msra.mxu2 %v1249_v32  ;;  %1174 = vmatmul.msk.bf16.vlgmr.msra.gmra.mxu0 %vm140_vm0, %v1503_v13  ;;  %v1242_v13 = vld [vmem:[#allocation6 + $0x80] sm:$0xff] }
 0x181   :  { %874 = vmatpush.bf16.msra.mxu3 %v1265_v14 }
 0x184   :  { %748 = vmatpush.bf16.msra.mxu2 %v1248_v34 }
 0x188   :  { %749 = vmatpush.bf16.msra.mxu2 %v1247_v23 }
 0x18c   :  { %750 = vmatpush.bf16.msra.mxu2 %v1246_v35 }
 0x18f   :  { %1107 = vmatmul.msk.bf16.gmra.mxu2 %vm140_vm0, %v1519_v15  ;;  %1109 = vmatmul.msk.bf16.gmra.mxu3 %vm140_vm0, %v1529_v17  ;;  %v1264_v15 = vld [vmem:[#allocation6 + $0x70] sm:$0xff] }
 0x190   :  { %751 = vmatpush.bf16.msra.mxu2 %v1245_v37  ;;  %1175 = vmatmul.msk.bf16.gmra.mxu0 %vm140_vm0, %v1524_v16  ;;  %v1256_v17 = vld [vmem:[#allocation6 + $0x30] sm:$0xff]  ;;  %v1263_v16 = vld [vmem:[#allocation6 + $0x68] sm:$0xff] }
 0x191   :  { %875 = vmatpush.bf16.msra.mxu3 %v1264_v15  ;;  %671 = vmatpush.bf16.msra.mxu1 %v1256_v17 }
 0x194   :  { %752 = vmatpush.bf16.msra.mxu2 %v1244_v38 }
 0x195   :  { %876 = vmatpush.bf16.msra.mxu3 %v1263_v16  ;;  %672 = vmatpush.bf16.msra.mxu1 %v1255_v40 }
 0x198   :  { %753 = vmatpush.bf16.msra.mxu2 %v1243_v12 }
 0x199   :  { %877 = vmatpush.bf16.msra.mxu3 %v1262_v41  ;;  %673 = vmatpush.bf16.msra.mxu1 %v1254_v42 }
 0x19c   :  { %754 = vmatpush.bf16.msra.mxu2 %v1242_v13 }
 0x19d   :  { %674 = vmatpush.bf16.msra.mxu1 %v1253_v43 }
 0x19f   :  { %755 = vmatmul.bf16.vlgmr.msra.gmra.mxu2 %v552_v33 }
 0x1a0   :  { %1176 = vmatmul.msk.bf16.gmra.mxu0 %vm140_vm0, %v1540_v29  ;;  %v1261_v29 = vld [vmem:[#allocation6 + $0x58] sm:$0xff] }
 0x1a1   :  { %878 = vmatpush.bf16.msra.mxu3 %v1261_v29  ;;  %675 = vmatpush.bf16.msra.mxu1 %v1252_v45 }
 0x1a5   :  { %676 = vmatpush.bf16.msra.mxu1 %v1251_v46 }
 0x1a9   :  { %677 = vmatpush.bf16.msra.mxu1 %v1250_v48 }
 0x1af   :  { %760 = vmatmul.bf16.gmra.mxu2 %v553_v30  ;;  %v1575_v30 = vld [vmem:[#allocation7] ss:$0 sm:$0xff] }
 0x1b0   :  { %1177 = vmatmul.msk.bf16.gmra.mxu0 %vm140_vm0, %v1547_v36  ;;  %v1260_v36 = vld [vmem:[#allocation6 + $0x50] sm:$0xff] }
 0x1b1   :  { %879 = vmatpush.bf16.msra.mxu3 %v1260_v36 }
 0x1b5   :  { %880 = vmatpush.bf16.msra.mxu3 %v1259_v44 }
 0x1b9   :  { %881 = vmatpush.bf16.msra.mxu3 %v1258_v47 }
 0x1bf   :  { %765 = vmatmul.bf16.gmra.mxu2 %v554_v20 }
 0x1cf   :  { %770 = vmatmul.bf16.gmra.mxu2 %v1553_v19 }
 0x1fd   :  { %v785_v49 = vpop.f32.mrf.mxu0 }
 0x202   :  { %v582_v50 = vpop.f32.mrf.mxu2  ;;  %v592_v60 = vpop.f32.mrf.mxu3 }
 0x205   :  { %v787_v51 = vpop.f32.mrf.mxu0 }
 0x206   :  { %v805_v52 = vpack.c.bf16 %v787_v51, %v785_v49 }
 0x208   :  { %882 = vmatmul.bf16.vlgmr.msra.gmra.mxu3 %v805_v52 }
 0x20a   :  { %v584_v53 = vpop.f32.mrf.mxu2  ;;  %v594_v63 = vpop.f32.mrf.mxu3 }
 0x20b   :  { %v602_v54 = vpack.c.bf16 %v584_v53, %v582_v50  ;;  %v604_v8 = vpack.c.bf16 %v594_v63, %v592_v60 }
 0x20d   :  { %678 = vmatmul.bf16.vlgmr.msra.gmra.mxu1 %v602_v54  ;;  %v790_v55 = vpop.f32.mrf.mxu0 }
 0x212   :  { %v587_v56 = vpop.f32.mrf.mxu2  ;;  %v597_v18 = vpop.f32.mrf.mxu3 }
 0x215   :  { %v792_v57 = vpop.f32.mrf.mxu0 }
 0x216   :  { %v806_v58 = vpack.c.bf16 %v792_v57, %v790_v55 }
 0x218   :  { %887 = vmatmul.bf16.gmra.mxu3 %v806_v58 }
 0x21a   :  { %v589_v59 = vpop.f32.mrf.mxu2  ;;  %v599_v22 = vpop.f32.mrf.mxu3 }
 0x21b   :  { %v603_v61 = vpack.c.bf16 %v589_v59, %v587_v56  ;;  %v605_v25 = vpack.c.bf16 %v599_v22, %v597_v18 }
 0x21d   :  { %683 = vmatmul.bf16.gmra.mxu1 %v603_v61  ;;  %v795_v62 = vpop.f32.mrf.mxu0 }
 0x222   :  { %v756_v27 = vpop.f32.mrf.mxu2 }
 0x225   :  { %v797_v3 = vpop.f32.mrf.mxu0 }
 0x226   :  { %v807_v5 = vpack.c.bf16 %v797_v3, %v795_v62 }
 0x228   :  { %892 = vmatmul.bf16.gmra.mxu3 %v807_v5 }
 0x22a   :  { %v758_v20 = vpop.f32.mrf.mxu2 }
 0x22d   :  { %688 = vmatmul.bf16.gmra.mxu1 %v604_v8  ;;  %v800_v11 = vpop.f32.mrf.mxu0 }
 0x232   :  { %v761_v33 = vpop.f32.mrf.mxu2 }
 0x235   :  { %v802_v19 = vpop.f32.mrf.mxu0 }
 0x236   :  { %v808_v21 = vpack.c.bf16 %v802_v19, %v800_v11 }
 0x238   :  { %897 = vmatmul.bf16.gmra.mxu3 %v808_v21 }
 0x23a   :  { %v763_v15 = vpop.f32.mrf.mxu2 }
 0x23d   :  { %693 = vmatmul.bf16.gmra.mxu1 %v605_v25 }
 0x242   :  { %v766_v47 = vpop.f32.mrf.mxu2 }
 0x28a   :  { %v679_v24 = vpop.f32.mrf.mxu1 }
 0x28b   :  { %v757_v28 = vadd.f32 %v756_v27, %v679_v24  ;;  %v883_v26 = vpop.f32.mrf.mxu3 }
 0x28d   :  { %v903_v31 = vadd.f32 %v883_v26, %v757_v28 }
 0x28f   :  { %v915_v32 = vadd.f32 %v1575_v30, %v903_v31 }
 0x291   :  { %v923_v34 = vmax.f32 %v915_v32, 0.0 }
 0x292   :  { %v681_v23 = vpop.f32.mrf.mxu1 }
 0x293   :  { %v931_v35 = vadd.f32 %v923_v34, %v1485_v9  ;;  %v759_v37 = vadd.f32 %v758_v20, %v681_v23  ;;  %v885_v38 = vpop.f32.mrf.mxu3 }
 0x295   :  { %v939_v12 = vmax.f32 %v931_v35, 0.0  ;;  %v904_v13 = vadd.f32 %v885_v38, %v759_v37 }
 0x297   :  { %947 = vst [vmem:[%s1623_s6] sm:$0xff] %v939_v12  ;;  %v916_v14 = vadd.f32 %v1575_v30, %v904_v13 }
 0x299   :  { %v924_v39 = vmax.f32 %v916_v14, 0.0 }
 0x29a   :  { %v684_v17 = vpop.f32.mrf.mxu1 }
 0x29b   :  { %v932_v16 = vadd.f32 %v924_v39, %v1490_v10  ;;  %v762_v40 = vadd.f32 %v761_v33, %v684_v17  ;;  %v888_v41 = vpop.f32.mrf.mxu3 }
 0x29d   :  { %v940_v42 = vmax.f32 %v932_v16, 0.0  ;;  %v905_v29 = vadd.f32 %v888_v41, %v762_v40 }
 0x29f   :  { %948 = vst [vmem:[%s1623_s6 + $0x8] sm:$0xff] %v940_v42  ;;  %v917_v9 = vadd.f32 %v1575_v30, %v905_v29 }
 0x2a1   :  { %v925_v43 = vmax.f32 %v917_v9, 0.0 }
 0x2a2   :  { %v686_v36 = vpop.f32.mrf.mxu1 }
 0x2a3   :  { %v933_v44 = vadd.f32 %v925_v43, %v1470_v6  ;;  %v764_v45 = vadd.f32 %v763_v15, %v686_v36  ;;  %v890_v46 = vpop.f32.mrf.mxu3  ;;  %v768_v6 = vpop.f32.mrf.mxu2 }
 0x2a5   :  { %v941_v48 = vmax.f32 %v933_v44, 0.0  ;;  %v906_v49 = vadd.f32 %v890_v46, %v764_v45 }
 0x2a7   :  { %949 = vst [vmem:[%s1623_s6 + $0x10] sm:$0xff] %v941_v48  ;;  %v918_v10 = vadd.f32 %v1575_v30, %v906_v49 }
 0x2a9   :  { %v926_v50 = vmax.f32 %v918_v10, 0.0 }
 0x2aa   :  { %v689_v51 = vpop.f32.mrf.mxu1 }
 0x2ab   :  { %v934_v52 = vadd.f32 %v926_v50, %v1475_v7  ;;  %v767_v53 = vadd.f32 %v766_v47, %v689_v51  ;;  %v893_v54 = vpop.f32.mrf.mxu3  ;;  %v771_v5 = vpop.f32.mrf.mxu2 }
 0x2ad   :  { %v942_v55 = vmax.f32 %v934_v52, 0.0  ;;  %v907_v56 = vadd.f32 %v893_v54, %v767_v53 }
 0x2af   :  { %950 = vst [vmem:[%s1623_s6 + $0x18] sm:$0xff] %v942_v55  ;;  %v919_v57 = vadd.f32 %v1575_v30, %v907_v56 }
 0x2b1   :  { %v927_v58 = vmax.f32 %v919_v57, 0.0 }
 0x2b2   :  { %v691_v59 = vpop.f32.mrf.mxu1 }
 0x2b3   :  { %v935_v60 = vadd.f32 %v927_v58, %v1450_v2  ;;  %v769_v61 = vadd.f32 %v768_v6, %v691_v59  ;;  %v895_v62 = vpop.f32.mrf.mxu3  ;;  %v773_v20 = vpop.f32.mrf.mxu2 }
 0x2b5   :  { %v943_v63 = vmax.f32 %v935_v60, 0.0  ;;  %v908_v3 = vadd.f32 %v895_v62, %v769_v61 }
 0x2b7   :  { %951 = vst [vmem:[%s1623_s6 + $0x20] sm:$0xff] %v943_v63  ;;  %v920_v7 = vadd.f32 %v1575_v30, %v908_v3 }
 0x2b9   :  { %v928_v8 = vmax.f32 %v920_v7, 0.0 }
 0x2ba   :  { %v694_v11 = vpop.f32.mrf.mxu1 }
 0x2bb   :  { %v936_v18 = vadd.f32 %v928_v8, %v1459_v4  ;;  %v772_v19 = vadd.f32 %v771_v5, %v694_v11  ;;  %v898_v21 = vpop.f32.mrf.mxu3 }
 0x2bd   :  { %v944_v22 = vmax.f32 %v936_v18, 0.0  ;;  %v909_v25 = vadd.f32 %v898_v21, %v772_v19 }
 0x2bf   :  { %952 = vst [vmem:[%s1623_s6 + $0x28] sm:$0xff] %v944_v22  ;;  %v921_v2 = vadd.f32 %v1575_v30, %v909_v25 }
 0x2c1   :  { %v929_v27 = vmax.f32 %v921_v2, 0.0 }
 0x2c2   :  { %v696_v24 = vpop.f32.mrf.mxu1 }
 0x2c3   :  { %v937_v28 = vadd.f32 %v929_v27, %v1440_v0  ;;  %v774_v26 = vadd.f32 %v773_v20, %v696_v24  ;;  %v900_v31 = vpop.f32.mrf.mxu3 }
 0x2c5   :  { %v945_v32 = vmax.f32 %v937_v28, 0.0  ;;  %v910_v33 = vadd.f32 %v900_v31, %v774_v26 }
 0x2c7   :  { %953 = vst [vmem:[%s1623_s6 + $0x30] sm:$0xff] %v945_v32  ;;  %v922_v4 = vadd.f32 %v1575_v30, %v910_v33 }
 0x2c9   :  { %v930_v34 = vmax.f32 %v922_v4, 0.0 }
 0x2cb   :  { %v938_v23 = vadd.f32 %v930_v34, %v1445_v1 }
 0x2cd   :  { %v946_v35 = vmax.f32 %v938_v23, 0.0 }
 0x2cf   :  { %954 = vst [vmem:[%s1623_s6 + $0x38] sm:$0xff] %v946_v35 }
 0x2d0   :  { %959 = vsyncpa [#allocation3], 1 }
 0x2d1   :  { %960 = vsyncpa [#allocation5], 1 }
 0x2d2   :  { %961 = vsyncpa [#allocation8], 1 }

// kernel: _lambda_.12
= control target key start
LH: loop header
LB: loop body
LE: loop exit
PB: predicated region body
PF: predicated region fallthrough
CT: control target
= control target key end

     0   :  { %13 = vsyncpa [#allocation3], 0  ;;  %s1848_s0 = inlined_call_operand.vmem [shape: f32[64,128], index: 0, kind: input, shape index: {}]   ;;  %s1849_s1 = inlined_call_operand.vmem [shape: bf16[2,64,64], index: 1, kind: input, shape index: {}]   ;;  %s1850_s2 = inlined_call_operand.hbm [shape: bf16[3,128,128], index: 2, kind: input, shape index: {}]   ;;  %s1851_s3 = inlined_call_operand.hbm [shape: f32[1,128], index: 3, kind: input, shape index: {}]   ;;  %s1852_s4 = inlined_call_operand.hbm [shape: bf16[3,128,128], index: 4, kind: input, shape index: {}]   ;;  %s1853_s5 = inlined_call_operand.hbm [shape: f32[1,128], index: 5, kind: input, shape index: {}]   ;;  %s1854_s6 = inlined_call_operand.hbm [shape: bf16[128,128], index: 6, kind: input, shape index: {}]   ;;  %s1855_s7 = inlined_call_operand.hbm [shape: f32[1,128], index: 7, kind: input, shape index: {}]   ;;  %s1856_s8 = inlined_call_operand.vmem [shape: f32[64,128], index: 8, kind: output, shape index: {}]  }
   0x1   :  { %14 = vsyncpa [#allocation5], 0 }
   0x2   :  { %15 = vsyncpa [#allocation8], 0  ;;  %s39_s29 = sshll.u32 %s1851_s3, 4  ;;  %s40_s29 = int_to_ptr.hbm [resolvable:$true] %s39_s29 }
   0x3   :  { %16 = vsyncpa [#allocation11], 0  ;;  %s1610_s30 = smov [#allocation4]   ;;  %s63_s12 = sshll.u32 %s1853_s5, 4  ;;  %s64_s12 = int_to_ptr.hbm [resolvable:$true] %s63_s12 }
   0x4   :  { %s41_s9 = sshll.u32 %s1610_s30, 4  ;;  %s1611_s13 = smov [#allocation7]   ;;  %s42_s9 = int_to_ptr.vmem [resolvable:$true] %s41_s9 }
   0x5   :  { %44 = dma.hbm_to_vmem [thread:$0]  %s40_s29, 16, %s42_s9, [#allocation5]  }
   0x6   :  { %s65_s14 = sshll.u32 %s1611_s13, 4  ;;  %s25_s17 = sshll.u32 %s1850_s2, 4  ;;  %s66_s14 = int_to_ptr.vmem [resolvable:$true] %s65_s14  ;;  %s26_s17 = int_to_ptr.hbm [resolvable:$true] %s25_s17 }
   0x7   :  { %68 = dma.hbm_to_vmem [thread:$0]  %s64_s12, 16, %s66_s14, [#allocation8]  }
   0x8   :  { %s1612_s3 = smov [#allocation2]   ;;  %s49_s21 = sshll.u32 %s1852_s4, 4  ;;  %s50_s21 = int_to_ptr.hbm [resolvable:$true] %s49_s21 }
   0x9   :  { %s27_s18 = sshll.u32 %s1612_s3, 4  ;;  %s1613_s22 = smov 64   ;;  %s28_s18 = int_to_ptr.vmem [resolvable:$true] %s27_s18 }
   0xa   :  { %s1614_s5 = smov 4   ;;  %s1615_s23 = smov [#allocation6]  }
   0xb   :  { %33 = dma.hbm_to_vmem [thread:$0]  %s26_s17, 3072, %s28_s18, [#allocation3], %s1613_s22, %s1613_s22, %s1614_s5  }
   0xc   :  { %s51_s24 = sshll.u32 %s1615_s23, 4  ;;  %s73_s2 = sshll.u32 %s1854_s6, 4  ;;  %s52_s24 = int_to_ptr.vmem [resolvable:$true] %s51_s24  ;;  %s74_s2 = int_to_ptr.hbm [resolvable:$true] %s73_s2 }
   0xd   :  { %57 = dma.hbm_to_vmem [thread:$0]  %s50_s21, 3072, %s52_s24, [#allocation5], %s1613_s22, %s1613_s22, %s1614_s5  }
   0xe   :  { %s87_s29 = sshll.u32 %s1855_s7, 4  ;;  %s1616_s30 = smov [#allocation9]   ;;  %s88_s29 = int_to_ptr.hbm [resolvable:$true] %s87_s29 }
   0xf   :  { %s75_s9 = sshll.u32 %s1616_s30, 4  ;;  %s1617_s4 = smov [#allocation10]   ;;  %s76_s9 = int_to_ptr.vmem [resolvable:$true] %s75_s9 }
  0x10   :  { %81 = dma.hbm_to_vmem [thread:$0]  %s74_s2, 1024, %s76_s9, [#allocation8], %s1613_s22, %s1613_s22, %s1614_s5  }
  0x11   :  { %s89_s10 = sshll.u32 %s1617_s4, 4  ;;  %s90_s10 = int_to_ptr.vmem [resolvable:$true] %s89_s10 }
  0x12   :  { %92 = dma.hbm_to_vmem [thread:$0]  %s88_s29, 16, %s90_s10, [#allocation11]  }
  0x13   :  { %1602 = dma.done.wait [#allocation3], 3072  }
  0x14   :  { %1603 = vsyncadd [#allocation3], 4294964224 }
  0x15   :  { %1604 = dma.done.wait [#allocation5], 3088  }
  0x16   :  { %1605 = vsyncadd [#allocation5], 4294964208 }
  0x17   :  { %1606 = dma.done.wait [#allocation8], 1040  }
  0x18   :  { %1607 = vsyncadd [#allocation8], 4294966256 }
  0x19   :  { %1608 = dma.done.wait [#allocation11], 16  }
  0x1a   :  { %1609 = vsyncadd [#allocation11], 4294967280  ;;  %v124_v0 = vld [vmem:[%s1848_s0 + $0x30] sm:$0xff]  ;;  %v125_v1 = vld [vmem:[%s1848_s0 + $0x38] sm:$0xff]  ;;  %vm175_vm0 = vcmask 523264  }
  0x1b   :  { %v122_v2 = vld [vmem:[%s1848_s0 + $0x20] sm:$0xff]  ;;  %v1690_v3 = vpack.c.bf16 %v125_v1, %v124_v0  ;;  %v123_v4 = vld [vmem:[%s1848_s0 + $0x28] sm:$0xff]  ;;  %v120_v6 = vld [vmem:[%s1848_s0 + $0x10] sm:$0xff] }
  0x1c   :  { %v1696_v5 = vpack.c.bf16 %v123_v4, %v122_v2  ;;  %v121_v7 = vld [vmem:[%s1848_s0 + $0x18] sm:$0xff]  ;;  %v118_v9 = vld [vmem:[%s1848_s0] sm:$0xff]  ;;  %v119_v10 = vld [vmem:[%s1848_s0 + $0x8] sm:$0xff] }
  0x1d   :  { %192 = vmatpush.bf16.msra.mxu0 %v1690_v3  ;;  %436 = vmatpush.bf16.msra.mxu3 %v1690_v3  ;;  %v1706_v8 = vpack.c.bf16 %v121_v7, %v120_v6  ;;  %v1716_v11 = vpack.c.bf16 %v119_v10, %v118_v9  ;;  %v1722_v12 = vld [vmem:[%s1849_s1] sm:$0xff]  ;;  %v1731_v13 = vld [vmem:[%s1849_s1 + $0x8] sm:$0xff]  ;;  %v1745_v15 = vld [vmem:[%s1849_s1 + $0x10] sm:$0xff] }
  0x1e   :  { %v1738_v14 = vld [vmem:[%s1849_s1 + $0x20] sm:$0xff]  ;;  %v1750_v16 = vld [vmem:[%s1849_s1 + $0x28] sm:$0xff]  ;;  %v1394_v17 = vld [vmem:[#allocation2 + $0x38] sm:$0xff] }
  0x1f   :  { %285 = vmatpush.bf16.msra.mxu1 %v1394_v17  ;;  %v1393_v18 = vld [vmem:[#allocation2 + $0x30] sm:$0xff]  ;;  %1439 = vmatpush.bf16.msra.mxu2 %v1394_v17  ;;  %v1392_v19 = vld [vmem:[#allocation2 + $0x28] sm:$0xff]  ;;  %v1759_v20 = vld [vmem:[%s1849_s1 + $0x18] sm:$0xff] }
  0x20   :  { %v1391_v21 = vld [vmem:[#allocation2 + $0x20] sm:$0xff]  ;;  %v1764_v22 = vld [vmem:[%s1849_s1 + $0x30] sm:$0xff]  ;;  %v1390_v23 = vld [vmem:[#allocation2 + $0x18] sm:$0xff] }
  0x21   :  { %193 = vmatpush.bf16.msra.mxu0 %v1696_v5  ;;  %437 = vmatpush.bf16.msra.mxu3 %v1696_v5  ;;  %v1773_v24 = vld [vmem:[%s1849_s1 + $0x38] sm:$0xff]  ;;  %v1389_v25 = vld [vmem:[#allocation2 + $0x10] sm:$0xff]  ;;  %v1388_v26 = vld [vmem:[#allocation2 + $0x8] sm:$0xff] }
  0x22   :  { %v1387_v27 = vld [vmem:[#allocation2] sm:$0xff]  ;;  %v1406_v29 = vld [vmem:[#allocation2 + $0x78] sm:$0xff]  ;;  %v1405_v30 = vld [vmem:[#allocation2 + $0x70] sm:$0xff] }
  0x23   :  { %286 = vmatpush.bf16.msra.mxu1 %v1393_v18  ;;  %1440 = vmatpush.bf16.msra.mxu2 %v1393_v18  ;;  %v1382_v33 = vld [vmem:[#allocation2 + $0xb8] sm:$0xff]  ;;  %v1404_v34 = vld [vmem:[#allocation2 + $0x68] sm:$0xff]  ;;  %v1381_v35 = vld [vmem:[#allocation2 + $0xb0] sm:$0xff] }
  0x24   :  { %v1403_v36 = vld [vmem:[#allocation2 + $0x60] sm:$0xff]  ;;  %v1380_v38 = vld [vmem:[#allocation2 + $0xa8] sm:$0xff]  ;;  %v1402_v39 = vld [vmem:[#allocation2 + $0x58] sm:$0xff] }
  0x25   :  { %194 = vmatpush.bf16.msra.mxu0 %v1706_v8  ;;  %438 = vmatpush.bf16.msra.mxu3 %v1706_v8  ;;  %v1379_v40 = vld [vmem:[#allocation2 + $0xa0] sm:$0xff]  ;;  %v1401_v41 = vld [vmem:[#allocation2 + $0x50] sm:$0xff]  ;;  %v1378_v45 = vld [vmem:[#allocation2 + $0x98] sm:$0xff] }
  0x26   :  { %v1400_v46 = vld [vmem:[#allocation2 + $0x48] sm:$0xff]  ;;  %v1377_v47 = vld [vmem:[#allocation2 + $0x90] sm:$0xff]  ;;  %v1399_v48 = vld [vmem:[#allocation2 + $0x40] sm:$0xff] }
  0x27   :  { %287 = vmatpush.bf16.msra.mxu1 %v1392_v19  ;;  %1441 = vmatpush.bf16.msra.mxu2 %v1392_v19  ;;  %v1376_v51 = vld [vmem:[#allocation2 + $0x88] sm:$0xff]  ;;  %v1375_v53 = vld [vmem:[#allocation2 + $0x80] sm:$0xff]  ;;  %v1413_v7 = vld [vmem:[#allocation6 + $0xb0] sm:$0xff] }
  0x28   :  { %v1414_v6 = vld [vmem:[#allocation6 + $0xb8] sm:$0xff]  ;;  %v1412_v9 = vld [vmem:[#allocation6 + $0xa8] sm:$0xff]  ;;  %v1411_v10 = vld [vmem:[#allocation6 + $0xa0] sm:$0xff] }
  0x29   :  { %195 = vmatpush.bf16.msra.mxu0 %v1716_v11  ;;  %439 = vmatpush.bf16.msra.mxu3 %v1716_v11  ;;  %v1410_v18 = vld [vmem:[#allocation6 + $0x98] sm:$0xff]  ;;  %v1409_v19 = vld [vmem:[#allocation6 + $0x90] sm:$0xff] }
  0x2b   :  { %288 = vmatpush.bf16.msra.mxu1 %v1391_v21  ;;  %1442 = vmatpush.bf16.msra.mxu2 %v1391_v21 }
  0x2c   :  { %1111 = vmatmul.msk.bf16.vlgmr.msra.gmra.mxu0 %vm175_vm0, %v1722_v12  ;;  %1203 = vmatmul.msk.bf16.vlgmr.msra.gmra.mxu3 %vm175_vm0, %v1738_v14 }
  0x2d   :  { %530 = vmatpush.bf16.msrb.mxu0 %v1406_v29 }
  0x2f   :  { %289 = vmatpush.bf16.msra.mxu1 %v1390_v23  ;;  %1443 = vmatpush.bf16.msra.mxu2 %v1390_v23  ;;  %v1408_v23 = vld [vmem:[#allocation6 + $0x88] sm:$0xff] }
  0x31   :  { %531 = vmatpush.bf16.msrb.mxu0 %v1405_v30 }
  0x33   :  { %290 = vmatpush.bf16.msra.mxu1 %v1389_v25  ;;  %1444 = vmatpush.bf16.msra.mxu2 %v1389_v25  ;;  %v1407_v25 = vld [vmem:[#allocation6 + $0x80] sm:$0xff] }
  0x35   :  { %532 = vmatpush.bf16.msrb.mxu0 %v1404_v34 }
  0x37   :  { %291 = vmatpush.bf16.msra.mxu1 %v1388_v26  ;;  %1445 = vmatpush.bf16.msra.mxu2 %v1388_v26 }
  0x39   :  { %533 = vmatpush.bf16.msrb.mxu0 %v1403_v36 }
  0x3b   :  { %292 = vmatpush.bf16.msra.mxu1 %v1387_v27  ;;  %1446 = vmatpush.bf16.msra.mxu2 %v1387_v27 }
  0x3c   :  { %1112 = vmatmul.msk.bf16.gmra.mxu0 %vm175_vm0, %v1731_v13  ;;  %1204 = vmatmul.msk.bf16.gmra.mxu3 %vm175_vm0, %v1750_v16 }
  0x3d   :  { %534 = vmatpush.bf16.msrb.mxu0 %v1402_v39 }
  0x3f   :  { %362 = vmatpush.bf16.msrb.mxu2 %v1382_v33 }
  0x41   :  { %535 = vmatpush.bf16.msrb.mxu0 %v1401_v41 }
  0x43   :  { %363 = vmatpush.bf16.msrb.mxu2 %v1381_v35  ;;  %v1455_v35 = vld [vmem:[#allocation4] ss:$0 sm:$0xff] }
  0x45   :  { %536 = vmatpush.bf16.msrb.mxu0 %v1400_v46 }
  0x47   :  { %364 = vmatpush.bf16.msrb.mxu2 %v1380_v38 }
  0x49   :  { %537 = vmatpush.bf16.msrb.mxu0 %v1399_v48 }
  0x4b   :  { %365 = vmatpush.bf16.msrb.mxu2 %v1379_v40 }
  0x4c   :  { %1113 = vmatmul.msk.bf16.gmra.mxu0 %vm175_vm0, %v1745_v15  ;;  %1205 = vmatmul.msk.bf16.gmra.mxu3 %vm175_vm0, %v1764_v22 }
  0x4f   :  { %366 = vmatpush.bf16.msrb.mxu2 %v1378_v45 }
  0x53   :  { %367 = vmatpush.bf16.msrb.mxu2 %v1377_v47 }
  0x57   :  { %368 = vmatpush.bf16.msrb.mxu2 %v1376_v51 }
  0x5b   :  { %369 = vmatpush.bf16.msrb.mxu2 %v1375_v53 }
  0x5c   :  { %1114 = vmatmul.msk.bf16.gmra.mxu0 %vm175_vm0, %v1759_v20  ;;  %1206 = vmatmul.msk.bf16.gmra.mxu3 %vm175_vm0, %v1773_v24 }
  0xa9   :  { %v197_v28 = vpop.f32.mrf.mxu0 }
  0xaf   :  { %v441_v43 = vpop.f32.mrf.mxu3 }
  0xb1   :  { %v199_v31 = vpop.f32.mrf.mxu0 }
  0xb2   :  { %v217_v32 = vpack.c.bf16 %v199_v31, %v197_v28 }
  0xb4   :  { %293 = vmatmul.bf16.vlgmr.msra.gmra.mxu1 %v217_v32 }
  0xb7   :  { %v443_v50 = vpop.f32.mrf.mxu3 }
  0xb8   :  { %v461_v52 = vpack.c.bf16 %v443_v50, %v441_v43 }
  0xb9   :  { %v202_v37 = vpop.f32.mrf.mxu0 }
  0xba   :  { %538 = vmatmul.bf16.vlgmr.msrb.gmra.mxu0 %v461_v52 }
  0xbf   :  { %v446_v55 = vpop.f32.mrf.mxu3 }
  0xc1   :  { %v204_v42 = vpop.f32.mrf.mxu0 }
  0xc2   :  { %v218_v44 = vpack.c.bf16 %v204_v42, %v202_v37 }
  0xc4   :  { %298 = vmatmul.bf16.gmra.mxu1 %v218_v44 }
  0xc7   :  { %v448_v58 = vpop.f32.mrf.mxu3 }
  0xc8   :  { %v462_v59 = vpack.c.bf16 %v448_v58, %v446_v55 }
  0xc9   :  { %v207_v49 = vpop.f32.mrf.mxu0 }
  0xca   :  { %543 = vmatmul.bf16.gmra.mxu0 %v462_v59 }
  0xcf   :  { %v451_v61 = vpop.f32.mrf.mxu3 }
  0xd1   :  { %v209_v54 = vpop.f32.mrf.mxu0 }
  0xd2   :  { %v219_v56 = vpack.c.bf16 %v209_v54, %v207_v49 }
  0xd4   :  { %303 = vmatmul.bf16.vlgmr.msra.gmra.mxu2 %v219_v56 }
  0xd5   :  { %782 = vmatpush.bf16.msra.mxu2 %v1414_v6 }
  0xd7   :  { %v453_v63 = vpop.f32.mrf.mxu3 }
  0xd8   :  { %v463_v0 = vpack.c.bf16 %v453_v63, %v451_v61 }
  0xd9   :  { %v212_v57 = vpop.f32.mrf.mxu0  ;;  %783 = vmatpush.bf16.msra.mxu2 %v1413_v7 }
  0xda   :  { %548 = vmatmul.bf16.gmra.mxu0 %v463_v0 }
  0xdd   :  { %784 = vmatpush.bf16.msra.mxu2 %v1412_v9 }
  0xdf   :  { %v456_v1 = vpop.f32.mrf.mxu3 }
  0xe1   :  { %v214_v60 = vpop.f32.mrf.mxu0  ;;  %785 = vmatpush.bf16.msra.mxu2 %v1411_v10 }
  0xe2   :  { %v220_v62 = vpack.c.bf16 %v214_v60, %v212_v57 }
  0xe4   :  { %308 = vmatmul.bf16.gmra.mxu2 %v220_v62 }
  0xe5   :  { %786 = vmatpush.bf16.msra.mxu2 %v1410_v18 }
  0xe7   :  { %v458_v2 = vpop.f32.mrf.mxu3 }
  0xe8   :  { %v464_v4 = vpack.c.bf16 %v458_v2, %v456_v1 }
  0xe9   :  { %787 = vmatpush.bf16.msra.mxu2 %v1409_v19 }
  0xea   :  { %553 = vmatmul.bf16.gmra.mxu0 %v464_v4 }
  0xed   :  { %788 = vmatpush.bf16.msra.mxu2 %v1408_v23 }
  0xf1   :  { %789 = vmatpush.bf16.msra.mxu2 %v1407_v25 }
  0xf4   :  { %370 = vmatmul.bf16.vlgmr.msrb.gmra.mxu2 %v1716_v11 }
 0x104   :  { %375 = vmatmul.bf16.gmra.mxu2 %v1706_v8 }
 0x114   :  { %380 = vmatmul.bf16.gmra.mxu2 %v1696_v5 }
 0x124   :  { %385 = vmatmul.bf16.gmra.mxu2 %v1690_v3 }
 0x131   :  { %v294_v29 = vpop.f32.mrf.mxu1 }
 0x137   :  { %v539_v27 = vpop.f32.mrf.mxu0 }
 0x139   :  { %v296_v33 = vpop.f32.mrf.mxu1 }
 0x13f   :  { %v541_v30 = vpop.f32.mrf.mxu0 }
 0x141   :  { %v299_v42 = vpop.f32.mrf.mxu1 }
 0x147   :  { %v544_v36 = vpop.f32.mrf.mxu0 }
 0x149   :  { %v301_v50 = vpop.f32.mrf.mxu1 }
 0x14f   :  { %v546_v47 = vpop.f32.mrf.mxu0 }
 0x157   :  { %v304_v17 = vpop.f32.mrf.mxu2  ;;  %v549_v55 = vpop.f32.mrf.mxu0 }
 0x15f   :  { %v306_v21 = vpop.f32.mrf.mxu2  ;;  %v551_v62 = vpop.f32.mrf.mxu0 }
 0x167   :  { %v309_v26 = vpop.f32.mrf.mxu2  ;;  %v554_v10 = vpop.f32.mrf.mxu0 }
 0x16f   :  { %v311_v28 = vpop.f32.mrf.mxu2 }
 0x177   :  { %v371_v31 = vpop.f32.mrf.mxu2 }
 0x178   :  { %v372_v32 = vadd.f32 %v371_v31, %v294_v29 }
 0x17a   :  { %v559_v34 = vadd.f32 %v539_v27, %v372_v32 }
 0x17c   :  { %v571_v39 = vadd.f32 %v1455_v35, %v559_v34 }
 0x17e   :  { %v579_v43 = vmax.f32 %v571_v39, 0.0  ;;  %v1423_v39 = vld [vmem:[#allocation6 + $0x40] sm:$0xff] }
 0x17f   :  { %v373_v37 = vpop.f32.mrf.mxu2 }
 0x180   :  { %v374_v38 = vadd.f32 %v373_v37, %v296_v33  ;;  %v1424_v37 = vld [vmem:[#allocation6 + $0x48] sm:$0xff] }
 0x182   :  { %v560_v40 = vadd.f32 %v541_v30, %v374_v38  ;;  %v556_v30 = vpop.f32.mrf.mxu0  ;;  %v1416_v38 = vld [vmem:[#allocation6 + $0x8] sm:$0xff] }
 0x184   :  { %v572_v41 = vadd.f32 %v1455_v35, %v560_v40  ;;  %v1415_v40 = vld [vmem:[#allocation6] sm:$0xff] }
 0x186   :  { %v580_v44 = vmax.f32 %v572_v41, 0.0 }
 0x187   :  { %v376_v45 = vpop.f32.mrf.mxu2 }
 0x188   :  { %v587_v46 = vpack.c.bf16 %v580_v44, %v579_v43  ;;  %v377_v48 = vadd.f32 %v376_v45, %v299_v42 }
 0x18a   :  { %790 = vmatmul.bf16.vlgmr.msra.gmra.mxu2 %v587_v46  ;;  %v561_v49 = vadd.f32 %v544_v36, %v377_v48  ;;  %v1417_v36 = vld [vmem:[#allocation6 + $0x10] sm:$0xff]  ;;  %v1438_v48 = vld [vmem:[#allocation9 + $0x38] sm:$0xff] }
 0x18c   :  { %v573_v53 = vadd.f32 %v1455_v35, %v561_v49  ;;  %v1437_v49 = vld [vmem:[#allocation9 + $0x30] sm:$0xff] }
 0x18e   :  { %v581_v57 = vmax.f32 %v573_v53, 0.0 }
 0x18f   :  { %v378_v51 = vpop.f32.mrf.mxu2 }
 0x190   :  { %v379_v52 = vadd.f32 %v378_v51, %v301_v50 }
 0x192   :  { %v562_v54 = vadd.f32 %v546_v47, %v379_v52  ;;  %v1436_v52 = vld [vmem:[#allocation9 + $0x28] sm:$0xff] }
 0x194   :  { %v574_v56 = vadd.f32 %v1455_v35, %v562_v54  ;;  %v1435_v54 = vld [vmem:[#allocation9 + $0x20] sm:$0xff] }
 0x196   :  { %v582_v58 = vmax.f32 %v574_v56, 0.0 }
 0x197   :  { %v381_v59 = vpop.f32.mrf.mxu2 }
 0x198   :  { %v588_v60 = vpack.c.bf16 %v582_v58, %v581_v57  ;;  %v382_v61 = vadd.f32 %v381_v59, %v304_v17  ;;  %v1434_v58 = vld [vmem:[#allocation9 + $0x18] sm:$0xff]  ;;  %v1433_v59 = vld [vmem:[#allocation9 + $0x10] sm:$0xff] }
 0x19a   :  { %795 = vmatmul.bf16.gmra.mxu2 %v588_v60  ;;  %v563_v63 = vadd.f32 %v549_v55, %v382_v61  ;;  %v1432_v61 = vld [vmem:[#allocation9 + $0x8] sm:$0xff] }
 0x19c   :  { %v575_v2 = vadd.f32 %v1455_v35, %v563_v63 }
 0x19e   :  { %v583_v7 = vmax.f32 %v575_v2, 0.0 }
 0x19f   :  { %v383_v0 = vpop.f32.mrf.mxu2 }
 0x1a0   :  { %v384_v1 = vadd.f32 %v383_v0, %v306_v21  ;;  %v1431_v0 = vld [vmem:[#allocation9] sm:$0xff] }
 0x1a2   :  { %v564_v4 = vadd.f32 %v551_v62, %v384_v1 }
 0x1a4   :  { %v576_v6 = vadd.f32 %v1455_v35, %v564_v4 }
 0x1a6   :  { %v584_v9 = vmax.f32 %v576_v6, 0.0 }
 0x1a7   :  { %v386_v18 = vpop.f32.mrf.mxu2 }
 0x1a8   :  { %v589_v19 = vpack.c.bf16 %v584_v9, %v583_v7  ;;  %v387_v23 = vadd.f32 %v386_v18, %v309_v26  ;;  %v1429_v26 = vld [vmem:[#allocation6 + $0x70] sm:$0xff] }
 0x1aa   :  { %800 = vmatmul.bf16.gmra.mxu2 %v589_v19  ;;  %v565_v25 = vadd.f32 %v554_v10, %v387_v23 }
 0x1ac   :  { %v577_v17 = vadd.f32 %v1455_v35, %v565_v25 }
 0x1ae   :  { %v585_v33 = vmax.f32 %v577_v17, 0.0 }
 0x1af   :  { %v388_v27 = vpop.f32.mrf.mxu2 }
 0x1b0   :  { %v389_v29 = vadd.f32 %v388_v27, %v311_v28  ;;  %v1427_v28 = vld [vmem:[#allocation6 + $0x60] sm:$0xff] }
 0x1b2   :  { %v566_v31 = vadd.f32 %v556_v30, %v389_v29 }
 0x1b4   :  { %v578_v32 = vadd.f32 %v1455_v35, %v566_v31  ;;  %v1426_v35 = vld [vmem:[#allocation6 + $0x58] sm:$0xff] }
 0x1b6   :  { %v586_v34 = vmax.f32 %v578_v32, 0.0 }
 0x1b8   :  { %v590_v21 = vpack.c.bf16 %v586_v34, %v585_v33 }
 0x1ba   :  { %612 = vmatpush.bf16.msrb.mxu3 %v590_v21  ;;  %805 = vmatmul.bf16.gmra.mxu2 %v590_v21 }
 0x1bb   :  { %815 = vmatpush.bf16.msra.mxu0 %v590_v21 }
 0x1be   :  { %613 = vmatpush.bf16.msrb.mxu3 %v589_v19 }
 0x1bf   :  { %816 = vmatpush.bf16.msra.mxu0 %v589_v19 }
 0x1c2   :  { %614 = vmatpush.bf16.msrb.mxu3 %v588_v60 }
 0x1c3   :  { %817 = vmatpush.bf16.msra.mxu0 %v588_v60 }
 0x1c6   :  { %615 = vmatpush.bf16.msrb.mxu3 %v587_v46 }
 0x1c7   :  { %818 = vmatpush.bf16.msra.mxu0 %v587_v46 }
 0x1c9   :  { %1239 = vmatmul.msk.bf16.vlgmr.msrb.gmra.mxu3 %vm175_vm0, %v1722_v12  ;;  %v1430_v12 = vld [vmem:[#allocation6 + $0x78] sm:$0xff] }
 0x1ca   :  { %1307 = vmatmul.msk.bf16.vlgmr.msra.gmra.mxu0 %vm175_vm0, %v1738_v14  ;;  %909 = vmatpush.bf16.msra.mxu3 %v1430_v12  ;;  %v1422_v14 = vld [vmem:[#allocation6 + $0x38] sm:$0xff] }
 0x1cb   :  { %705 = vmatpush.bf16.msrb.mxu1 %v1422_v14 }
 0x1ce   :  { %910 = vmatpush.bf16.msra.mxu3 %v1429_v26 }
 0x1d9   :  { %1240 = vmatmul.msk.bf16.gmra.mxu3 %vm175_vm0, %v1731_v13  ;;  %v1421_v13 = vld [vmem:[#allocation6 + $0x30] sm:$0xff] }
 0x1da   :  { %1308 = vmatmul.msk.bf16.gmra.mxu0 %vm175_vm0, %v1750_v16  ;;  %v1428_v16 = vld [vmem:[#allocation6 + $0x68] sm:$0xff]  ;;  %706 = vmatpush.bf16.msrb.mxu1 %v1421_v13  ;;  %v1806_v13 = vld [vmem:[#allocation10] ss:$0 sm:$0xff] }
 0x1db   :  { %911 = vmatpush.bf16.msra.mxu3 %v1428_v16 }
 0x1df   :  { %912 = vmatpush.bf16.msra.mxu3 %v1427_v28 }
 0x1e3   :  { %913 = vmatpush.bf16.msra.mxu3 %v1426_v35 }
 0x1e9   :  { %1241 = vmatmul.msk.bf16.gmra.mxu3 %vm175_vm0, %v1745_v15  ;;  %v1420_v15 = vld [vmem:[#allocation6 + $0x28] sm:$0xff] }
 0x1ea   :  { %1309 = vmatmul.msk.bf16.gmra.mxu0 %vm175_vm0, %v1764_v22  ;;  %707 = vmatpush.bf16.msrb.mxu1 %v1420_v15  ;;  %v1419_v22 = vld [vmem:[#allocation6 + $0x20] sm:$0xff] }
 0x1ee   :  { %708 = vmatpush.bf16.msrb.mxu1 %v1419_v22 }
 0x1f9   :  { %1242 = vmatmul.msk.bf16.gmra.mxu3 %vm175_vm0, %v1759_v20  ;;  %v1418_v20 = vld [vmem:[#allocation6 + $0x18] sm:$0xff] }
 0x1fa   :  { %1310 = vmatmul.msk.bf16.gmra.mxu0 %vm175_vm0, %v1773_v24  ;;  %709 = vmatpush.bf16.msrb.mxu1 %v1418_v20  ;;  %v1425_v24 = vld [vmem:[#allocation6 + $0x50] sm:$0xff] }
 0x1fb   :  { %914 = vmatpush.bf16.msra.mxu3 %v1425_v24 }
 0x1fe   :  { %710 = vmatpush.bf16.msrb.mxu1 %v1417_v36 }
 0x1ff   :  { %915 = vmatpush.bf16.msra.mxu3 %v1424_v37 }
 0x202   :  { %711 = vmatpush.bf16.msrb.mxu1 %v1416_v38 }
 0x203   :  { %916 = vmatpush.bf16.msra.mxu3 %v1423_v39 }
 0x206   :  { %712 = vmatpush.bf16.msrb.mxu1 %v1415_v40 }
 0x20a   :  { %1034 = vmatpush.bf16.msra.mxu1 %v1438_v48 }
 0x20d   :  { %v791_v30 = vpop.f32.mrf.mxu2 }
 0x20e   :  { %1035 = vmatpush.bf16.msra.mxu1 %v1437_v49 }
 0x212   :  { %1036 = vmatpush.bf16.msra.mxu1 %v1436_v52 }
 0x215   :  { %v793_v32 = vpop.f32.mrf.mxu2 }
 0x216   :  { %1037 = vmatpush.bf16.msra.mxu1 %v1435_v54 }
 0x21a   :  { %1038 = vmatpush.bf16.msra.mxu1 %v1434_v58 }
 0x21e   :  { %1039 = vmatpush.bf16.msra.mxu1 %v1433_v59 }
 0x222   :  { %1040 = vmatpush.bf16.msra.mxu1 %v1432_v61 }
 0x226   :  { %1041 = vmatpush.bf16.msra.mxu1 %v1431_v0 }
 0x247   :  { %v820_v41 = vpop.f32.mrf.mxu0 }
 0x24c   :  { %v617_v42 = vpop.f32.mrf.mxu3 }
 0x24f   :  { %v822_v43 = vpop.f32.mrf.mxu0 }
 0x250   :  { %v840_v44 = vpack.c.bf16 %v822_v43, %v820_v41 }
 0x252   :  { %917 = vmatmul.bf16.vlgmr.msra.gmra.mxu3 %v840_v44 }
 0x254   :  { %v619_v45 = vpop.f32.mrf.mxu3 }
 0x255   :  { %v637_v46 = vpack.c.bf16 %v619_v45, %v617_v42 }
 0x257   :  { %713 = vmatmul.bf16.vlgmr.msrb.gmra.mxu1 %v637_v46  ;;  %v825_v47 = vpop.f32.mrf.mxu0 }
 0x25c   :  { %v622_v50 = vpop.f32.mrf.mxu3 }
 0x25f   :  { %v827_v51 = vpop.f32.mrf.mxu0 }
 0x260   :  { %v841_v53 = vpack.c.bf16 %v827_v51, %v825_v47 }
 0x262   :  { %922 = vmatmul.bf16.gmra.mxu3 %v841_v53 }
 0x264   :  { %v624_v55 = vpop.f32.mrf.mxu3 }
 0x265   :  { %v638_v56 = vpack.c.bf16 %v624_v55, %v622_v50 }
 0x267   :  { %718 = vmatmul.bf16.gmra.mxu1 %v638_v56  ;;  %v830_v57 = vpop.f32.mrf.mxu0 }
 0x26c   :  { %v627_v60 = vpop.f32.mrf.mxu3 }
 0x26f   :  { %v832_v62 = vpop.f32.mrf.mxu0 }
 0x270   :  { %v842_v63 = vpack.c.bf16 %v832_v62, %v830_v57 }
 0x272   :  { %927 = vmatmul.bf16.gmra.mxu3 %v842_v63 }
 0x274   :  { %v629_v1 = vpop.f32.mrf.mxu3 }
 0x275   :  { %v639_v2 = vpack.c.bf16 %v629_v1, %v627_v60 }
 0x277   :  { %723 = vmatmul.bf16.gmra.mxu1 %v639_v2  ;;  %v835_v4 = vpop.f32.mrf.mxu0 }
 0x27c   :  { %v632_v6 = vpop.f32.mrf.mxu3 }
 0x27f   :  { %v837_v7 = vpop.f32.mrf.mxu0 }
 0x280   :  { %v843_v9 = vpack.c.bf16 %v837_v7, %v835_v4 }
 0x282   :  { %932 = vmatmul.bf16.gmra.mxu3 %v843_v9 }
 0x284   :  { %v634_v10 = vpop.f32.mrf.mxu3 }
 0x285   :  { %v640_v18 = vpack.c.bf16 %v634_v10, %v632_v6 }
 0x287   :  { %728 = vmatmul.bf16.gmra.mxu1 %v640_v18 }
 0x297   :  { %1042 = vmatmul.bf16.vlgmr.msra.gmra.mxu1 %v1716_v11 }
 0x2a7   :  { %1047 = vmatmul.bf16.gmra.mxu1 %v1706_v8  ;;  %v1803_v8 = vld [vmem:[#allocation7] ss:$0 sm:$0xff] }
 0x2b7   :  { %1052 = vmatmul.bf16.gmra.mxu1 %v1696_v5  ;;  %v796_v5 = vpop.f32.mrf.mxu2 }
 0x2bf   :  { %v798_v20 = vpop.f32.mrf.mxu2 }
 0x2c7   :  { %1057 = vmatmul.bf16.gmra.mxu1 %v1690_v3  ;;  %v801_v47 = vpop.f32.mrf.mxu2 }
 0x2cf   :  { %v803_v57 = vpop.f32.mrf.mxu2 }
 0x2d4   :  { %v714_v19 = vpop.f32.mrf.mxu1 }
 0x2d5   :  { %v918_v17 = vpop.f32.mrf.mxu3  ;;  %v792_v21 = vadd.f32 %v791_v30, %v714_v19 }
 0x2d7   :  { %v938_v11 = vadd.f32 %v918_v17, %v792_v21  ;;  %v806_v10 = vpop.f32.mrf.mxu2 }
 0x2d9   :  { %v950_v3 = vadd.f32 %v1803_v8, %v938_v11 }
 0x2db   :  { %v958_v15 = vmax.f32 %v950_v3, 0.0 }
 0x2dc   :  { %v716_v23 = vpop.f32.mrf.mxu1 }
 0x2dd   :  { %v920_v34 = vpop.f32.mrf.mxu3  ;;  %v794_v26 = vadd.f32 %v793_v32, %v716_v23 }
 0x2df   :  { %v939_v28 = vadd.f32 %v920_v34, %v794_v26  ;;  %v808_v34 = vpop.f32.mrf.mxu2 }
 0x2e1   :  { %v951_v24 = vadd.f32 %v1803_v8, %v939_v28 }
 0x2e3   :  { %v959_v40 = vmax.f32 %v951_v24, 0.0 }
 0x2e4   :  { %v719_v25 = vpop.f32.mrf.mxu1 }
 0x2e5   :  { %v923_v14 = vpop.f32.mrf.mxu3  ;;  %v797_v36 = vadd.f32 %v796_v5, %v719_v25 }
 0x2e7   :  { %v940_v41 = vadd.f32 %v923_v14, %v797_v36 }
 0x2e9   :  { %v952_v44 = vadd.f32 %v1803_v8, %v940_v41 }
 0x2eb   :  { %v960_v50 = vmax.f32 %v952_v44, 0.0 }
 0x2ec   :  { %v721_v27 = vpop.f32.mrf.mxu1 }
 0x2ed   :  { %v925_v38 = vpop.f32.mrf.mxu3  ;;  %v799_v45 = vadd.f32 %v798_v20, %v721_v27 }
 0x2ef   :  { %v941_v51 = vadd.f32 %v925_v38, %v799_v45 }
 0x2f1   :  { %v953_v54 = vadd.f32 %v1803_v8, %v941_v51 }
 0x2f3   :  { %v961_v59 = vmax.f32 %v953_v54, 0.0 }
 0x2f4   :  { %v724_v29 = vpop.f32.mrf.mxu1 }
 0x2f5   :  { %v928_v48 = vpop.f32.mrf.mxu3  ;;  %v802_v55 = vadd.f32 %v801_v47, %v724_v29 }
 0x2f7   :  { %v942_v60 = vadd.f32 %v928_v48, %v802_v55 }
 0x2f9   :  { %v954_v0 = vadd.f32 %v1803_v8, %v942_v60 }
 0x2fb   :  { %v962_v6 = vmax.f32 %v954_v0, 0.0 }
 0x2fc   :  { %v726_v31 = vpop.f32.mrf.mxu1 }
 0x2fd   :  { %v930_v62 = vpop.f32.mrf.mxu3  ;;  %v804_v1 = vadd.f32 %v803_v57, %v726_v31 }
 0x2ff   :  { %v943_v7 = vadd.f32 %v930_v62, %v804_v1 }
 0x301   :  { %v955_v23 = vadd.f32 %v1803_v8, %v943_v7 }
 0x303   :  { %v963_v30 = vmax.f32 %v955_v23, 0.0 }
 0x304   :  { %v729_v33 = vpop.f32.mrf.mxu1 }
 0x305   :  { %v933_v19 = vpop.f32.mrf.mxu3  ;;  %v807_v25 = vadd.f32 %v806_v10, %v729_v33 }
 0x307   :  { %v944_v17 = vadd.f32 %v933_v19, %v807_v25 }
 0x309   :  { %v956_v21 = vadd.f32 %v1803_v8, %v944_v17 }
 0x30b   :  { %v964_v3 = vmax.f32 %v956_v21, 0.0 }
 0x30c   :  { %v1801_v12 = vpop.f32.mrf.mxu1 }
 0x30d   :  { %v809_v11 = vadd.f32 %v808_v34, %v1801_v12  ;;  %v935_v14 = vpop.f32.mrf.mxu3 }
 0x30f   :  { %v945_v26 = vadd.f32 %v935_v14, %v809_v11 }
 0x311   :  { %v957_v28 = vadd.f32 %v1803_v8, %v945_v26 }
 0x314   :  { %v1043_v16 = vpop.f32.mrf.mxu1 }
 0x315   :  { %v1044_v22 = vadd.f32 %v1806_v13, %v1043_v16 }
 0x317   :  { %v1063_v35 = vadd.f32 %v1044_v22, %v958_v15 }
 0x319   :  { %v1071_v37 = vmax.f32 %v1063_v35, 0.0  ;;  %v965_v35 = vmax.f32 %v957_v28, 0.0 }
 0x31b   :  { %1079 = vst [vmem:[%s1856_s8] sm:$0xff] %v1071_v37 }
 0x31c   :  { %v1045_v39 = vpop.f32.mrf.mxu1 }
 0x31d   :  { %v1046_v42 = vadd.f32 %v1806_v13, %v1045_v39 }
 0x31f   :  { %v1064_v43 = vadd.f32 %v1046_v42, %v959_v40 }
 0x321   :  { %v1072_v46 = vmax.f32 %v1064_v43, 0.0 }
 0x323   :  { %1080 = vst [vmem:[%s1856_s8 + $0x8] sm:$0xff] %v1072_v46 }
 0x324   :  { %v1048_v49 = vpop.f32.mrf.mxu1 }
 0x325   :  { %v1049_v52 = vadd.f32 %v1806_v13, %v1048_v49 }
 0x327   :  { %v1065_v53 = vadd.f32 %v1049_v52, %v960_v50 }
 0x329   :  { %v1073_v56 = vmax.f32 %v1065_v53, 0.0 }
 0x32b   :  { %1081 = vst [vmem:[%s1856_s8 + $0x10] sm:$0xff] %v1073_v56 }
 0x32c   :  { %v1050_v58 = vpop.f32.mrf.mxu1 }
 0x32d   :  { %v1051_v61 = vadd.f32 %v1806_v13, %v1050_v58 }
 0x32f   :  { %v1066_v63 = vadd.f32 %v1051_v61, %v961_v59 }
 0x331   :  { %v1074_v2 = vmax.f32 %v1066_v63, 0.0 }
 0x333   :  { %1082 = vst [vmem:[%s1856_s8 + $0x18] sm:$0xff] %v1074_v2 }
 0x334   :  { %v1053_v4 = vpop.f32.mrf.mxu1 }
 0x335   :  { %v1054_v9 = vadd.f32 %v1806_v13, %v1053_v4 }
 0x337   :  { %v1067_v18 = vadd.f32 %v1054_v9, %v962_v6 }
 0x339   :  { %v1075_v27 = vmax.f32 %v1067_v18, 0.0 }
 0x33b   :  { %1083 = vst [vmem:[%s1856_s8 + $0x20] sm:$0xff] %v1075_v27 }
 0x33c   :  { %v1055_v29 = vpop.f32.mrf.mxu1 }
 0x33d   :  { %v1056_v31 = vadd.f32 %v1806_v13, %v1055_v29 }
 0x33f   :  { %v1068_v32 = vadd.f32 %v1056_v31, %v963_v30 }
 0x341   :  { %v1076_v5 = vmax.f32 %v1068_v32, 0.0 }
 0x343   :  { %1084 = vst [vmem:[%s1856_s8 + $0x28] sm:$0xff] %v1076_v5 }
 0x344   :  { %v1058_v33 = vpop.f32.mrf.mxu1 }
 0x345   :  { %v1059_v16 = vadd.f32 %v1806_v13, %v1058_v33 }
 0x347   :  { %v1069_v15 = vadd.f32 %v1059_v16, %v964_v3 }
 0x349   :  { %v1077_v22 = vmax.f32 %v1069_v15, 0.0 }
 0x34b   :  { %1085 = vst [vmem:[%s1856_s8 + $0x30] sm:$0xff] %v1077_v22 }
 0x34c   :  { %v1060_v12 = vpop.f32.mrf.mxu1 }
 0x34d   :  { %v1061_v20 = vadd.f32 %v1806_v13, %v1060_v12 }
 0x34f   :  { %v1070_v24 = vadd.f32 %v1061_v20, %v965_v35 }
 0x351   :  { %v1078_v36 = vmax.f32 %v1070_v24, 0.0 }
 0x353   :  { %1086 = vst [vmem:[%s1856_s8 + $0x38] sm:$0xff] %v1078_v36 }
 0x354   :  { %1091 = vsyncpa [#allocation3], 1 }
 0x355   :  { %1092 = vsyncpa [#allocation5], 1 }
 0x356   :  { %1093 = vsyncpa [#allocation8], 1 }
 0x357   :  { %1094 = vsyncpa [#allocation11], 1 }

// kernel: _lambda_.14
= control target key start
LH: loop header
LB: loop body
LE: loop exit
PB: predicated region body
PF: predicated region fallthrough
CT: control target
= control target key end

     0   :  { %8 = vsyncpa [#allocation3], 0  ;;  %s267_s0 = inlined_call_operand.vmem [shape: f32[8,128], index: 0, kind: input, shape index: {}]   ;;  %s268_s1 = inlined_call_operand.hbm [shape: bf16[128,128], index: 1, kind: input, shape index: {}]   ;;  %s269_s2 = inlined_call_operand.hbm [shape: f32[1,128], index: 2, kind: input, shape index: {}]   ;;  %s270_s3 = inlined_call_operand.vmem [shape: f32[8,128], index: 3, kind: output, shape index: {}]  }
   0x1   :  { %s16_s14 = sshll.u32 %s268_s1, 4  ;;  %s17_s14 = int_to_ptr.hbm [resolvable:$true] %s16_s14 }
   0x2   :  { %9 = vsyncpa [#allocation5], 0  ;;  %s231_s15 = smov [#allocation2]   ;;  %s30_s19 = sshll.u32 %s269_s2, 4  ;;  %s31_s19 = int_to_ptr.hbm [resolvable:$true] %s30_s19 }
   0x3   :  { %s18_s16 = sshll.u32 %s231_s15, 4  ;;  %s232_s20 = smov 64   ;;  %s19_s16 = int_to_ptr.vmem [resolvable:$true] %s18_s16 }
   0x4   :  { %s233_s21 = smov 4   ;;  %s234_s22 = smov [#allocation4]  }
   0x5   :  { %24 = dma.hbm_to_vmem [thread:$0]  %s17_s14, 1024, %s19_s16, [#allocation3], %s232_s20, %s232_s20, %s233_s21  }
   0x6   :  { %s32_s23 = sshll.u32 %s234_s22, 4  ;;  %s33_s23 = int_to_ptr.vmem [resolvable:$true] %s32_s23 }
   0x7   :  { %35 = dma.hbm_to_vmem [thread:$0]  %s31_s19, 16, %s33_s23, [#allocation5]  }
   0x8   :  { %227 = dma.done.wait [#allocation3], 1024  }
   0x9   :  { %228 = vsyncadd [#allocation3], 4294966272 }
   0xa   :  { %229 = dma.done.wait [#allocation5], 16  }
   0xb   :  { %230 = vsyncadd [#allocation5], 4294967280  ;;  %v173_v0 = vld [vmem:[#allocation2 + $0x38] sm:$0xff]  ;;  %v172_v1 = vld [vmem:[#allocation2 + $0x30] sm:$0xff] }
   0xc   :  { %114 = vmatpush.bf16.msra.mxu0 %v173_v0  ;;  %v171_v2 = vld [vmem:[#allocation2 + $0x28] sm:$0xff]  ;;  %v170_v3 = vld [vmem:[#allocation2 + $0x20] sm:$0xff]  ;;  %v169_v4 = vld [vmem:[#allocation2 + $0x18] sm:$0xff] }
   0xd   :  { %v168_v5 = vld [vmem:[#allocation2 + $0x10] sm:$0xff]  ;;  %v167_v6 = vld [vmem:[#allocation2 + $0x8] sm:$0xff]  ;;  %v166_v7 = vld [vmem:[#allocation2] sm:$0xff] }
   0xe   :  { %v44_v8 = vld [vmem:[%s267_s0] sm:$0xff] }
   0xf   :  { %v45_v9 = vpack.c.bf16 %v44_v8, %v44_v8  ;;  %v178_v10 = vld [vmem:[#allocation4] ss:$0 sm:$0xff] }
  0x10   :  { %115 = vmatpush.bf16.msra.mxu0 %v172_v1 }
  0x14   :  { %116 = vmatpush.bf16.msra.mxu0 %v171_v2 }
  0x18   :  { %117 = vmatpush.bf16.msra.mxu0 %v170_v3 }
  0x1c   :  { %118 = vmatpush.bf16.msra.mxu0 %v169_v4 }
  0x20   :  { %119 = vmatpush.bf16.msra.mxu0 %v168_v5 }
  0x24   :  { %120 = vmatpush.bf16.msra.mxu0 %v167_v6 }
  0x28   :  { %121 = vmatpush.bf16.msra.mxu0 %v166_v7 }
  0x2b   :  { %122 = vmatmul.bf16.vlgmr.msra.gmra.mxu0 %v45_v9 }
  0xa8   :  { %v123_v11 = vpop.f32.mrf.mxu0 }
  0xa9   :  { %v124_v12 = vadd.f32 %v178_v10, %v123_v11 }
  0xab   :  { %127 = vst [vmem:[%s270_s3] sm:$0xff] %v124_v12 }
  0xb0   :  { %v125_v13 = vpop.f32.mrf.mxu0 }
  0xb1   :  { %132 = vsyncpa [#allocation3], 1 }
  0xb2   :  { %133 = vsyncpa [#allocation5], 1 }

// kernel: _lambda_.16
= control target key start
LH: loop header
LB: loop body
LE: loop exit
PB: predicated region body
PF: predicated region fallthrough
CT: control target
= control target key end

     0   :  { %10 = vsyncpa [#allocation3], 0  ;;  %s497_s0 = inlined_call_operand.vmem [shape: f32[8,128], index: 0, kind: input, shape index: {}]   ;;  %s498_s1 = inlined_call_operand.hbm [shape: bf16[128,128], index: 1, kind: input, shape index: {}]   ;;  %s499_s2 = inlined_call_operand.hbm [shape: f32[1,128], index: 2, kind: input, shape index: {}]   ;;  %s500_s3 = inlined_call_operand.hbm [shape: bf16[128,128], index: 3, kind: input, shape index: {}]   ;;  %s501_s4 = inlined_call_operand.hbm [shape: f32[1,128], index: 4, kind: input, shape index: {}]   ;;  %s502_s5 = inlined_call_operand.vmem [shape: f32[8,128], index: 5, kind: output, shape index: {}]  }
   0x1   :  { %11 = vsyncpa [#allocation5], 0  ;;  %s33_s20 = sshll.u32 %s499_s2, 4  ;;  %s34_s20 = int_to_ptr.hbm [resolvable:$true] %s33_s20 }
   0x2   :  { %12 = vsyncpa [#allocation8], 0  ;;  %s443_s21 = smov [#allocation4]   ;;  %s19_s25 = sshll.u32 %s498_s1, 4  ;;  %s20_s25 = int_to_ptr.hbm [resolvable:$true] %s19_s25 }
   0x3   :  { %s35_s22 = sshll.u32 %s443_s21, 4  ;;  %s444_s26 = smov [#allocation2]   ;;  %s36_s22 = int_to_ptr.vmem [resolvable:$true] %s35_s22 }
   0x4   :  { %38 = dma.hbm_to_vmem [thread:$0]  %s34_s20, 16, %s36_s22, [#allocation5]  }
   0x5   :  { %s21_s27 = sshll.u32 %s444_s26, 4  ;;  %s445_s28 = smov 64   ;;  %s22_s27 = int_to_ptr.vmem [resolvable:$true] %s21_s27 }
   0x6   :  { %s446_s29 = smov 4   ;;  %s43_s2 = sshll.u32 %s500_s3, 4  ;;  %s44_s2 = int_to_ptr.hbm [resolvable:$true] %s43_s2 }
   0x7   :  { %27 = dma.hbm_to_vmem [thread:$0]  %s20_s25, 1024, %s22_s27, [#allocation3], %s445_s28, %s445_s28, %s446_s29  }
   0x8   :  { %s447_s7 = smov [#allocation6]   ;;  %s57_s1 = sshll.u32 %s501_s4, 4  ;;  %s58_s1 = int_to_ptr.hbm [resolvable:$true] %s57_s1 }
   0x9   :  { %s45_s8 = sshll.u32 %s447_s7, 4  ;;  %s448_s11 = smov [#allocation7]   ;;  %s46_s8 = int_to_ptr.vmem [resolvable:$true] %s45_s8 }
   0xa   :  { %51 = dma.hbm_to_vmem [thread:$0]  %s44_s2, 1024, %s46_s8, [#allocation5], %s445_s28, %s445_s28, %s446_s29  }
   0xb   :  { %s59_s12 = sshll.u32 %s448_s11, 4  ;;  %s60_s12 = int_to_ptr.vmem [resolvable:$true] %s59_s12 }
   0xc   :  { %62 = dma.hbm_to_vmem [thread:$0]  %s58_s1, 16, %s60_s12, [#allocation8]  }
   0xd   :  { %437 = dma.done.wait [#allocation3], 1024  }
   0xe   :  { %438 = vsyncadd [#allocation3], 4294966272 }
   0xf   :  { %439 = dma.done.wait [#allocation5], 1040  }
  0x10   :  { %440 = vsyncadd [#allocation5], 4294966256 }
  0x11   :  { %441 = dma.done.wait [#allocation8], 16  }
  0x12   :  { %442 = vsyncadd [#allocation8], 4294967280  ;;  %v324_v0 = vld [vmem:[#allocation2 + $0x38] sm:$0xff]  ;;  %v323_v1 = vld [vmem:[#allocation2 + $0x30] sm:$0xff] }
  0x13   :  { %149 = vmatpush.bf16.msra.mxu0 %v324_v0  ;;  %v332_v2 = vld [vmem:[#allocation6 + $0x38] sm:$0xff]  ;;  %v331_v3 = vld [vmem:[#allocation6 + $0x30] sm:$0xff]  ;;  %v322_v4 = vld [vmem:[#allocation2 + $0x28] sm:$0xff] }
  0x14   :  { %232 = vmatpush.bf16.msra.mxu1 %v332_v2  ;;  %v330_v5 = vld [vmem:[#allocation6 + $0x28] sm:$0xff]  ;;  %v321_v6 = vld [vmem:[#allocation2 + $0x20] sm:$0xff]  ;;  %v320_v8 = vld [vmem:[#allocation2 + $0x18] sm:$0xff] }
  0x15   :  { %v329_v7 = vld [vmem:[#allocation6 + $0x20] sm:$0xff]  ;;  %v328_v9 = vld [vmem:[#allocation6 + $0x18] sm:$0xff]  ;;  %v319_v10 = vld [vmem:[#allocation2 + $0x10] sm:$0xff] }
  0x16   :  { %v327_v11 = vld [vmem:[#allocation6 + $0x10] sm:$0xff]  ;;  %v318_v12 = vld [vmem:[#allocation2 + $0x8] sm:$0xff]  ;;  %v317_v13 = vld [vmem:[#allocation2] sm:$0xff] }
  0x17   :  { %150 = vmatpush.bf16.msra.mxu0 %v323_v1  ;;  %v79_v14 = vld [vmem:[%s497_s0] sm:$0xff]  ;;  %v326_v16 = vld [vmem:[#allocation6 + $0x8] sm:$0xff] }
  0x18   :  { %233 = vmatpush.bf16.msra.mxu1 %v331_v3  ;;  %v80_v15 = vpack.c.bf16 %v79_v14, %v79_v14  ;;  %v325_v17 = vld [vmem:[#allocation6] sm:$0xff]  ;;  %v339_v18 = vld [vmem:[#allocation4] ss:$0 sm:$0xff] }
  0x19   :  { %v340_v24 = vld [vmem:[#allocation7] ss:$0 sm:$0xff] }
  0x1b   :  { %151 = vmatpush.bf16.msra.mxu0 %v322_v4 }
  0x1c   :  { %234 = vmatpush.bf16.msra.mxu1 %v330_v5 }
  0x1f   :  { %152 = vmatpush.bf16.msra.mxu0 %v321_v6 }
  0x20   :  { %235 = vmatpush.bf16.msra.mxu1 %v329_v7 }
  0x23   :  { %153 = vmatpush.bf16.msra.mxu0 %v320_v8 }
  0x24   :  { %236 = vmatpush.bf16.msra.mxu1 %v328_v9 }
  0x27   :  { %154 = vmatpush.bf16.msra.mxu0 %v319_v10 }
  0x28   :  { %237 = vmatpush.bf16.msra.mxu1 %v327_v11 }
  0x2b   :  { %155 = vmatpush.bf16.msra.mxu0 %v318_v12 }
  0x2c   :  { %238 = vmatpush.bf16.msra.mxu1 %v326_v16 }
  0x2f   :  { %156 = vmatpush.bf16.msra.mxu0 %v317_v13 }
  0x30   :  { %239 = vmatpush.bf16.msra.mxu1 %v325_v17 }
  0x32   :  { %157 = vmatmul.bf16.vlgmr.msra.gmra.mxu0 %v80_v15 }
  0xaf   :  { %v158_v19 = vpop.f32.mrf.mxu0 }
  0xb0   :  { %v159_v20 = vadd.f32 %v339_v18, %v158_v19 }
  0xb2   :  { %v162_v21 = vmax.f32 %v159_v20, 0.0 }
  0xb4   :  { %v163_v22 = vpack.c.bf16 %v162_v21, %v162_v21 }
  0xb6   :  { %240 = vmatmul.bf16.vlgmr.msra.gmra.mxu1 %v163_v22 }
  0xb7   :  { %v160_v23 = vpop.f32.mrf.mxu0 }
 0x133   :  { %v241_v25 = vpop.f32.mrf.mxu1 }
 0x134   :  { %v242_v26 = vadd.f32 %v340_v24, %v241_v25 }
 0x136   :  { %245 = vst [vmem:[%s502_s5] sm:$0xff] %v242_v26 }
 0x13b   :  { %v243_v27 = vpop.f32.mrf.mxu1 }
 0x13c   :  { %250 = vsyncpa [#allocation3], 1 }
 0x13d   :  { %251 = vsyncpa [#allocation5], 1 }
 0x13e   :  { %252 = vsyncpa [#allocation8], 1 }

// kernel: _lambda_.18
= control target key start
LH: loop header
LB: loop body
LE: loop exit
PB: predicated region body
PF: predicated region fallthrough
CT: control target
= control target key end

     0   :  { %8 = vsyncpa [#allocation3], 0  ;;  %s391_s0 = inlined_call_operand.vmem [shape: f32[2,256], index: 0, kind: input, shape index: {}]   ;;  %s392_s1 = inlined_call_operand.hbm [shape: bf16[256,128], index: 1, kind: input, shape index: {}]   ;;  %s393_s2 = inlined_call_operand.hbm [shape: f32[1,128], index: 2, kind: input, shape index: {}]   ;;  %s394_s3 = inlined_call_operand.vmem [shape: f32[2,128], index: 3, kind: output, shape index: {}]  }
   0x1   :  { %s16_s14 = sshll.u32 %s392_s1, 4  ;;  %s17_s14 = int_to_ptr.hbm [resolvable:$true] %s16_s14 }
   0x2   :  { %9 = vsyncpa [#allocation5], 0  ;;  %s355_s15 = smov [#allocation2]   ;;  %s30_s19 = sshll.u32 %s393_s2, 4  ;;  %s31_s19 = int_to_ptr.hbm [resolvable:$true] %s30_s19 }
   0x3   :  { %s18_s16 = sshll.u32 %s355_s15, 4  ;;  %s356_s20 = smov 64   ;;  %s19_s16 = int_to_ptr.vmem [resolvable:$true] %s18_s16 }
   0x4   :  { %s357_s21 = smov 4   ;;  %s358_s22 = smov [#allocation4]  }
   0x5   :  { %24 = dma.hbm_to_vmem [thread:$0]  %s17_s14, 2048, %s19_s16, [#allocation3], %s356_s20, %s356_s20, %s357_s21  }
   0x6   :  { %s32_s23 = sshll.u32 %s358_s22, 4  ;;  %s33_s23 = int_to_ptr.vmem [resolvable:$true] %s32_s23 }
   0x7   :  { %35 = dma.hbm_to_vmem [thread:$0]  %s31_s19, 16, %s33_s23, [#allocation5]  }
   0x8   :  { %351 = dma.done.wait [#allocation3], 2048  }
   0x9   :  { %352 = vsyncadd [#allocation3], 4294965248 }
   0xa   :  { %353 = dma.done.wait [#allocation5], 16  }
   0xb   :  { %354 = vsyncadd [#allocation5], 4294967280  ;;  %v289_v0 = vld [vmem:[#allocation2 + $0x38] sm:$0xff]  ;;  %v288_v2 = vld [vmem:[#allocation2 + $0x30] sm:$0xff] }
   0xc   :  { %v297_v1 = vld [vmem:[#allocation2 + $0x78] sm:$0xff]  ;;  %185 = vmatpush.bf16.msra.mxu0 %v289_v0  ;;  %v296_v3 = vld [vmem:[#allocation2 + $0x70] sm:$0xff]  ;;  %v287_v5 = vld [vmem:[#allocation2 + $0x28] sm:$0xff] }
   0xd   :  { %198 = vmatpush.bf16.msra.mxu1 %v297_v1  ;;  %v44_v4 = vld [vmem:[%s391_s0] sm:$0xf]  ;;  %v295_v6 = vld [vmem:[#allocation2 + $0x68] sm:$0xff]  ;;  %v286_v7 = vld [vmem:[#allocation2 + $0x20] sm:$0xff] }
   0xe   :  { %46 = vst [vmem:[#allocation1] ss:$4 sm:$0xff] %v44_v4  ;;  %v294_v8 = vld [vmem:[#allocation2 + $0x60] sm:$0xff]  ;;  %v285_v9 = vld [vmem:[#allocation2 + $0x18] sm:$0xff]  ;;  %v284_v11 = vld [vmem:[#allocation2 + $0x10] sm:$0xff] }
   0xf   :  { %v293_v10 = vld [vmem:[#allocation2 + $0x58] sm:$0xff]  ;;  %v292_v12 = vld [vmem:[#allocation2 + $0x50] sm:$0xff]  ;;  %v283_v13 = vld [vmem:[#allocation2 + $0x8] sm:$0xff] }
  0x10   :  { %186 = vmatpush.bf16.msra.mxu0 %v288_v2  ;;  %v291_v14 = vld [vmem:[#allocation2 + $0x48] sm:$0xff]  ;;  %v282_v15 = vld [vmem:[#allocation2] sm:$0xff] }
  0x11   :  { %199 = vmatpush.bf16.msra.mxu1 %v296_v3  ;;  %v290_v16 = vld [vmem:[#allocation2 + $0x40] sm:$0xff] }
  0x12   :  { %v302_v21 = vld [vmem:[#allocation4] ss:$0 sm:$0xff] }
  0x14   :  { %187 = vmatpush.bf16.msra.mxu0 %v287_v5 }
  0x15   :  { %200 = vmatpush.bf16.msra.mxu1 %v295_v6  ;;  %v47_v17 = vld.sshfl [vmem:[#allocation1] sm:$0xff pattern:$0x73625140]  ;;  %v48_v18 = vld.sshfl [vmem:[#allocation1 + $0x8] sm:$0xff pattern:$0x73625140] }
  0x16   :  { %v51_v19 = vpack.c.bf16 %v47_v17, %v47_v17  ;;  %v52_v20 = vpack.c.bf16 %v48_v18, %v48_v18 }
  0x18   :  { %188 = vmatpush.bf16.msra.mxu0 %v286_v7 }
  0x19   :  { %201 = vmatpush.bf16.msra.mxu1 %v294_v8 }
  0x1c   :  { %189 = vmatpush.bf16.msra.mxu0 %v285_v9 }
  0x1d   :  { %202 = vmatpush.bf16.msra.mxu1 %v293_v10 }
  0x20   :  { %190 = vmatpush.bf16.msra.mxu0 %v284_v11 }
  0x21   :  { %203 = vmatpush.bf16.msra.mxu1 %v292_v12 }
  0x24   :  { %191 = vmatpush.bf16.msra.mxu0 %v283_v13 }
  0x25   :  { %204 = vmatpush.bf16.msra.mxu1 %v291_v14 }
  0x28   :  { %192 = vmatpush.bf16.msra.mxu0 %v282_v15 }
  0x29   :  { %205 = vmatpush.bf16.msra.mxu1 %v290_v16 }
  0x2b   :  { %193 = vmatmul.bf16.vlgmr.msra.gmra.mxu0 %v51_v19 }
  0x2c   :  { %206 = vmatmul.bf16.vlgmr.msra.gmra.mxu1 %v52_v20 }
  0xa8   :  { %v194_v22 = vpop.f32.mrf.mxu0 }
  0xa9   :  { %v207_v23 = vpop.f32.mrf.mxu1  ;;  %v195_v24 = vadd.f32 %v302_v21, %v194_v22 }
  0xab   :  { %v208_v25 = vadd.f32 %v207_v23, %v195_v24 }
  0xad   :  { %211 = vst [vmem:[%s394_s3] sm:$0x3] %v208_v25 }
  0xb0   :  { %v196_v26 = vpop.f32.mrf.mxu0 }
  0xb1   :  { %v209_v27 = vpop.f32.mrf.mxu1 }
  0xb2   :  { %216 = vsyncpa [#allocation3], 1 }
  0xb3   :  { %217 = vsyncpa [#allocation5], 1 }

// kernel: _lambda_.17
= control target key start
LH: loop header
LB: loop body
LE: loop exit
PB: predicated region body
PF: predicated region fallthrough
CT: control target
= control target key end

     0   :  { %s1247_s0 = inlined_call_operand.vmem [shape: f32[10,128], index: 0, kind: input, shape index: {}]   ;;  %s1248_s1 = inlined_call_operand.hbm [shape: bf16[4,128,128], index: 1, kind: input, shape index: {}]   ;;  %s1249_s2 = inlined_call_operand.hbm [shape: f32[4,1,128], index: 2, kind: input, shape index: {}]   ;;  %s1250_s3 = inlined_call_operand.hbm [shape: bf16[4,128,128], index: 3, kind: input, shape index: {}]   ;;  %s1251_s4 = inlined_call_operand.hbm [shape: f32[4,1,128], index: 4, kind: input, shape index: {}]   ;;  %s1252_s5 = inlined_call_operand.vmem [shape: f32[10,512], index: 5, kind: output, shape index: {}]  }
   0x1   :  { %1257 = sst [smem:[#allocation16_spill]] %s1249_s2 }
   0x2   :  { %10 = vsyncpa [#allocation3], 0 }
   0x3   :  { %12 = vsyncpa [#allocation3 + $0x1], 0 }
   0x4   :  { %13 = vsyncpa [#allocation5], 0 }
   0x5   :  { %15 = vsyncpa [#allocation5 + $0x1], 0 }
   0x6   :  { %16 = vsyncpa [#allocation8], 0 }
   0x7   :  { %18 = vsyncpa [#allocation8 + $0x1], 0  ;;  %s1041_s18 = smov 0   ;;  %s1043_s19 = smov 0  }
   0x8   :  { %s1045_s20 = smov 0   ;;  %s1047_s21 = smov 0  }
   0x9 LB: > { %1258 = sst [smem:[#allocation13_spill]] %s1003_s20  ;;  %s1060_s22 = sadd.s32 4294967295, %s1007_s21   ;;  %s1007_s21 = sphi %s1047_s21, %s1267_s21   ;;  %s1003_s20 = sphi %s1045_s20, %s1269_s20   ;;  %s999_s19 = sphi %s1043_s19, %s1271_s19   ;;  %s995_s18 = sphi %s1041_s18, %s1270_s18  }
   0xa   : > { %s1063_s23 = sadd.s32 1, %s1007_s21   ;;  %s52_s25 = sadd.s32 1, %s1003_s20 }
   0xb   : > { %1259 = sst [smem:[#allocation14_spill]] %s1063_s23  ;;  %s49_s24 = ssub.s32 %s1007_s21, %s1063_s23 }
   0xc   : > { %p50_p0 = scmp.eq.s32.totalorder %s49_s24, 0  ;;  %p59_p1 = scmp.ne.s32.totalorder %s1003_s20, %s999_s19 }
   0xd   : > { %p60_p2 = scmp.eq.s32.totalorder %s1007_s21, 0  ;;  %p65_p3 = scmp.ne.s32.totalorder %s999_s19, %s995_s18 }
   0xe   : > { %s1073_s26 = scalar_select %p50_p0, %s1003_s20, %s52_s25  }
   0xf   : > { %p61_p4 = por %p60_p2, %p59_p1  ;;  %p66_p5 = scmp.eq.s32.totalorder %s1060_s22, 0 }
  0x10   : > { %1260 = sst [smem:[#allocation15_spill]] %s1073_s26  ;;  %p167_p6 = scmp.eq.s32.totalorder %s1060_s22, 3 }
  0x11   : > { %p1077_p7 = por %p66_p5, %p65_p3  ;;  %p808_p8 = scmp.lt.s32.totalorder %s1007_s21, 4 }
  0x12   : > { %p1082_p9 = por %p167_p6, %p59_p1  ;;  %s1087_s29 = sand.u32 1, %s1003_s20  }
  0x13   : > { %p1089_p10 = pnand %p808_p8, %p61_p4  ;;  %s218_s6 = sand.u32 1, %s1007_s21  }
  0x14   : > { %s1264_s2 = sld [smem:[#allocation16_spill]]  ;;  %s221_s11 = scalar_lea.vmem [#allocation4], %s1087_s29 }
  0x15   : > { %s228_s12 = sshll.u32 %s221_s11, 4  ;;  %s1099_s13 = scalar_lea.sflag [#allocation5], %s218_s6  ;;  %s229_s12 = int_to_ptr.vmem [resolvable:$true] %s228_s12 }
  0x16   : > { %p849_p12 = pneg %p1089_p10 }
  0x1a   : > { %s224_s9 = scalar_lea.hbm %s1264_s2, %s1007_s21  ;;  %s852_s18 = scalar_lea.hbm %s1264_s2, 4 }
  0x1b   : > { %s226_s10 = sshll.u32 %s224_s9, 4  ;;  %s227_s10 = int_to_ptr.hbm [resolvable:$true] %s226_s10 }
  0x1c   : > { %s845_s14 = sshra.s32 %s227_s10, 4  ;;  %s846_s14 = int_to_ptr.hbm [resolvable:$true] %s845_s14 }
  0x1d   : > { %s847_s15 = scalar_lea.hbm %s846_s14, 1  ;;  %p853_p1 = scmp.lt.s32.totalorder %s846_s14, %s1264_s2 }
  0x1e   : > { %p848_p11 = scmp.ne.s32.totalorder %s846_s14, %s847_s15  ;;  %p854_p2 = scmp.lt.s32.totalorder %s852_s18, %s847_s15 }
  0x20   : > { %p850_p13 = pnand %p849_p12, %p848_p11  ;;  %p855_p3 = por %p854_p2, %p853_p1 }
  0x22   : > { %p851_p0 = pneg %p850_p13 }
  0x24   : > { %p856_p4 = pnand %p855_p3, %p851_p0 }
  0x26   : > { %859 = shalt.err (!%p856_p4)
}
  0x27   : > { %801 = dma.hbm_to_vmem [thread:$0]  (!%p1089_p10), %s227_s10, 16, %s229_s12, %s1099_s13  }
  0x28   : > { %p697_p5 = scmp.ge.s32.totalorder %s1007_s21, 1  ;;  %p272_p6 = scmp.lt.s32.totalorder %s1007_s21, 5 }
  0x29   : > { %s1253_s6 = sshll.u32 %s1087_s29, 6  ;;  %s769_s8 = sshll.u32 %s1007_s21, 6 }
  0x2a   : > { %p1118_p8 = pnand %p697_p5, %p272_p6  ;;  %s200_s9 = scalar_lea.vmem [#allocation2], %s1253_s6 }
  0x2b   : > { %s208_s11 = sshll.u32 %s200_s9, 4  ;;  %s205_s16 = scalar_lea.hbm %s1248_s1, %s769_s8  ;;  %s209_s11 = int_to_ptr.vmem [resolvable:$true] %s208_s11 }
  0x2c   : > { %s206_s17 = sshll.u32 %s205_s16, 4  ;;  %s197_s10 = scalar_lea.sflag [#allocation3], %s1087_s29  ;;  %s207_s17 = int_to_ptr.hbm [resolvable:$true] %s206_s17 }
  0x2d   : > { %s875_s12 = sshra.s32 %s207_s17, 4  ;;  %s882_s9 = scalar_lea.hbm %s1248_s1, 256  ;;  %s876_s12 = int_to_ptr.hbm [resolvable:$true] %s875_s12 }
  0x2e   : > { %s877_s18 = scalar_lea.hbm %s876_s12, 64  ;;  %p883_p1 = scmp.lt.s32.totalorder %s876_s12, %s1248_s1 }
  0x2f   : > { %p878_p11 = scmp.ne.s32.totalorder %s876_s12, %s877_s18  ;;  %p884_p2 = scmp.lt.s32.totalorder %s882_s9, %s877_s18 }
  0x31   : > { %p880_p13 = pnand %p878_p11, %p849_p12  ;;  %p885_p3 = por %p884_p2, %p883_p1 }
  0x33   : > { %p881_p0 = pneg %p880_p13 }
  0x35   : > { %p886_p4 = pnand %p885_p3, %p881_p0 }
  0x37   : > { %889 = shalt.err (!%p886_p4)
}
  0x38   : > { %s1009_s14 = smov 64   ;;  %s1010_s15 = smov 4  }
  0x39   : > { %798 = dma.hbm_to_vmem [thread:$0]  (!%p1089_p10), %s207_s17, 1024, %s209_s11, %s197_s10, %s1009_s14, %s1009_s14, %s1010_s15  }
  0x3a   : > { %s244_s24 = scalar_lea.hbm %s1250_s3, %s769_s8  ;;  %s1266_s20 = sshll.u32 %s1087_s29, 6 }
  0x3b   : > { %s245_s25 = sshll.u32 %s244_s24, 4  ;;  %s239_s23 = scalar_lea.vmem [#allocation6], %s1266_s20  ;;  %s246_s25 = int_to_ptr.hbm [resolvable:$true] %s245_s25 }
  0x3c   : > { %s247_s2 = sshll.u32 %s239_s23, 4  ;;  %s905_s6 = sshra.s32 %s246_s25, 4  ;;  %s248_s2 = int_to_ptr.vmem [resolvable:$true] %s247_s2  ;;  %s906_s6 = int_to_ptr.hbm [resolvable:$true] %s905_s6 }
  0x3d   : > { %s907_s12 = scalar_lea.hbm %s906_s6, 64  ;;  %s912_s17 = scalar_lea.hbm %s1250_s3, 256 }
  0x3e   : > { %p908_p5 = scmp.ne.s32.totalorder %s906_s6, %s907_s12  ;;  %p913_p13 = scmp.lt.s32.totalorder %s906_s6, %s1250_s3 }
  0x3f   : > { %p914_p0 = scmp.lt.s32.totalorder %s912_s17, %s907_s12 }
  0x40   : > { %p910_p6 = pnand %p908_p5, %p849_p12 }
  0x41   : > { %p915_p1 = por %p914_p0, %p913_p13 }
  0x42   : > { %p911_p11 = pneg %p910_p6 }
  0x44   : > { %p916_p2 = pnand %p915_p1, %p911_p11 }
  0x46   : > { %919 = shalt.err (!%p916_p2)
}
  0x47   : > { %804 = dma.hbm_to_vmem [thread:$0]  (!%p1089_p10), %s246_s25, 1024, %s248_s2, %s1099_s13, %s1009_s14, %s1009_s14, %s1010_s15  }
  0x48   : > { %s263_s10 = scalar_lea.hbm %s1251_s4, %s1007_s21  ;;  %s260_s9 = scalar_lea.vmem [#allocation7], %s1087_s29 }
  0x49   : > { %s267_s16 = sshll.u32 %s260_s9, 4  ;;  %s265_s24 = sshll.u32 %s263_s10, 4  ;;  %s268_s16 = int_to_ptr.vmem [resolvable:$true] %s267_s16  ;;  %s266_s24 = int_to_ptr.hbm [resolvable:$true] %s265_s24 }
  0x4a   : > { %s258_s6 = scalar_lea.sflag [#allocation8], %s1087_s29  ;;  %s935_s12 = sshra.s32 %s266_s24, 4  ;;  %s936_s12 = int_to_ptr.hbm [resolvable:$true] %s935_s12 }
  0x4b   : > { %s937_s18 = scalar_lea.hbm %s936_s12, 1  ;;  %s942_s14 = scalar_lea.hbm %s1251_s4, 4 }
  0x4c   : > { %p938_p3 = scmp.ne.s32.totalorder %s936_s12, %s937_s18  ;;  %p943_p6 = scmp.lt.s32.totalorder %s936_s12, %s1251_s4 }
  0x4d   : > { %p944_p11 = scmp.lt.s32.totalorder %s942_s14, %s937_s18 }
  0x4e   : > { %p940_p4 = pnand %p938_p3, %p849_p12 }
  0x4f   : > { %p945_p13 = por %p944_p11, %p943_p6 }
  0x50   : > { %p941_p5 = pneg %p940_p4 }
  0x52   : > { %p946_p0 = pnand %p945_p13, %p941_p5 }
  0x54   : > { %949 = shalt.err (!%p946_p0)
}
  0x55   : > { %807 = dma.hbm_to_vmem [thread:$0]  (!%p1089_p10), %s266_s24, 16, %s268_s16, %s258_s6  }
  0x56   : > { %276 = sbr.rel (%p1118_p8) target bundleno = 415 (0x19f), region = 40  ;;  %s1177_s29 = sand.u32 (!%p1118_p8), 1, %s999_s19  }
  0x57   : > { %s698_s25 = sshll.u32 (!%p1118_p8), %s1177_s29, 6  ;;  %s279_s2 = scalar_lea.sflag (!%p1118_p8), [#allocation3], %s1177_s29 }
  0x58   : > { %s1181_s17 = scalar_lea.vmem (!%p1118_p8), [#allocation2], %s698_s25 }
  0x5b   : > { %982 = dma.done.wait (%p1077_p7), %s279_s2, 1024  }
  0x5c   : > { %984 = vsyncadd (%p1077_p7), %s279_s2, 4294966272  ;;  %s288_s30 = sand.u32 1, %s1060_s22   ;;  %s291_s26 = scalar_lea.vmem [#allocation4], %s1177_s29 }
  0x5d   : > { %s289_s7 = scalar_lea.sflag [#allocation5], %s288_s30 }
  0x5e   : > { %986 = dma.done.wait (%p1077_p7), %s289_s7, 1040  }
  0x5f   : > { %988 = vsyncadd (%p1077_p7), %s289_s7, 4294966256  ;;  %s1193_s8 = scalar_lea.vmem [#allocation6], %s698_s25  ;;  %s308_s20 = scalar_lea.sflag [#allocation8], %s1177_s29 }
  0x60   : > { %s310_s23 = scalar_lea.vmem [#allocation7], %s1177_s29 }
  0x61   : > { %990 = dma.done.wait (%p1077_p7), %s308_s20, 16  }
  0x62   : > { %992 = vsyncadd (%p1077_p7), %s308_s20, 4294967280  ;;  %v778_v0 = vld [vmem:[%s1181_s17 + $0x38] sm:$0xff]  ;;  %v777_v1 = vld [vmem:[%s1181_s17 + $0x30] sm:$0xff]  ;;  %s700_s24 = sshll.u32 %s1177_s29, 4  ;;  %s766_s12 = sshll.u32 (%p1082_p9), %s1060_s22, 3 }
  0x63   : > { %421 = vmatpush.bf16.msra.mxu0 %v778_v0  ;;  %v786_v2 = vld [vmem:[%s1193_s8 + $0x38] sm:$0xff]  ;;  %v785_v3 = vld [vmem:[%s1193_s8 + $0x30] sm:$0xff]  ;;  %v776_v4 = vld [vmem:[%s1181_s17 + $0x28] sm:$0xff]  ;;  %s349_s6 = scalar_lea.vmem [#allocation9], %s700_s24  ;;  %s530_s13 = scalar_lea.vmem (%p1082_p9), %s1252_s5, %s766_s12 }
  0x64   : > { %506 = vmatpush.bf16.msra.mxu1 %v786_v2  ;;  %v784_v5 = vld [vmem:[%s1193_s8 + $0x28] sm:$0xff]  ;;  %v775_v6 = vld [vmem:[%s1181_s17 + $0x20] sm:$0xff]  ;;  %v774_v8 = vld [vmem:[%s1181_s17 + $0x18] sm:$0xff] }
  0x65   : > { %v783_v7 = vld [vmem:[%s1193_s8 + $0x20] sm:$0xff]  ;;  %v773_v9 = vld [vmem:[%s1181_s17 + $0x10] sm:$0xff]  ;;  %v782_v15 = vld [vmem:[%s1193_s8 + $0x18] sm:$0xff] }
  0x66   : > { %v772_v10 = vld [vmem:[%s1181_s17 + $0x8] sm:$0xff]  ;;  %v771_v11 = vld [vmem:[%s1181_s17] sm:$0xff]  ;;  %v781_v16 = vld [vmem:[%s1193_s8 + $0x10] sm:$0xff] }
  0x67   : > { %422 = vmatpush.bf16.msra.mxu0 %v777_v1  ;;  %v350_v12 = vld [vmem:[%s1247_s0] sm:$0xff]  ;;  %v351_v13 = vld [vmem:[%s1247_s0 + $0x8] sm:$0x3]  ;;  %v780_v17 = vld [vmem:[%s1193_s8 + $0x8] sm:$0xff] }
  0x68   : > { %507 = vmatpush.bf16.msra.mxu1 %v785_v3  ;;  %v352_v14 = vpack.c.bf16 %v351_v13, %v350_v12  ;;  %v779_v18 = vld [vmem:[%s1193_s8] sm:$0xff]  ;;  %v843_v20 = vld [vmem:[%s291_s26] ss:$0 sm:$0xff] }
  0x69   : > { %v844_v27 = vld [vmem:[%s310_s23] ss:$0 sm:$0xff] }
  0x6b   : > { %423 = vmatpush.bf16.msra.mxu0 %v776_v4 }
  0x6c   : > { %508 = vmatpush.bf16.msra.mxu1 %v784_v5 }
  0x6f   : > { %424 = vmatpush.bf16.msra.mxu0 %v775_v6 }
  0x70   : > { %509 = vmatpush.bf16.msra.mxu1 %v783_v7 }
  0x73   : > { %425 = vmatpush.bf16.msra.mxu0 %v774_v8 }
  0x74   : > { %510 = vmatpush.bf16.msra.mxu1 %v782_v15 }
  0x77   : > { %426 = vmatpush.bf16.msra.mxu0 %v773_v9 }
  0x78   : > { %511 = vmatpush.bf16.msra.mxu1 %v781_v16 }
  0x7b   : > { %427 = vmatpush.bf16.msra.mxu0 %v772_v10 }
  0x7c   : > { %512 = vmatpush.bf16.msra.mxu1 %v780_v17 }
  0x7f   : > { %428 = vmatpush.bf16.msra.mxu0 %v771_v11 }
  0x80   : > { %513 = vmatpush.bf16.msra.mxu1 %v779_v18 }
  0x82   : > { %429 = vmatmul.bf16.vlgmr.msra.gmra.mxu0 %v352_v14 }
  0xff   : > { %v430_v19 = vpop.f32.mrf.mxu0 }
 0x100   : > { %v431_v21 = vadd.f32 %v843_v20, %v430_v19 }
 0x102   : > { %v435_v24 = vmax.f32 %v431_v21, 0.0 }
 0x107   : > { %v432_v22 = vpop.f32.mrf.mxu0 }
 0x108   : > { %v433_v23 = vadd.f32 %v843_v20, %v432_v22 }
 0x10a   : > { %v436_v25 = vmax.f32 %v433_v23, 0.0 }
 0x10c   : > { %v437_v26 = vpack.c.bf16 %v436_v25, %v435_v24 }
 0x10e   : > { %514 = vmatmul.bf16.vlgmr.msra.gmra.mxu1 %v437_v26 }
 0x18b   : > { %v515_v28 = vpop.f32.mrf.mxu1 }
 0x18c   : > { %v516_v29 = vadd.f32 %v844_v27, %v515_v28 }
 0x18e   : > { %520 = vst [vmem:[%s349_s6] sm:$0xff] %v516_v29 }
 0x192   : > { %528 = sbr.rel (!%p1082_p9) target bundleno = 415 (0x19f), region = 60 }
 0x193   : > { %v517_v30 = vpop.f32.mrf.mxu1 }
 0x194   : > { %v518_v31 = vadd.f32 %v844_v27, %v517_v30 }
 0x195   : > { %v561_v32 = vld [vmem:[%s349_s6] sm:$0xff] (%p1082_p9) }
 0x196   : > { %521 = vst [vmem:[%s349_s6 + $0x8] sm:$0x3] %v518_v31 }
 0x197   : > { %562 = vst [vmem:[%s530_s13] sm:$0xff] %v561_v32 }
 0x19d   : > { %v563_v33 = vld [vmem:[%s349_s6 + $0x8] sm:$0xff] }
 0x19e   : > { %564 = vst [vmem:[%s530_s13 + $0x20] sm:$0xff] %v563_v33 }
 0x19f PF: > { %s1267_s21 = sld [smem:[#allocation14_spill]]  ;;  %s1270_s18 = smov %s999_s19 }
 0x1a0   : > { %s1268_s14 = sld [smem:[#allocation13_spill]] }
 0x1a1   : > { %s1269_s20 = sld [smem:[#allocation15_spill]] }
 0x1a5   : > { %p21_p7 = scmp.ge.s32.totalorder %s1267_s21, 6  }
 0x1a6   : > { %s1271_s19 = smov %s1268_s14 }
 0x1a7   :  { %23 = sbr.rel (!%p21_p7) target bundleno = 9 (0x9), region = 155 }
 0x1ac   :  { %580 = vsyncpa [#allocation3], 1 }
 0x1ad   :  { %582 = vsyncpa [#allocation3 + $0x1], 1 }
 0x1ae   :  { %583 = vsyncpa [#allocation5], 1 }
 0x1af   :  { %585 = vsyncpa [#allocation5 + $0x1], 1 }
 0x1b0   :  { %586 = vsyncpa [#allocation8], 1 }
 0x1b1   :  { %588 = vsyncpa [#allocation8 + $0x1], 1 }

// kernel: _lambda_.21
= control target key start
LH: loop header
LB: loop body
LE: loop exit
PB: predicated region body
PF: predicated region fallthrough
CT: control target
= control target key end

     0   :  { %s237_s0 = inlined_call_operand.vmem [shape: f32[2,128], index: 0, kind: input, shape index: {}]   ;;  %s238_s1 = inlined_call_operand.vmem [shape: bf16[128,128], index: 1, kind: input, shape index: {}]   ;;  %s239_s2 = inlined_call_operand.vmem [shape: f32[1,128], index: 2, kind: input, shape index: {}]   ;;  %s240_s3 = inlined_call_operand.hbm [shape: f32[2,128], index: 3, kind: output, shape index: {}]  }
   0x1   :  { %v154_v0 = vld [vmem:[%s238_s1 + $0x38] sm:$0xff]  ;;  %v153_v1 = vld [vmem:[%s238_s1 + $0x30] sm:$0xff] }
   0x2   :  { %85 = vmatpush.bf16.msra.mxu0 %v154_v0 }
   0x3   :  { %8 = vsyncpa [#allocation3], 0  ;;  %v152_v2 = vld [vmem:[%s238_s1 + $0x28] sm:$0xff]  ;;  %v151_v3 = vld [vmem:[%s238_s1 + $0x20] sm:$0xff]  ;;  %s183_s5 = smov [#allocation2]   ;;  %s106_s9 = sshll.u32 %s240_s3, 4  ;;  %s107_s9 = int_to_ptr.hbm [resolvable:$true] %s106_s9 }
   0x4   :  { %v150_v4 = vld [vmem:[%s238_s1 + $0x18] sm:$0xff]  ;;  %v149_v5 = vld [vmem:[%s238_s1 + $0x10] sm:$0xff]  ;;  %v148_v6 = vld [vmem:[%s238_s1 + $0x8] sm:$0xff]  ;;  %s104_s6 = sshll.u32 %s183_s5, 4  ;;  %s105_s6 = int_to_ptr.vmem [resolvable:$true] %s104_s6 }
   0x5   :  { %v147_v7 = vld [vmem:[%s238_s1] sm:$0xff] }
   0x6   :  { %86 = vmatpush.bf16.msra.mxu0 %v153_v1  ;;  %v15_v8 = vld [vmem:[%s237_s0] sm:$0x3] }
   0x7   :  { %v16_v9 = vpack.c.bf16 %v15_v8, %v15_v8  ;;  %v156_v10 = vld [vmem:[%s239_s2] ss:$0 sm:$0xff] }
   0xa   :  { %87 = vmatpush.bf16.msra.mxu0 %v152_v2 }
   0xe   :  { %88 = vmatpush.bf16.msra.mxu0 %v151_v3 }
  0x12   :  { %89 = vmatpush.bf16.msra.mxu0 %v150_v4 }
  0x16   :  { %90 = vmatpush.bf16.msra.mxu0 %v149_v5 }
  0x1a   :  { %91 = vmatpush.bf16.msra.mxu0 %v148_v6 }
  0x1e   :  { %92 = vmatpush.bf16.msra.mxu0 %v147_v7 }
  0x21   :  { %93 = vmatmul.bf16.vlgmr.msra.gmra.mxu0 %v16_v9 }
  0x9e   :  { %v94_v11 = vpop.f32.mrf.mxu0 }
  0x9f   :  { %v95_v12 = vadd.f32 %v156_v10, %v94_v11 }
  0xa1   :  { %98 = vst [vmem:[#allocation2] sm:$0x3] %v95_v12 }
  0xa2   :  { %109 = dma.vmem_to_hbm [thread:$0]  %s105_s6, 32, %s107_s9, [#allocation3]  }
  0xa6   :  { %v96_v13 = vpop.f32.mrf.mxu0 }
  0xa7   :  { %181 = dma.done.wait [#allocation3], 32  }
  0xa8   :  { %182 = vsyncadd [#allocation3], 4294967264 }
  0xa9   :  { %114 = vsyncpa [#allocation3], 1 }

// kernel: squeeze.3
= control target key start
LH: loop header
LB: loop body
LE: loop exit
PB: predicated region body
PF: predicated region fallthrough
CT: control target
= control target key end

     0   :  { %s80_s0 = inlined_call_operand.vmem [shape: f32[8], index: 0, kind: input, shape index: {}]   ;;  %s81_s1 = inlined_call_operand.hbm [shape: f32[2,4], index: 1, kind: output, shape index: {}]  }
   0x1   :  { %v5_v0 = vld [vmem:[%s80_s0] sm:$0x1] }
   0x2   :  { %2 = vsyncpa [#allocation1], 0  ;;  %6 = vst [vmem:[#allocation3] sm:$0x1] %v5_v0  ;;  %vm8_vm0 = vcmask 31744   ;;  %s62_s0 = smov 124  }
   0x3   :  { %s63_s8 = smov [#allocation0]   ;;  %s27_s1 = sshll.u32 %s81_s1, 4  ;;  %s28_s1 = int_to_ptr.hbm [resolvable:$true] %s27_s1 }
   0x4   :  { %s25_s9 = sshll.u32 %s63_s8, 4  ;;  %s26_s9 = int_to_ptr.vmem [resolvable:$true] %s25_s9 }
   0x9   :  { %v10_v1 = vld [vmem:[#allocation3] sm:$0x1]  }
   0xa   :  { %v7_v2 = vld [vmem:[#allocation3] sm:$0x1]   ;;  %11 = vrot.lane.b32.xlu0 %v10_v1, %s62_s0 }
   0xb   :  { %9 = vst.msk [vmem:[#allocation2] sm:$0x1] %vm8_vm0, %v7_v2  }
  0x7c   :  { %v12_v3 = vpop.permute.xlu0 %11  }
  0x7d   :  { %15 = vst.msk [vmem:[#allocation2 + $0x1] sm:$0x1] %vm8_vm0, %v12_v3  }
  0x84   :  { %v18_v4 = vld [vmem:[#allocation2] sm:$0x3] }
  0x85   :  { %21 = vst [vmem:[#allocation0] sm:$0x3] %v18_v4 }
  0x86   :  { %30 = dma.vmem_to_hbm [thread:$0]  %s26_s9, 32, %s28_s1, [#allocation1]  }
  0x87   :  { %60 = dma.done.wait [#allocation1], 32  }
  0x88   :  { %61 = vsyncadd [#allocation1], 4294967264 }
  0x89   :  { %33 = vsyncpa [#allocation1], 1 }

// kernel: _lambda_.20
= control target key start
LH: loop header
LB: loop body
LE: loop exit
PB: predicated region body
PF: predicated region fallthrough
CT: control target
= control target key end

     0   :  { %s634_s1 = inlined_call_operand.vmem [shape: bf16[512,128], index: 1, kind: input, shape index: {}]   ;;  %s635_s2 = inlined_call_operand.vmem [shape: f32[1,128], index: 2, kind: input, shape index: {}]   ;;  %s636_s0 = inlined_call_operand.vmem [shape: f32[8,512], index: 0, kind: input, shape index: {}]   ;;  %s637_s3 = inlined_call_operand.vmem [shape: f32[8,128], index: 3, kind: output, shape index: {}]  }
   0x1   :  { %v474_v0 = vld [vmem:[%s634_s1 + $0x38] sm:$0xff]  ;;  %v473_v4 = vld [vmem:[%s634_s1 + $0x30] sm:$0xff]  ;;  %v472_v8 = vld [vmem:[%s634_s1 + $0x28] sm:$0xff] }
   0x2   :  { %v482_v1 = vld [vmem:[%s634_s1 + $0x78] sm:$0xff]  ;;  %282 = vmatpush.bf16.msra.mxu0 %v474_v0  ;;  %v481_v5 = vld [vmem:[%s634_s1 + $0x70] sm:$0xff]  ;;  %v480_v9 = vld [vmem:[%s634_s1 + $0x68] sm:$0xff] }
   0x3   :  { %v490_v2 = vld [vmem:[%s634_s1 + $0xb8] sm:$0xff]  ;;  %295 = vmatpush.bf16.msra.mxu1 %v482_v1  ;;  %v489_v6 = vld [vmem:[%s634_s1 + $0xb0] sm:$0xff]  ;;  %v488_v10 = vld [vmem:[%s634_s1 + $0xa8] sm:$0xff] }
   0x4   :  { %v498_v3 = vld [vmem:[%s634_s1 + $0xf8] sm:$0xff]  ;;  %308 = vmatpush.bf16.msra.mxu2 %v490_v2  ;;  %v497_v7 = vld [vmem:[%s634_s1 + $0xf0] sm:$0xff]  ;;  %v496_v11 = vld [vmem:[%s634_s1 + $0xe8] sm:$0xff] }
   0x5   :  { %321 = vmatpush.bf16.msra.mxu3 %v498_v3  ;;  %v471_v12 = vld [vmem:[%s634_s1 + $0x20] sm:$0xff]  ;;  %v470_v16 = vld [vmem:[%s634_s1 + $0x18] sm:$0xff]  ;;  %v469_v20 = vld [vmem:[%s634_s1 + $0x10] sm:$0xff] }
   0x6   :  { %283 = vmatpush.bf16.msra.mxu0 %v473_v4  ;;  %v479_v13 = vld [vmem:[%s634_s1 + $0x60] sm:$0xff]  ;;  %v478_v17 = vld [vmem:[%s634_s1 + $0x58] sm:$0xff]  ;;  %v477_v21 = vld [vmem:[%s634_s1 + $0x50] sm:$0xff] }
   0x7   :  { %296 = vmatpush.bf16.msra.mxu1 %v481_v5  ;;  %v487_v14 = vld [vmem:[%s634_s1 + $0xa0] sm:$0xff]  ;;  %v486_v18 = vld [vmem:[%s634_s1 + $0x98] sm:$0xff]  ;;  %v485_v22 = vld [vmem:[%s634_s1 + $0x90] sm:$0xff] }
   0x8   :  { %309 = vmatpush.bf16.msra.mxu2 %v489_v6  ;;  %v495_v15 = vld [vmem:[%s634_s1 + $0xe0] sm:$0xff]  ;;  %v494_v19 = vld [vmem:[%s634_s1 + $0xd8] sm:$0xff]  ;;  %v493_v23 = vld [vmem:[%s634_s1 + $0xd0] sm:$0xff] }
   0x9   :  { %322 = vmatpush.bf16.msra.mxu3 %v497_v7  ;;  %v468_v24 = vld [vmem:[%s634_s1 + $0x8] sm:$0xff]  ;;  %v467_v28 = vld [vmem:[%s634_s1] sm:$0xff]  ;;  %v16_v34 = vld [vmem:[%s636_s0 + $0x10] sm:$0xff] }
   0xa   :  { %284 = vmatpush.bf16.msra.mxu0 %v472_v8  ;;  %v476_v25 = vld [vmem:[%s634_s1 + $0x48] sm:$0xff]  ;;  %v475_v29 = vld [vmem:[%s634_s1 + $0x40] sm:$0xff]  ;;  %v17_v35 = vld [vmem:[%s636_s0 + $0x18] sm:$0xff]  ;;  %v20_v38 = vpack.c.bf16 %v16_v34, %v16_v34 }
   0xb   :  { %297 = vmatpush.bf16.msra.mxu1 %v480_v9  ;;  %v484_v26 = vld [vmem:[%s634_s1 + $0x88] sm:$0xff]  ;;  %v483_v30 = vld [vmem:[%s634_s1 + $0x80] sm:$0xff]  ;;  %v21_v39 = vpack.c.bf16 %v17_v35, %v17_v35 }
   0xc   :  { %310 = vmatpush.bf16.msra.mxu2 %v488_v10  ;;  %v492_v27 = vld [vmem:[%s634_s1 + $0xc8] sm:$0xff]  ;;  %v14_v31 = vld [vmem:[%s636_s0] sm:$0xff] }
   0xd   :  { %323 = vmatpush.bf16.msra.mxu3 %v496_v11  ;;  %v15_v32 = vld [vmem:[%s636_s0 + $0x8] sm:$0xff]  ;;  %v491_v33 = vld [vmem:[%s634_s1 + $0xc0] sm:$0xff]  ;;  %v18_v36 = vpack.c.bf16 %v14_v31, %v14_v31 }
   0xe   :  { %285 = vmatpush.bf16.msra.mxu0 %v471_v12  ;;  %v19_v37 = vpack.c.bf16 %v15_v32, %v15_v32  ;;  %v499_v40 = vld [vmem:[%s635_s2] ss:$0 sm:$0xff] }
   0xf   :  { %298 = vmatpush.bf16.msra.mxu1 %v479_v13 }
  0x10   :  { %311 = vmatpush.bf16.msra.mxu2 %v487_v14 }
  0x11   :  { %324 = vmatpush.bf16.msra.mxu3 %v495_v15 }
  0x12   :  { %286 = vmatpush.bf16.msra.mxu0 %v470_v16 }
  0x13   :  { %299 = vmatpush.bf16.msra.mxu1 %v478_v17 }
  0x14   :  { %312 = vmatpush.bf16.msra.mxu2 %v486_v18 }
  0x15   :  { %325 = vmatpush.bf16.msra.mxu3 %v494_v19 }
  0x16   :  { %287 = vmatpush.bf16.msra.mxu0 %v469_v20 }
  0x17   :  { %300 = vmatpush.bf16.msra.mxu1 %v477_v21 }
  0x18   :  { %313 = vmatpush.bf16.msra.mxu2 %v485_v22 }
  0x19   :  { %326 = vmatpush.bf16.msra.mxu3 %v493_v23 }
  0x1a   :  { %288 = vmatpush.bf16.msra.mxu0 %v468_v24 }
  0x1b   :  { %301 = vmatpush.bf16.msra.mxu1 %v476_v25 }
  0x1c   :  { %314 = vmatpush.bf16.msra.mxu2 %v484_v26 }
  0x1d   :  { %327 = vmatpush.bf16.msra.mxu3 %v492_v27 }
  0x1e   :  { %289 = vmatpush.bf16.msra.mxu0 %v467_v28 }
  0x1f   :  { %302 = vmatpush.bf16.msra.mxu1 %v475_v29 }
  0x20   :  { %315 = vmatpush.bf16.msra.mxu2 %v483_v30 }
  0x21   :  { %328 = vmatpush.bf16.msra.mxu3 %v491_v33  ;;  %290 = vmatmul.bf16.vlgmr.msra.gmra.mxu0 %v18_v36 }
  0x22   :  { %303 = vmatmul.bf16.vlgmr.msra.gmra.mxu1 %v19_v37 }
  0x23   :  { %316 = vmatmul.bf16.vlgmr.msra.gmra.mxu2 %v20_v38 }
  0x24   :  { %329 = vmatmul.bf16.vlgmr.msra.gmra.mxu3 %v21_v39 }
  0x9e   :  { %v291_v41 = vpop.f32.mrf.mxu0 }
  0x9f   :  { %v304_v42 = vpop.f32.mrf.mxu1  ;;  %v292_v43 = vadd.f32 %v499_v40, %v291_v41 }
  0xa1   :  { %v305_v44 = vadd.f32 %v304_v42, %v292_v43 }
  0xa6   :  { %v317_v45 = vpop.f32.mrf.mxu2  ;;  %v293_v48 = vpop.f32.mrf.mxu0 }
  0xa7   :  { %v330_v46 = vpop.f32.mrf.mxu3  ;;  %v318_v47 = vadd.f32 %v317_v45, %v305_v44  ;;  %v306_v49 = vpop.f32.mrf.mxu1 }
  0xa9   :  { %v331_v50 = vadd.f32 %v330_v46, %v318_v47 }
  0xab   :  { %334 = vst [vmem:[%s637_s3] sm:$0xff] %v331_v50 }
  0xae   :  { %v319_v51 = vpop.f32.mrf.mxu2 }
  0xaf   :  { %v332_v52 = vpop.f32.mrf.mxu3 }

</bundles_post_ra>
